<compile_context>
chip_gen: v7x
topology: tpu7x:2x2x1
jax: 0.10.0
libtpu: 0.0.40
codegen_flags: <defaults>
</compile_context>

<pallas_src>
import functools

import jax
import jax.numpy as jnp
import numpy as np
from jax.experimental import pallas as pl
from jax.experimental.pallas import tpu as pltpu


def _lane_block(n, cap=512):
    """Lane (last-dim) block: full extent if small, else a multiple of 128 chosen
    so there are >= 2 blocks (keeps both v7x TensorCores busy, bounds VMEM)."""
    if n <= 128:
        return n
    return min(cap, max(128, ((n // 2) // 128) * 128))


# ---------------- LSTM recurrence (batch-on-lanes, time-blocked, fused heads)
def _lstm_kernel(x_ref, wc_ref, bc_ref, whh_ref, wgb_ref, bgb_ref,
                 gate_ref, b_ref, h_sc, c_sc, *, nh, rho, tt):
    # grid = (batch_blocks, time_blocks); time is innermost and "arbitrary".
    @pl.when(pl.program_id(1) == 0)
    def _():
        h_sc[...] = jnp.zeros_like(h_sc)
        c_sc[...] = jnp.zeros_like(c_sc)

    wc = wc_ref[...]      # (4nh, nx)   folded linearIn @ w_ih
    bc = bc_ref[...]      # (4nh, 1)    folded biases (b_in@w_ih + b_ih + b_hh)
    whh = whh_ref[...]    # (4nh, nh)
    wgb = wgb_ref[...]    # (rho+2, nh) fused linearOut ++ linearB
    bgb = bgb_ref[...]    # (rho+2, 1)

    def step(j, carry):
        # batch-on-lanes: every tensor below is (channels, bns)
        gates = (jnp.dot(wc, x_ref[j], preferred_element_type=jnp.float32)
                 + jnp.dot(whh, h_sc[...], preferred_element_type=jnp.float32)
                 + bc)                                           # (4nh, bns)
        i = jax.nn.sigmoid(gates[0 * nh:1 * nh])
        f = jax.nn.sigmoid(gates[1 * nh:2 * nh])
        g = jnp.tanh(gates[2 * nh:3 * nh])
        o = jax.nn.sigmoid(gates[3 * nh:4 * nh])
        c_new = f * c_sc[...] + i * g
        h_new = o * jnp.tanh(c_new)
        c_sc[...] = c_new
        h_sc[...] = h_new
        # fused linearOut ++ linearB epilogue while h is resident in VMEM
        gb = jnp.maximum(
            jnp.dot(wgb, h_new, preferred_element_type=jnp.float32) + bgb, 0.0)
        gate_ref[j] = gb[:rho]          # (rho, bns) lane-dense store
        b_ref[j] = gb[rho:]             # (2,   bns) lane-dense store
        return carry

    jax.lax.fori_loop(0, tt, step, 0, unroll=True)


def lstm_fused(x_t, w_comb_t, b_comb, w_hh_r, w_gb_t, b_gb, *,
               nh, rho, bns=None, tt=8):
    nt, nx, ns = x_t.shape
    ngb = w_gb_t.shape[0]
    bns = _lane_block(ns) if bns is None else bns
    tt = min(tt, nt)
    grid = (pl.cdiv(ns, bns), pl.cdiv(nt, tt))
    return pl.pallas_call(
        functools.partial(_lstm_kernel, nh=nh, rho=rho, tt=tt),
        out_shape=(jax.ShapeDtypeStruct((nt, rho, ns), jnp.float32),
                   jax.ShapeDtypeStruct((nt, ngb - rho, ns), jnp.float32)),
        grid=grid,
        in_specs=[pl.BlockSpec((tt, nx, bns), lambda b, t: (t, 0, b)),
                  pl.BlockSpec((4 * nh, nx), lambda b, t: (0, 0)),
                  pl.BlockSpec((4 * nh, 1), lambda b, t: (0, 0)),
                  pl.BlockSpec((4 * nh, nh), lambda b, t: (0, 0)),
                  pl.BlockSpec((ngb, nh), lambda b, t: (0, 0)),
                  pl.BlockSpec((ngb, 1), lambda b, t: (0, 0))],
        out_specs=(pl.BlockSpec((tt, rho, bns), lambda b, t: (t, 0, b)),
                   pl.BlockSpec((tt, ngb - rho, bns), lambda b, t: (t, 0, b))),
        scratch_shapes=[pltpu.VMEM((nh, bns), jnp.float32),
                        pltpu.VMEM((nh, bns), jnp.float32)],
        compiler_params=pltpu.CompilerParams(
            dimension_semantics=("parallel", "arbitrary")),
    )(x_t, w_comb_t, b_comb, w_hh_r, w_gb_t, b_gb)


# ------------------------------------- sliding-window age mix (time blocked)
def _age_kernel(p_ref, gate_ref, b0_ref, func_ref, out_ref, *,
                rho, ny, nyc, tk, nt):
    tb = pl.program_id(1)
    bs = p_ref.shape[1]
    k0 = tb * tk
    func = func_ref[...]                                   # (nyc, rho)

    def compute(j, k):
        pwin = p_ref[pl.ds(k - rho, rho), :]               # (rho, bs), lanes = ns
        yt = pwin * gate_ref[j]                            # (rho, bs), no transpose
        s = jnp.sum(yt, axis=0, keepdims=True)             # (1, bs) sublane reduce
        # small MXU matmul; off the VALU critical path (leave unless vex-bound)
        cout = jnp.dot(func, yt, preferred_element_type=jnp.float32)   # (nyc, bs)
        rows = [s * b0_ref[j:j + 1, :]]
        if ny > 1:
            rows.append(jnp.zeros((ny - 1, bs), jnp.float32))
        # NOTE: s == 0 -> inf/nan, matching the PyTorch reference behavior.
        rows.append(cout * pl.reciprocal(s, approx=True))
        out_ref[j] = jnp.concatenate(rows, axis=0)          # single lane-dense store

    all_warmup = k0 + tk <= rho                             # whole block before rho
    all_steady = jnp.logical_and(k0 >= rho, k0 + tk <= nt)  # no predicates needed

    @pl.when(all_warmup)
    def _():
        out_ref[...] = jnp.zeros_like(out_ref)

    @pl.when(all_steady)
    def _():
        for j in range(tk):
            compute(j, k0 + j)

    @pl.when(jnp.logical_not(jnp.logical_or(all_warmup, all_steady)))
    def _():
        for j in range(tk):
            k = k0 + j
            valid = jnp.logical_and(k >= rho, k < nt)

            @pl.when(valid)
            def _c(j=j, k=k):
                compute(j, k)

            @pl.when(jnp.logical_not(valid))
            def _z(j=j):
                out_ref[j] = jnp.zeros((ny + nyc, bs), jnp.float32)


def age_mix(p, gate_l, b0, func, *, rho, ny, nyc, tk=8, bs=None):
    nt, ns = p.shape
    tk = min(tk, nt)
    bs = _lane_block(ns) if bs is None else bs
    grid = (pl.cdiv(ns, bs), pl.cdiv(nt, tk))
    return pl.pallas_call(
        functools.partial(_age_kernel, rho=rho, ny=ny, nyc=nyc, tk=tk, nt=nt),
        out_shape=jax.ShapeDtypeStruct((nt, ny + nyc, ns), jnp.float32),
        grid=grid,
        in_specs=[pl.BlockSpec((nt, bs), lambda sb, tb: (0, sb)),          # p resident per lane block
                  pl.BlockSpec((tk, rho, bs), lambda sb, tb: (tb, 0, sb)), # gate slab (lane-dense)
                  pl.BlockSpec((tk, bs), lambda sb, tb: (tb, sb)),         # b[:, :, 0]
                  pl.BlockSpec((nyc, rho), lambda sb, tb: (0, 0))],        # func
        out_specs=pl.BlockSpec((tk, ny + nyc, bs), lambda sb, tb: (tb, 0, sb)),
        compiler_params=pltpu.CompilerParams(
            dimension_semantics=("parallel", "parallel")),
    )(p, gate_l, b0, func)


# --------------------------------------------------------------- full forward
@functools.partial(jax.jit, static_argnames=("ny", "nyc", "nh", "rho"))
def age_lstm2_forward(x, params, *, ny, nyc, nh, rho):
    nt, ns, nx = x.shape

    # fold linearIn into the LSTM input projection (no nonlinearity between them)
    w_comb_t = (params["w_in"] @ params["w_ih_t"]).T                  # (4nh, nx)
    b_comb = (params["b_in"] @ params["w_ih_t"]
              + params["b_ih"] + params["b_hh"]).reshape(4 * nh, 1)   # (4nh, 1)
    w_hh_r = params["w_hh_t"].T                                       # (4nh, nh)
    # fused linearOut ++ linearB weights, applied as the LSTM epilogue
    w_gb_t = jnp.concatenate([params["w_out"], params["w_b"]], axis=1).T  # (rho+2, nh)
    b_gb = jnp.concatenate([params["b_out"], params["b_b"]]).reshape(-1, 1)

    # cheap layout plumbing: nx is tiny, so transposing x costs far less than the
    # gates_x HBM round trip it replaces.
    x_t = jnp.transpose(x, (0, 2, 1))                                 # (nt, nx, ns)

    gate_l, b_l = lstm_fused(x_t, w_comb_t, b_comb, w_hh_r, w_gb_t, b_gb,
                             nh=nh, rho=rho)     # (nt, rho, ns), (nt, 2, ns)

    # func[j, :] = r1[j] * (1 - exp(-10**r2[j] * t)),   t = flip(arange(rho))/nh
    t = jnp.arange(rho, dtype=jnp.float32)[::-1] / nh
    r = params["r"]
    func = r[1][:, None] * (1.0 - jnp.exp(-(10.0 ** r[2])[:, None] * t[None, :]))

    p = x[:, :, 0]                               # (nt, ns), already lane-dense
    b0 = b_l[:, 0, :]                            # (nt, ns), tiny slice
    out_l = age_mix(p, gate_l, b0, func, rho=rho, ny=ny, nyc=nyc)  # (nt, ny+nyc, ns)

    # interface layout (matches PyTorch module): (nt, ns, channels)
    out = jnp.transpose(out_l, (0, 2, 1))
    gate = jnp.transpose(gate_l, (0, 2, 1))
    bcoef = jnp.transpose(b_l, (0, 2, 1))
    return out, bcoef, gate


# ---------------------------------------------------------------- parameters
def init_params(key, *, nx, ny, nyc, nh, rho):
    ks = jax.random.split(key, 10)

    def unif(k, shape, stdv):
        return jax.random.uniform(k, shape, jnp.float32, -stdv, stdv)

    s_in = 1.0 / float(np.sqrt(nx))
    s_h = 1.0 / float(np.sqrt(nh))
    return dict(
        w_in=unif(ks[0], (nx, nh), s_in), b_in=unif(ks[1], (nh,), s_in),
        w_ih_t=unif(ks[2], (nh, 4 * nh), s_h), w_hh_t=unif(ks[3], (nh, 4 * nh), s_h),
        b_ih=unif(ks[4], (4 * nh,), s_h), b_hh=unif(ks[5], (4 * nh,), s_h),
        w_out=unif(ks[6], (nh, rho), s_h), b_out=unif(ks[7], (rho,), s_h),
        w_b=unif(ks[8], (nh, 2), s_h), b_b=unif(ks[9], (2,), s_h),
        # AgeLSTM2.__init__ sets r = zeros(3, nyc); use small deterministic
        # non-zero values here so the age-mixing branch is actually exercised.
        r=jnp.stack([jnp.linspace(0.1, 0.3, nyc),
                     jnp.linspace(0.5, 1.0, nyc),
                     jnp.linspace(-0.3, 0.3, nyc)]).astype(jnp.float32),
    )


# --------------------------------------------------------- pure-JAX reference
def reference(x, params, *, ny, nyc, nh, rho):
    nt, ns, nx = x.shape
    x0 = x @ params["w_in"] + params["b_in"]
    b_lstm = params["b_ih"] + params["b_hh"]

    def step(carry, xt):
        h, c = carry
        gates = xt @ params["w_ih_t"] + h @ params["w_hh_t"] + b_lstm
        i = jax.nn.sigmoid(gates[:, :nh]); f = jax.nn.sigmoid(gates[:, nh:2 * nh])
        g = jnp.tanh(gates[:, 2 * nh:3 * nh]); o = jax.nn.sigmoid(gates[:, 3 * nh:])
        c = f * c + i * g
        h = o * jnp.tanh(c)
        return (h, c), h

    init = (jnp.zeros((ns, nh), jnp.float32), jnp.zeros((ns, nh), jnp.float32))
    _, out_lstm = jax.lax.scan(step, init, x0)
    gate = jax.nn.relu(out_lstm @ params["w_out"] + params["b_out"])
    bcoef = jax.nn.relu(out_lstm @ params["w_b"] + params["b_b"])
    t = jnp.arange(rho, dtype=jnp.float32)[::-1] / nh
    r = params["r"]
    func = r[1][:, None] * (1.0 - jnp.exp(-(10.0 ** r[2])[:, None] * t[None, :]))
    out = jnp.zeros((nt, ns, ny + nyc), jnp.float32)
    for k in range(rho, nt):
        p = x[k - rho:k, :, 0]
        yt = p.T * gate[k]
        s = yt.sum(axis=1)
        out = out.at[k, :, 0].set(s * bcoef[k, :, 0])
        out = out.at[k, :, ny:].set((yt @ func.T) / s[:, None])
    return out, bcoef, gate


if __name__ == "__main__":
    nx, ny, nyc, nh, rho = 4, 2, 3, 32, 8
    nt, ns = 16, 4

    key = jax.random.PRNGKey(0)
    kp, kx = jax.random.split(key)
    params = init_params(kp, nx=nx, ny=ny, nyc=nyc, nh=nh, rho=rho)

    x = jax.random.normal(kx, (nt, ns, nx), jnp.float32)
    # first forcing variable ("precip") kept positive like the hydrology use case
    x = x.at[:, :, 0].set(jnp.abs(x[:, :, 0]) + 0.1)

    out, b, gate = age_lstm2_forward(x, params, ny=ny, nyc=nyc, nh=nh, rho=rho)
    jax.block_until_ready((out, b, gate))

    out_r, b_r, gate_r = reference(x, params, ny=ny, nyc=nyc, nh=nh, rho=rho)
    np.testing.assert_allclose(np.asarray(gate), np.asarray(gate_r), rtol=2e-3, atol=2e-3)
    np.testing.assert_allclose(np.asarray(b), np.asarray(b_r), rtol=2e-3, atol=2e-3)
    o, orf = np.asarray(out), np.asarray(out_r)
    m = np.isfinite(orf) & (np.abs(orf) < 1e6)
    np.testing.assert_allclose(o[m], orf[m], rtol=2e-2, atol=1e-3)

    print("KERNEL_OK")
</pallas_src>

<mosaic_0001>
module attributes {stable_mosaic.version = 11 : i64} {
  func.func @_lstm_kernel(%arg0: i32, %arg1: i32, %arg2: memref<8x4x4xf32, #tpu.memory_space<vmem>>, %arg3: memref<128x4xf32, #tpu.memory_space<vmem>>, %arg4: memref<128x1xf32, #tpu.memory_space<vmem>>, %arg5: memref<128x32xf32, #tpu.memory_space<vmem>>, %arg6: memref<10x32xf32, #tpu.memory_space<vmem>>, %arg7: memref<10x1xf32, #tpu.memory_space<vmem>>, %arg8: memref<8x8x4xf32, #tpu.memory_space<vmem>>, %arg9: memref<8x2x4xf32, #tpu.memory_space<vmem>>, %arg10: memref<32x4xf32, #tpu.memory_space<vmem>>, %arg11: memref<32x4xf32, #tpu.memory_space<vmem>>) attributes {dimension_semantics = [#tpu.dimension_semantics<parallel>, #tpu.dimension_semantics<arbitrary>], iteration_bounds = array<i64: 1, 2>, scalar_prefetch = 0 : i64, scratch_operands = 2 : i64, tpu.core_type = #tpu.core_type<tc>, window_params = [{transform_indices = @transform_0, window_bounds = array<i64: 8, 4, 4>}, {pipeline_mode = #tpu.pipeline_mode<synchronous>, transform_indices = @transform_1, window_bounds = array<i64: 128, 4>}, {pipeline_mode = #tpu.pipeline_mode<synchronous>, transform_indices = @transform_2, window_bounds = array<i64: 128, 1>}, {pipeline_mode = #tpu.pipeline_mode<synchronous>, transform_indices = @transform_3, window_bounds = array<i64: 128, 32>}, {pipeline_mode = #tpu.pipeline_mode<synchronous>, transform_indices = @transform_4, window_bounds = array<i64: 10, 32>}, {pipeline_mode = #tpu.pipeline_mode<synchronous>, transform_indices = @transform_5, window_bounds = array<i64: 10, 1>}, {transform_indices = @transform_6, window_bounds = array<i64: 8, 8, 4>}, {transform_indices = @transform_7, window_bounds = array<i64: 8, 2, 4>}]} {
    %c0_i32 = arith.constant 0 : i32
    %0 = arith.cmpi eq, %arg1, %c0_i32 : i32
    %1 = arith.extui %0 : i1 to i32
    %c0_i32_0 = arith.constant 0 : i32
    %2 = arith.cmpi ne, %1, %c0_i32_0 : i32
    scf.if %2 {
      %cst_178 = arith.constant 0.000000e+00 : f32
      %424 = vector.broadcast %cst_178 : f32 to vector<32x4xf32>
      %c0_179 = arith.constant 0 : index
      %c0_180 = arith.constant 0 : index
      %425 = vector.load %arg10[%c0_179, %c0_180] : memref<32x4xf32, #tpu.memory_space<vmem>>, vector<32x4xf32>
      tpu.vector_store %arg10[%c0_179, %c0_180], %424 {strides = array<i32>} : memref<32x4xf32, #tpu.memory_space<vmem>>, vector<32x4xf32>,
      %cst_181 = arith.constant 0.000000e+00 : f32
      %426 = vector.broadcast %cst_181 : f32 to vector<32x4xf32>
      %c0_182 = arith.constant 0 : index
      %c0_183 = arith.constant 0 : index
      %427 = vector.load %arg11[%c0_182, %c0_183] : memref<32x4xf32, #tpu.memory_space<vmem>>, vector<32x4xf32>
      tpu.vector_store %arg11[%c0_182, %c0_183], %426 {strides = array<i32>} : memref<32x4xf32, #tpu.memory_space<vmem>>, vector<32x4xf32>,
    } else {
    }
    %c0 = arith.constant 0 : index
    %c0_1 = arith.constant 0 : index
    %3 = vector.load %arg3[%c0, %c0_1] : memref<128x4xf32, #tpu.memory_space<vmem>>, vector<128x4xf32>
    %c0_2 = arith.constant 0 : index
    %c0_3 = arith.constant 0 : index
    %4 = vector.load %arg4[%c0_2, %c0_3] : memref<128x1xf32, #tpu.memory_space<vmem>>, vector<128x1xf32>
    %c0_4 = arith.constant 0 : index
    %c0_5 = arith.constant 0 : index
    %5 = vector.load %arg5[%c0_4, %c0_5] : memref<128x32xf32, #tpu.memory_space<vmem>>, vector<128x32xf32>
    %c0_6 = arith.constant 0 : index
    %c0_7 = arith.constant 0 : index
    %6 = vector.load %arg6[%c0_6, %c0_7] : memref<10x32xf32, #tpu.memory_space<vmem>>, vector<10x32xf32>
    %c0_8 = arith.constant 0 : index
    %c0_9 = arith.constant 0 : index
    %7 = vector.load %arg7[%c0_8, %c0_9] : memref<10x1xf32, #tpu.memory_space<vmem>>, vector<10x1xf32>
    %c0_i32_10 = arith.constant 0 : i32
    %8 = arith.index_cast %c0_i32_10 : i32 to index
    %c0_11 = arith.constant 0 : index
    %c0_12 = arith.constant 0 : index
    %9 = vector.load %arg2[%8, %c0_11, %c0_12] : memref<8x4x4xf32, #tpu.memory_space<vmem>>, vector<1x4x4xf32>
    %10 = vector.shape_cast %9 : vector<1x4x4xf32> to vector<4x4xf32>
    %cst = arith.constant dense<0.000000e+00> : vector<128x4xf32>
    %11 = tpu.matmul %3, %10, %cst {dimension_numbers = #tpu.dot_dimension_numbers<[1], [0], [0], [1], [0, 0, 1, 1], [], []>} : vector<128x4xf32>, vector<4x4xf32>, vector<128x4xf32> -> vector<128x4xf32>
    %c0_13 = arith.constant 0 : index
    %c0_14 = arith.constant 0 : index
    %12 = vector.load %arg10[%c0_13, %c0_14] : memref<32x4xf32, #tpu.memory_space<vmem>>, vector<32x4xf32>
    %cst_15 = arith.constant dense<0.000000e+00> : vector<128x4xf32>
    %13 = tpu.matmul %5, %12, %cst_15 {dimension_numbers = #tpu.dot_dimension_numbers<[1], [0], [0], [1], [0, 0, 1, 1], [], []>} : vector<128x32xf32>, vector<32x4xf32>, vector<128x4xf32> -> vector<128x4xf32>
    %14 = arith.addf %11, %13 : vector<128x4xf32>
    %15 = vector.broadcast %4 : vector<128x1xf32> to vector<128x4xf32>
    %16 = arith.addf %14, %15 : vector<128x4xf32>
    %17 = vector.extract_strided_slice %16 {offsets = [0, 0], sizes = [32, 4], strides = [1, 1]} : vector<128x4xf32> to vector<32x4xf32>
    %18 = arith.negf %17 : vector<32x4xf32>
    %19 = math.exp %18 : vector<32x4xf32>
    %cst_16 = arith.constant 1.000000e+00 : f32
    %20 = vector.broadcast %cst_16 : f32 to vector<32x4xf32>
    %21 = arith.addf %20, %19 : vector<32x4xf32>
    %22 = arith.divf %20, %21 : vector<32x4xf32>
    %23 = vector.extract_strided_slice %16 {offsets = [32, 0], sizes = [32, 4], strides = [1, 1]} : vector<128x4xf32> to vector<32x4xf32>
    %24 = arith.negf %23 : vector<32x4xf32>
    %25 = math.exp %24 : vector<32x4xf32>
    %cst_17 = arith.constant 1.000000e+00 : f32
    %26 = vector.broadcast %cst_17 : f32 to vector<32x4xf32>
    %27 = arith.addf %26, %25 : vector<32x4xf32>
    %28 = arith.divf %26, %27 : vector<32x4xf32>
    %29 = vector.extract_strided_slice %16 {offsets = [64, 0], sizes = [32, 4], strides = [1, 1]} : vector<128x4xf32> to vector<32x4xf32>
    %30 = math.tanh %29 : vector<32x4xf32>
    %31 = vector.extract_strided_slice %16 {offsets = [96, 0], sizes = [32, 4], strides = [1, 1]} : vector<128x4xf32> to vector<32x4xf32>
    %32 = arith.negf %31 : vector<32x4xf32>
    %33 = math.exp %32 : vector<32x4xf32>
    %cst_18 = arith.constant 1.000000e+00 : f32
    %34 = vector.broadcast %cst_18 : f32 to vector<32x4xf32>
    %35 = arith.addf %34, %33 : vector<32x4xf32>
    %36 = arith.divf %34, %35 : vector<32x4xf32>
    %c0_19 = arith.constant 0 : index
    %c0_20 = arith.constant 0 : index
    %37 = vector.load %arg11[%c0_19, %c0_20] : memref<32x4xf32, #tpu.memory_space<vmem>>, vector<32x4xf32>
    %38 = arith.mulf %28, %37 : vector<32x4xf32>
    %39 = arith.mulf %22, %30 : vector<32x4xf32>
    %40 = arith.addf %38, %39 : vector<32x4xf32>
    %41 = math.tanh %40 : vector<32x4xf32>
    %42 = arith.mulf %36, %41 : vector<32x4xf32>
    %c0_21 = arith.constant 0 : index
    %c0_22 = arith.constant 0 : index
    %43 = vector.load %arg11[%c0_21, %c0_22] : memref<32x4xf32, #tpu.memory_space<vmem>>, vector<32x4xf32>
    tpu.vector_store %arg11[%c0_21, %c0_22], %40 {strides = array<i32>} : memref<32x4xf32, #tpu.memory_space<vmem>>, vector<32x4xf32>,
    %c0_23 = arith.constant 0 : index
    %c0_24 = arith.constant 0 : index
    %44 = vector.load %arg10[%c0_23, %c0_24] : memref<32x4xf32, #tpu.memory_space<vmem>>, vector<32x4xf32>
    tpu.vector_store %arg10[%c0_23, %c0_24], %42 {strides = array<i32>} : memref<32x4xf32, #tpu.memory_space<vmem>>, vector<32x4xf32>,
    %cst_25 = arith.constant dense<0.000000e+00> : vector<10x4xf32>
    %45 = tpu.matmul %6, %42, %cst_25 {dimension_numbers = #tpu.dot_dimension_numbers<[1], [0], [0], [1], [0, 0, 1, 1], [], []>} : vector<10x32xf32>, vector<32x4xf32>, vector<10x4xf32> -> vector<10x4xf32>
    %46 = vector.broadcast %7 : vector<10x1xf32> to vector<10x4xf32>
    %47 = arith.addf %45, %46 : vector<10x4xf32>
    %cst_26 = arith.constant 0.000000e+00 : f32
    %48 = vector.broadcast %cst_26 : f32 to vector<10x4xf32>
    %49 = arith.maximumf %47, %48 : vector<10x4xf32>
    %50 = vector.extract_strided_slice %49 {offsets = [0, 0], sizes = [8, 4], strides = [1, 1]} : vector<10x4xf32> to vector<8x4xf32>
    %51 = arith.index_cast %c0_i32_10 : i32 to index
    %c0_27 = arith.constant 0 : index
    %c0_28 = arith.constant 0 : index
    %52 = vector.load %arg8[%51, %c0_27, %c0_28] : memref<8x8x4xf32, #tpu.memory_space<vmem>>, vector<1x8x4xf32>
    %53 = vector.shape_cast %52 : vector<1x8x4xf32> to vector<8x4xf32>
    %54 = vector.shape_cast %50 : vector<8x4xf32> to vector<1x8x4xf32>
    tpu.vector_store %arg8[%51, %c0_27, %c0_28], %54 {strides = array<i32>} : memref<8x8x4xf32, #tpu.memory_space<vmem>>, vector<1x8x4xf32>,
    %55 = vector.extract_strided_slice %49 {offsets = [8, 0], sizes = [2, 4], strides = [1, 1]} : vector<10x4xf32> to vector<2x4xf32>
    %56 = arith.index_cast %c0_i32_10 : i32 to index
    %c0_29 = arith.constant 0 : index
    %c0_30 = arith.constant 0 : index
    %57 = vector.load %arg9[%56, %c0_29, %c0_30] : memref<8x2x4xf32, #tpu.memory_space<vmem>>, vector<1x2x4xf32>
    %58 = vector.shape_cast %57 : vector<1x2x4xf32> to vector<2x4xf32>
    %59 = vector.shape_cast %55 : vector<2x4xf32> to vector<1x2x4xf32>
    tpu.vector_store %arg9[%56, %c0_29, %c0_30], %59 {strides = array<i32>} : memref<8x2x4xf32, #tpu.memory_space<vmem>>, vector<1x2x4xf32>,
    %c1_i32 = arith.constant 1 : i32
    %60 = arith.index_cast %c1_i32 : i32 to index
    %c0_31 = arith.constant 0 : index
    %c0_32 = arith.constant 0 : index
    %61 = vector.load %arg2[%60, %c0_31, %c0_32] : memref<8x4x4xf32, #tpu.memory_space<vmem>>, vector<1x4x4xf32>
    %62 = vector.shape_cast %61 : vector<1x4x4xf32> to vector<4x4xf32>
    %cst_33 = arith.constant dense<0.000000e+00> : vector<128x4xf32>
    %63 = tpu.matmul %3, %62, %cst_33 {dimension_numbers = #tpu.dot_dimension_numbers<[1], [0], [0], [1], [0, 0, 1, 1], [], []>} : vector<128x4xf32>, vector<4x4xf32>, vector<128x4xf32> -> vector<128x4xf32>
    %c0_34 = arith.constant 0 : index
    %c0_35 = arith.constant 0 : index
    %64 = vector.load %arg10[%c0_34, %c0_35] : memref<32x4xf32, #tpu.memory_space<vmem>>, vector<32x4xf32>
    %cst_36 = arith.constant dense<0.000000e+00> : vector<128x4xf32>
    %65 = tpu.matmul %5, %64, %cst_36 {dimension_numbers = #tpu.dot_dimension_numbers<[1], [0], [0], [1], [0, 0, 1, 1], [], []>} : vector<128x32xf32>, vector<32x4xf32>, vector<128x4xf32> -> vector<128x4xf32>
    %66 = arith.addf %63, %65 : vector<128x4xf32>
    %67 = vector.broadcast %4 : vector<128x1xf32> to vector<128x4xf32>
    %68 = arith.addf %66, %67 : vector<128x4xf32>
    %69 = vector.extract_strided_slice %68 {offsets = [0, 0], sizes = [32, 4], strides = [1, 1]} : vector<128x4xf32> to vector<32x4xf32>
    %70 = arith.negf %69 : vector<32x4xf32>
    %71 = math.exp %70 : vector<32x4xf32>
    %cst_37 = arith.constant 1.000000e+00 : f32
    %72 = vector.broadcast %cst_37 : f32 to vector<32x4xf32>
    %73 = arith.addf %72, %71 : vector<32x4xf32>
    %74 = arith.divf %72, %73 : vector<32x4xf32>
    %75 = vector.extract_strided_slice %68 {offsets = [32, 0], sizes = [32, 4], strides = [1, 1]} : vector<128x4xf32> to vector<32x4xf32>
    %76 = arith.negf %75 : vector<32x4xf32>
    %77 = math.exp %76 : vector<32x4xf32>
    %cst_38 = arith.constant 1.000000e+00 : f32
    %78 = vector.broadcast %cst_38 : f32 to vector<32x4xf32>
    %79 = arith.addf %78, %77 : vector<32x4xf32>
    %80 = arith.divf %78, %79 : vector<32x4xf32>
    %81 = vector.extract_strided_slice %68 {offsets = [64, 0], sizes = [32, 4], strides = [1, 1]} : vector<128x4xf32> to vector<32x4xf32>
    %82 = math.tanh %81 : vector<32x4xf32>
    %83 = vector.extract_strided_slice %68 {offsets = [96, 0], sizes = [32, 4], strides = [1, 1]} : vector<128x4xf32> to vector<32x4xf32>
    %84 = arith.negf %83 : vector<32x4xf32>
    %85 = math.exp %84 : vector<32x4xf32>
    %cst_39 = arith.constant 1.000000e+00 : f32
    %86 = vector.broadcast %cst_39 : f32 to vector<32x4xf32>
    %87 = arith.addf %86, %85 : vector<32x4xf32>
    %88 = arith.divf %86, %87 : vector<32x4xf32>
    %c0_40 = arith.constant 0 : index
    %c0_41 = arith.constant 0 : index
    %89 = vector.load %arg11[%c0_40, %c0_41] : memref<32x4xf32, #tpu.memory_space<vmem>>, vector<32x4xf32>
    %90 = arith.mulf %80, %89 : vector<32x4xf32>
    %91 = arith.mulf %74, %82 : vector<32x4xf32>
    %92 = arith.addf %90, %91 : vector<32x4xf32>
    %93 = math.tanh %92 : vector<32x4xf32>
    %94 = arith.mulf %88, %93 : vector<32x4xf32>
    %c0_42 = arith.constant 0 : index
    %c0_43 = arith.constant 0 : index
    %95 = vector.load %arg11[%c0_42, %c0_43] : memref<32x4xf32, #tpu.memory_space<vmem>>, vector<32x4xf32>
    tpu.vector_store %arg11[%c0_42, %c0_43], %92 {strides = array<i32>} : memref<32x4xf32, #tpu.memory_space<vmem>>, vector<32x4xf32>,
    %c0_44 = arith.constant 0 : index
    %c0_45 = arith.constant 0 : index
    %96 = vector.load %arg10[%c0_44, %c0_45] : memref<32x4xf32, #tpu.memory_space<vmem>>, vector<32x4xf32>
    tpu.vector_store %arg10[%c0_44, %c0_45], %94 {strides = array<i32>} : memref<32x4xf32, #tpu.memory_space<vmem>>, vector<32x4xf32>,
    %cst_46 = arith.constant dense<0.000000e+00> : vector<10x4xf32>
    %97 = tpu.matmul %6, %94, %cst_46 {dimension_numbers = #tpu.dot_dimension_numbers<[1], [0], [0], [1], [0, 0, 1, 1], [], []>} : vector<10x32xf32>, vector<32x4xf32>, vector<10x4xf32> -> vector<10x4xf32>
    %98 = vector.broadcast %7 : vector<10x1xf32> to vector<10x4xf32>
    %99 = arith.addf %97, %98 : vector<10x4xf32>
    %cst_47 = arith.constant 0.000000e+00 : f32
    %100 = vector.broadcast %cst_47 : f32 to vector<10x4xf32>
    %101 = arith.maximumf %99, %100 : vector<10x4xf32>
    %102 = vector.extract_strided_slice %101 {offsets = [0, 0], sizes = [8, 4], strides = [1, 1]} : vector<10x4xf32> to vector<8x4xf32>
    %103 = arith.index_cast %c1_i32 : i32 to index
    %c0_48 = arith.constant 0 : index
    %c0_49 = arith.constant 0 : index
    %104 = vector.load %arg8[%103, %c0_48, %c0_49] : memref<8x8x4xf32, #tpu.memory_space<vmem>>, vector<1x8x4xf32>
    %105 = vector.shape_cast %104 : vector<1x8x4xf32> to vector<8x4xf32>
    %106 = vector.shape_cast %102 : vector<8x4xf32> to vector<1x8x4xf32>
    tpu.vector_store %arg8[%103, %c0_48, %c0_49], %106 {strides = array<i32>} : memref<8x8x4xf32, #tpu.memory_space<vmem>>, vector<1x8x4xf32>,
    %107 = vector.extract_strided_slice %101 {offsets = [8, 0], sizes = [2, 4], strides = [1, 1]} : vector<10x4xf32> to vector<2x4xf32>
    %108 = arith.index_cast %c1_i32 : i32 to index
    %c0_50 = arith.constant 0 : index
    %c0_51 = arith.constant 0 : index
    %109 = vector.load %arg9[%108, %c0_50, %c0_51] : memref<8x2x4xf32, #tpu.memory_space<vmem>>, vector<1x2x4xf32>
    %110 = vector.shape_cast %109 : vector<1x2x4xf32> to vector<2x4xf32>
    %111 = vector.shape_cast %107 : vector<2x4xf32> to vector<1x2x4xf32>
    tpu.vector_store %arg9[%108, %c0_50, %c0_51], %111 {strides = array<i32>} : memref<8x2x4xf32, #tpu.memory_space<vmem>>, vector<1x2x4xf32>,
    %c2_i32 = arith.constant 2 : i32
    %112 = arith.index_cast %c2_i32 : i32 to index
    %c0_52 = arith.constant 0 : index
    %c0_53 = arith.constant 0 : index
    %113 = vector.load %arg2[%112, %c0_52, %c0_53] : memref<8x4x4xf32, #tpu.memory_space<vmem>>, vector<1x4x4xf32>
    %114 = vector.shape_cast %113 : vector<1x4x4xf32> to vector<4x4xf32>
    %cst_54 = arith.constant dense<0.000000e+00> : vector<128x4xf32>
    %115 = tpu.matmul %3, %114, %cst_54 {dimension_numbers = #tpu.dot_dimension_numbers<[1], [0], [0], [1], [0, 0, 1, 1], [], []>} : vector<128x4xf32>, vector<4x4xf32>, vector<128x4xf32> -> vector<128x4xf32>
    %c0_55 = arith.constant 0 : index
    %c0_56 = arith.constant 0 : index
    %116 = vector.load %arg10[%c0_55, %c0_56] : memref<32x4xf32, #tpu.memory_space<vmem>>, vector<32x4xf32>
    %cst_57 = arith.constant dense<0.000000e+00> : vector<128x4xf32>
    %117 = tpu.matmul %5, %116, %cst_57 {dimension_numbers = #tpu.dot_dimension_numbers<[1], [0], [0], [1], [0, 0, 1, 1], [], []>} : vector<128x32xf32>, vector<32x4xf32>, vector<128x4xf32> -> vector<128x4xf32>
    %118 = arith.addf %115, %117 : vector<128x4xf32>
    %119 = vector.broadcast %4 : vector<128x1xf32> to vector<128x4xf32>
    %120 = arith.addf %118, %119 : vector<128x4xf32>
    %121 = vector.extract_strided_slice %120 {offsets = [0, 0], sizes = [32, 4], strides = [1, 1]} : vector<128x4xf32> to vector<32x4xf32>
    %122 = arith.negf %121 : vector<32x4xf32>
    %123 = math.exp %122 : vector<32x4xf32>
    %cst_58 = arith.constant 1.000000e+00 : f32
    %124 = vector.broadcast %cst_58 : f32 to vector<32x4xf32>
    %125 = arith.addf %124, %123 : vector<32x4xf32>
    %126 = arith.divf %124, %125 : vector<32x4xf32>
    %127 = vector.extract_strided_slice %120 {offsets = [32, 0], sizes = [32, 4], strides = [1, 1]} : vector<128x4xf32> to vector<32x4xf32>
    %128 = arith.negf %127 : vector<32x4xf32>
    %129 = math.exp %128 : vector<32x4xf32>
    %cst_59 = arith.constant 1.000000e+00 : f32
    %130 = vector.broadcast %cst_59 : f32 to vector<32x4xf32>
    %131 = arith.addf %130, %129 : vector<32x4xf32>
    %132 = arith.divf %130, %131 : vector<32x4xf32>
    %133 = vector.extract_strided_slice %120 {offsets = [64, 0], sizes = [32, 4], strides = [1, 1]} : vector<128x4xf32> to vector<32x4xf32>
    %134 = math.tanh %133 : vector<32x4xf32>
    %135 = vector.extract_strided_slice %120 {offsets = [96, 0], sizes = [32, 4], strides = [1, 1]} : vector<128x4xf32> to vector<32x4xf32>
    %136 = arith.negf %135 : vector<32x4xf32>
    %137 = math.exp %136 : vector<32x4xf32>
    %cst_60 = arith.constant 1.000000e+00 : f32
    %138 = vector.broadcast %cst_60 : f32 to vector<32x4xf32>
    %139 = arith.addf %138, %137 : vector<32x4xf32>
    %140 = arith.divf %138, %139 : vector<32x4xf32>
    %c0_61 = arith.constant 0 : index
    %c0_62 = arith.constant 0 : index
    %141 = vector.load %arg11[%c0_61, %c0_62] : memref<32x4xf32, #tpu.memory_space<vmem>>, vector<32x4xf32>
    %142 = arith.mulf %132, %141 : vector<32x4xf32>
    %143 = arith.mulf %126, %134 : vector<32x4xf32>
    %144 = arith.addf %142, %143 : vector<32x4xf32>
    %145 = math.tanh %144 : vector<32x4xf32>
    %146 = arith.mulf %140, %145 : vector<32x4xf32>
    %c0_63 = arith.constant 0 : index
    %c0_64 = arith.constant 0 : index
    %147 = vector.load %arg11[%c0_63, %c0_64] : memref<32x4xf32, #tpu.memory_space<vmem>>, vector<32x4xf32>
    tpu.vector_store %arg11[%c0_63, %c0_64], %144 {strides = array<i32>} : memref<32x4xf32, #tpu.memory_space<vmem>>, vector<32x4xf32>,
    %c0_65 = arith.constant 0 : index
    %c0_66 = arith.constant 0 : index
    %148 = vector.load %arg10[%c0_65, %c0_66] : memref<32x4xf32, #tpu.memory_space<vmem>>, vector<32x4xf32>
    tpu.vector_store %arg10[%c0_65, %c0_66], %146 {strides = array<i32>} : memref<32x4xf32, #tpu.memory_space<vmem>>, vector<32x4xf32>,
    %cst_67 = arith.constant dense<0.000000e+00> : vector<10x4xf32>
    %149 = tpu.matmul %6, %146, %cst_67 {dimension_numbers = #tpu.dot_dimension_numbers<[1], [0], [0], [1], [0, 0, 1, 1], [], []>} : vector<10x32xf32>, vector<32x4xf32>, vector<10x4xf32> -> vector<10x4xf32>
    %150 = vector.broadcast %7 : vector<10x1xf32> to vector<10x4xf32>
    %151 = arith.addf %149, %150 : vector<10x4xf32>
    %cst_68 = arith.constant 0.000000e+00 : f32
    %152 = vector.broadcast %cst_68 : f32 to vector<10x4xf32>
    %153 = arith.maximumf %151, %152 : vector<10x4xf32>
    %154 = vector.extract_strided_slice %153 {offsets = [0, 0], sizes = [8, 4], strides = [1, 1]} : vector<10x4xf32> to vector<8x4xf32>
    %155 = arith.index_cast %c2_i32 : i32 to index
    %c0_69 = arith.constant 0 : index
    %c0_70 = arith.constant 0 : index
    %156 = vector.load %arg8[%155, %c0_69, %c0_70] : memref<8x8x4xf32, #tpu.memory_space<vmem>>, vector<1x8x4xf32>
    %157 = vector.shape_cast %156 : vector<1x8x4xf32> to vector<8x4xf32>
    %158 = vector.shape_cast %154 : vector<8x4xf32> to vector<1x8x4xf32>
    tpu.vector_store %arg8[%155, %c0_69, %c0_70], %158 {strides = array<i32>} : memref<8x8x4xf32, #tpu.memory_space<vmem>>, vector<1x8x4xf32>,
    %159 = vector.extract_strided_slice %153 {offsets = [8, 0], sizes = [2, 4], strides = [1, 1]} : vector<10x4xf32> to vector<2x4xf32>
    %160 = arith.index_cast %c2_i32 : i32 to index
    %c0_71 = arith.constant 0 : index
    %c0_72 = arith.constant 0 : index
    %161 = vector.load %arg9[%160, %c0_71, %c0_72] : memref<8x2x4xf32, #tpu.memory_space<vmem>>, vector<1x2x4xf32>
    %162 = vector.shape_cast %161 : vector<1x2x4xf32> to vector<2x4xf32>
    %163 = vector.shape_cast %159 : vector<2x4xf32> to vector<1x2x4xf32>
    tpu.vector_store %arg9[%160, %c0_71, %c0_72], %163 {strides = array<i32>} : memref<8x2x4xf32, #tpu.memory_space<vmem>>, vector<1x2x4xf32>,
    %c3_i32 = arith.constant 3 : i32
    %164 = arith.index_cast %c3_i32 : i32 to index
    %c0_73 = arith.constant 0 : index
    %c0_74 = arith.constant 0 : index
    %165 = vector.load %arg2[%164, %c0_73, %c0_74] : memref<8x4x4xf32, #tpu.memory_space<vmem>>, vector<1x4x4xf32>
    %166 = vector.shape_cast %165 : vector<1x4x4xf32> to vector<4x4xf32>
    %cst_75 = arith.constant dense<0.000000e+00> : vector<128x4xf32>
    %167 = tpu.matmul %3, %166, %cst_75 {dimension_numbers = #tpu.dot_dimension_numbers<[1], [0], [0], [1], [0, 0, 1, 1], [], []>} : vector<128x4xf32>, vector<4x4xf32>, vector<128x4xf32> -> vector<128x4xf32>
    %c0_76 = arith.constant 0 : index
    %c0_77 = arith.constant 0 : index
    %168 = vector.load %arg10[%c0_76, %c0_77] : memref<32x4xf32, #tpu.memory_space<vmem>>, vector<32x4xf32>
    %cst_78 = arith.constant dense<0.000000e+00> : vector<128x4xf32>
    %169 = tpu.matmul %5, %168, %cst_78 {dimension_numbers = #tpu.dot_dimension_numbers<[1], [0], [0], [1], [0, 0, 1, 1], [], []>} : vector<128x32xf32>, vector<32x4xf32>, vector<128x4xf32> -> vector<128x4xf32>
    %170 = arith.addf %167, %169 : vector<128x4xf32>
    %171 = vector.broadcast %4 : vector<128x1xf32> to vector<128x4xf32>
    %172 = arith.addf %170, %171 : vector<128x4xf32>
    %173 = vector.extract_strided_slice %172 {offsets = [0, 0], sizes = [32, 4], strides = [1, 1]} : vector<128x4xf32> to vector<32x4xf32>
    %174 = arith.negf %173 : vector<32x4xf32>
    %175 = math.exp %174 : vector<32x4xf32>
    %cst_79 = arith.constant 1.000000e+00 : f32
    %176 = vector.broadcast %cst_79 : f32 to vector<32x4xf32>
    %177 = arith.addf %176, %175 : vector<32x4xf32>
    %178 = arith.divf %176, %177 : vector<32x4xf32>
    %179 = vector.extract_strided_slice %172 {offsets = [32, 0], sizes = [32, 4], strides = [1, 1]} : vector<128x4xf32> to vector<32x4xf32>
    %180 = arith.negf %179 : vector<32x4xf32>
    %181 = math.exp %180 : vector<32x4xf32>
    %cst_80 = arith.constant 1.000000e+00 : f32
    %182 = vector.broadcast %cst_80 : f32 to vector<32x4xf32>
    %183 = arith.addf %182, %181 : vector<32x4xf32>
    %184 = arith.divf %182, %183 : vector<32x4xf32>
    %185 = vector.extract_strided_slice %172 {offsets = [64, 0], sizes = [32, 4], strides = [1, 1]} : vector<128x4xf32> to vector<32x4xf32>
    %186 = math.tanh %185 : vector<32x4xf32>
    %187 = vector.extract_strided_slice %172 {offsets = [96, 0], sizes = [32, 4], strides = [1, 1]} : vector<128x4xf32> to vector<32x4xf32>
    %188 = arith.negf %187 : vector<32x4xf32>
    %189 = math.exp %188 : vector<32x4xf32>
    %cst_81 = arith.constant 1.000000e+00 : f32
    %190 = vector.broadcast %cst_81 : f32 to vector<32x4xf32>
    %191 = arith.addf %190, %189 : vector<32x4xf32>
    %192 = arith.divf %190, %191 : vector<32x4xf32>
    %c0_82 = arith.constant 0 : index
    %c0_83 = arith.constant 0 : index
    %193 = vector.load %arg11[%c0_82, %c0_83] : memref<32x4xf32, #tpu.memory_space<vmem>>, vector<32x4xf32>
    %194 = arith.mulf %184, %193 : vector<32x4xf32>
    %195 = arith.mulf %178, %186 : vector<32x4xf32>
    %196 = arith.addf %194, %195 : vector<32x4xf32>
    %197 = math.tanh %196 : vector<32x4xf32>
    %198 = arith.mulf %192, %197 : vector<32x4xf32>
    %c0_84 = arith.constant 0 : index
    %c0_85 = arith.constant 0 : index
    %199 = vector.load %arg11[%c0_84, %c0_85] : memref<32x4xf32, #tpu.memory_space<vmem>>, vector<32x4xf32>
    tpu.vector_store %arg11[%c0_84, %c0_85], %196 {strides = array<i32>} : memref<32x4xf32, #tpu.memory_space<vmem>>, vector<32x4xf32>,
    %c0_86 = arith.constant 0 : index
    %c0_87 = arith.constant 0 : index
    %200 = vector.load %arg10[%c0_86, %c0_87] : memref<32x4xf32, #tpu.memory_space<vmem>>, vector<32x4xf32>
    tpu.vector_store %arg10[%c0_86, %c0_87], %198 {strides = array<i32>} : memref<32x4xf32, #tpu.memory_space<vmem>>, vector<32x4xf32>,
    %cst_88 = arith.constant dense<0.000000e+00> : vector<10x4xf32>
    %201 = tpu.matmul %6, %198, %cst_88 {dimension_numbers = #tpu.dot_dimension_numbers<[1], [0], [0], [1], [0, 0, 1, 1], [], []>} : vector<10x32xf32>, vector<32x4xf32>, vector<10x4xf32> -> vector<10x4xf32>
    %202 = vector.broadcast %7 : vector<10x1xf32> to vector<10x4xf32>
    %203 = arith.addf %201, %202 : vector<10x4xf32>
    %cst_89 = arith.constant 0.000000e+00 : f32
    %204 = vector.broadcast %cst_89 : f32 to vector<10x4xf32>
    %205 = arith.maximumf %203, %204 : vector<10x4xf32>
    %206 = vector.extract_strided_slice %205 {offsets = [0, 0], sizes = [8, 4], strides = [1, 1]} : vector<10x4xf32> to vector<8x4xf32>
    %207 = arith.index_cast %c3_i32 : i32 to index
    %c0_90 = arith.constant 0 : index
    %c0_91 = arith.constant 0 : index
    %208 = vector.load %arg8[%207, %c0_90, %c0_91] : memref<8x8x4xf32, #tpu.memory_space<vmem>>, vector<1x8x4xf32>
    %209 = vector.shape_cast %208 : vector<1x8x4xf32> to vector<8x4xf32>
    %210 = vector.shape_cast %206 : vector<8x4xf32> to vector<1x8x4xf32>
    tpu.vector_store %arg8[%207, %c0_90, %c0_91], %210 {strides = array<i32>} : memref<8x8x4xf32, #tpu.memory_space<vmem>>, vector<1x8x4xf32>,
    %211 = vector.extract_strided_slice %205 {offsets = [8, 0], sizes = [2, 4], strides = [1, 1]} : vector<10x4xf32> to vector<2x4xf32>
    %212 = arith.index_cast %c3_i32 : i32 to index
    %c0_92 = arith.constant 0 : index
    %c0_93 = arith.constant 0 : index
    %213 = vector.load %arg9[%212, %c0_92, %c0_93] : memref<8x2x4xf32, #tpu.memory_space<vmem>>, vector<1x2x4xf32>
    %214 = vector.shape_cast %213 : vector<1x2x4xf32> to vector<2x4xf32>
    %215 = vector.shape_cast %211 : vector<2x4xf32> to vector<1x2x4xf32>
    tpu.vector_store %arg9[%212, %c0_92, %c0_93], %215 {strides = array<i32>} : memref<8x2x4xf32, #tpu.memory_space<vmem>>, vector<1x2x4xf32>,
    %c4_i32 = arith.constant 4 : i32
    %216 = arith.index_cast %c4_i32 : i32 to index
    %c0_94 = arith.constant 0 : index
    %c0_95 = arith.constant 0 : index
    %217 = vector.load %arg2[%216, %c0_94, %c0_95] : memref<8x4x4xf32, #tpu.memory_space<vmem>>, vector<1x4x4xf32>
    %218 = vector.shape_cast %217 : vector<1x4x4xf32> to vector<4x4xf32>
    %cst_96 = arith.constant dense<0.000000e+00> : vector<128x4xf32>
    %219 = tpu.matmul %3, %218, %cst_96 {dimension_numbers = #tpu.dot_dimension_numbers<[1], [0], [0], [1], [0, 0, 1, 1], [], []>} : vector<128x4xf32>, vector<4x4xf32>, vector<128x4xf32> -> vector<128x4xf32>
    %c0_97 = arith.constant 0 : index
    %c0_98 = arith.constant 0 : index
    %220 = vector.load %arg10[%c0_97, %c0_98] : memref<32x4xf32, #tpu.memory_space<vmem>>, vector<32x4xf32>
    %cst_99 = arith.constant dense<0.000000e+00> : vector<128x4xf32>
    %221 = tpu.matmul %5, %220, %cst_99 {dimension_numbers = #tpu.dot_dimension_numbers<[1], [0], [0], [1], [0, 0, 1, 1], [], []>} : vector<128x32xf32>, vector<32x4xf32>, vector<128x4xf32> -> vector<128x4xf32>
    %222 = arith.addf %219, %221 : vector<128x4xf32>
    %223 = vector.broadcast %4 : vector<128x1xf32> to vector<128x4xf32>
    %224 = arith.addf %222, %223 : vector<128x4xf32>
    %225 = vector.extract_strided_slice %224 {offsets = [0, 0], sizes = [32, 4], strides = [1, 1]} : vector<128x4xf32> to vector<32x4xf32>
    %226 = arith.negf %225 : vector<32x4xf32>
    %227 = math.exp %226 : vector<32x4xf32>
    %cst_100 = arith.constant 1.000000e+00 : f32
    %228 = vector.broadcast %cst_100 : f32 to vector<32x4xf32>
    %229 = arith.addf %228, %227 : vector<32x4xf32>
    %230 = arith.divf %228, %229 : vector<32x4xf32>
    %231 = vector.extract_strided_slice %224 {offsets = [32, 0], sizes = [32, 4], strides = [1, 1]} : vector<128x4xf32> to vector<32x4xf32>
    %232 = arith.negf %231 : vector<32x4xf32>
    %233 = math.exp %232 : vector<32x4xf32>
    %cst_101 = arith.constant 1.000000e+00 : f32
    %234 = vector.broadcast %cst_101 : f32 to vector<32x4xf32>
    %235 = arith.addf %234, %233 : vector<32x4xf32>
    %236 = arith.divf %234, %235 : vector<32x4xf32>
    %237 = vector.extract_strided_slice %224 {offsets = [64, 0], sizes = [32, 4], strides = [1, 1]} : vector<128x4xf32> to vector<32x4xf32>
    %238 = math.tanh %237 : vector<32x4xf32>
    %239 = vector.extract_strided_slice %224 {offsets = [96, 0], sizes = [32, 4], strides = [1, 1]} : vector<128x4xf32> to vector<32x4xf32>
    %240 = arith.negf %239 : vector<32x4xf32>
    %241 = math.exp %240 : vector<32x4xf32>
    %cst_102 = arith.constant 1.000000e+00 : f32
    %242 = vector.broadcast %cst_102 : f32 to vector<32x4xf32>
    %243 = arith.addf %242, %241 : vector<32x4xf32>
    %244 = arith.divf %242, %243 : vector<32x4xf32>
    %c0_103 = arith.constant 0 : index
    %c0_104 = arith.constant 0 : index
    %245 = vector.load %arg11[%c0_103, %c0_104] : memref<32x4xf32, #tpu.memory_space<vmem>>, vector<32x4xf32>
    %246 = arith.mulf %236, %245 : vector<32x4xf32>
    %247 = arith.mulf %230, %238 : vector<32x4xf32>
    %248 = arith.addf %246, %247 : vector<32x4xf32>
    %249 = math.tanh %248 : vector<32x4xf32>
    %250 = arith.mulf %244, %249 : vector<32x4xf32>
    %c0_105 = arith.constant 0 : index
    %c0_106 = arith.constant 0 : index
    %251 = vector.load %arg11[%c0_105, %c0_106] : memref<32x4xf32, #tpu.memory_space<vmem>>, vector<32x4xf32>
    tpu.vector_store %arg11[%c0_105, %c0_106], %248 {strides = array<i32>} : memref<32x4xf32, #tpu.memory_space<vmem>>, vector<32x4xf32>,
    %c0_107 = arith.constant 0 : index
    %c0_108 = arith.constant 0 : index
    %252 = vector.load %arg10[%c0_107, %c0_108] : memref<32x4xf32, #tpu.memory_space<vmem>>, vector<32x4xf32>
    tpu.vector_store %arg10[%c0_107, %c0_108], %250 {strides = array<i32>} : memref<32x4xf32, #tpu.memory_space<vmem>>, vector<32x4xf32>,
    %cst_109 = arith.constant dense<0.000000e+00> : vector<10x4xf32>
    %253 = tpu.matmul %6, %250, %cst_109 {dimension_numbers = #tpu.dot_dimension_numbers<[1], [0], [0], [1], [0, 0, 1, 1], [], []>} : vector<10x32xf32>, vector<32x4xf32>, vector<10x4xf32> -> vector<10x4xf32>
    %254 = vector.broadcast %7 : vector<10x1xf32> to vector<10x4xf32>
    %255 = arith.addf %253, %254 : vector<10x4xf32>
    %cst_110 = arith.constant 0.000000e+00 : f32
    %256 = vector.broadcast %cst_110 : f32 to vector<10x4xf32>
    %257 = arith.maximumf %255, %256 : vector<10x4xf32>
    %258 = vector.extract_strided_slice %257 {offsets = [0, 0], sizes = [8, 4], strides = [1, 1]} : vector<10x4xf32> to vector<8x4xf32>
    %259 = arith.index_cast %c4_i32 : i32 to index
    %c0_111 = arith.constant 0 : index
    %c0_112 = arith.constant 0 : index
    %260 = vector.load %arg8[%259, %c0_111, %c0_112] : memref<8x8x4xf32, #tpu.memory_space<vmem>>, vector<1x8x4xf32>
    %261 = vector.shape_cast %260 : vector<1x8x4xf32> to vector<8x4xf32>
    %262 = vector.shape_cast %258 : vector<8x4xf32> to vector<1x8x4xf32>
    tpu.vector_store %arg8[%259, %c0_111, %c0_112], %262 {strides = array<i32>} : memref<8x8x4xf32, #tpu.memory_space<vmem>>, vector<1x8x4xf32>,
    %263 = vector.extract_strided_slice %257 {offsets = [8, 0], sizes = [2, 4], strides = [1, 1]} : vector<10x4xf32> to vector<2x4xf32>
    %264 = arith.index_cast %c4_i32 : i32 to index
    %c0_113 = arith.constant 0 : index
    %c0_114 = arith.constant 0 : index
    %265 = vector.load %arg9[%264, %c0_113, %c0_114] : memref<8x2x4xf32, #tpu.memory_space<vmem>>, vector<1x2x4xf32>
    %266 = vector.shape_cast %265 : vector<1x2x4xf32> to vector<2x4xf32>
    %267 = vector.shape_cast %263 : vector<2x4xf32> to vector<1x2x4xf32>
    tpu.vector_store %arg9[%264, %c0_113, %c0_114], %267 {strides = array<i32>} : memref<8x2x4xf32, #tpu.memory_space<vmem>>, vector<1x2x4xf32>,
    %c5_i32 = arith.constant 5 : i32
    %268 = arith.index_cast %c5_i32 : i32 to index
    %c0_115 = arith.constant 0 : index
    %c0_116 = arith.constant 0 : index
    %269 = vector.load %arg2[%268, %c0_115, %c0_116] : memref<8x4x4xf32, #tpu.memory_space<vmem>>, vector<1x4x4xf32>
    %270 = vector.shape_cast %269 : vector<1x4x4xf32> to vector<4x4xf32>
    %cst_117 = arith.constant dense<0.000000e+00> : vector<128x4xf32>
    %271 = tpu.matmul %3, %270, %cst_117 {dimension_numbers = #tpu.dot_dimension_numbers<[1], [0], [0], [1], [0, 0, 1, 1], [], []>} : vector<128x4xf32>, vector<4x4xf32>, vector<128x4xf32> -> vector<128x4xf32>
    %c0_118 = arith.constant 0 : index
    %c0_119 = arith.constant 0 : index
    %272 = vector.load %arg10[%c0_118, %c0_119] : memref<32x4xf32, #tpu.memory_space<vmem>>, vector<32x4xf32>
    %cst_120 = arith.constant dense<0.000000e+00> : vector<128x4xf32>
    %273 = tpu.matmul %5, %272, %cst_120 {dimension_numbers = #tpu.dot_dimension_numbers<[1], [0], [0], [1], [0, 0, 1, 1], [], []>} : vector<128x32xf32>, vector<32x4xf32>, vector<128x4xf32> -> vector<128x4xf32>
    %274 = arith.addf %271, %273 : vector<128x4xf32>
    %275 = vector.broadcast %4 : vector<128x1xf32> to vector<128x4xf32>
    %276 = arith.addf %274, %275 : vector<128x4xf32>
    %277 = vector.extract_strided_slice %276 {offsets = [0, 0], sizes = [32, 4], strides = [1, 1]} : vector<128x4xf32> to vector<32x4xf32>
    %278 = arith.negf %277 : vector<32x4xf32>
    %279 = math.exp %278 : vector<32x4xf32>
    %cst_121 = arith.constant 1.000000e+00 : f32
    %280 = vector.broadcast %cst_121 : f32 to vector<32x4xf32>
    %281 = arith.addf %280, %279 : vector<32x4xf32>
    %282 = arith.divf %280, %281 : vector<32x4xf32>
    %283 = vector.extract_strided_slice %276 {offsets = [32, 0], sizes = [32, 4], strides = [1, 1]} : vector<128x4xf32> to vector<32x4xf32>
    %284 = arith.negf %283 : vector<32x4xf32>
    %285 = math.exp %284 : vector<32x4xf32>
    %cst_122 = arith.constant 1.000000e+00 : f32
    %286 = vector.broadcast %cst_122 : f32 to vector<32x4xf32>
    %287 = arith.addf %286, %285 : vector<32x4xf32>
    %288 = arith.divf %286, %287 : vector<32x4xf32>
    %289 = vector.extract_strided_slice %276 {offsets = [64, 0], sizes = [32, 4], strides = [1, 1]} : vector<128x4xf32> to vector<32x4xf32>
    %290 = math.tanh %289 : vector<32x4xf32>
    %291 = vector.extract_strided_slice %276 {offsets = [96, 0], sizes = [32, 4], strides = [1, 1]} : vector<128x4xf32> to vector<32x4xf32>
    %292 = arith.negf %291 : vector<32x4xf32>
    %293 = math.exp %292 : vector<32x4xf32>
    %cst_123 = arith.constant 1.000000e+00 : f32
    %294 = vector.broadcast %cst_123 : f32 to vector<32x4xf32>
    %295 = arith.addf %294, %293 : vector<32x4xf32>
    %296 = arith.divf %294, %295 : vector<32x4xf32>
    %c0_124 = arith.constant 0 : index
    %c0_125 = arith.constant 0 : index
    %297 = vector.load %arg11[%c0_124, %c0_125] : memref<32x4xf32, #tpu.memory_space<vmem>>, vector<32x4xf32>
    %298 = arith.mulf %288, %297 : vector<32x4xf32>
    %299 = arith.mulf %282, %290 : vector<32x4xf32>
    %300 = arith.addf %298, %299 : vector<32x4xf32>
    %301 = math.tanh %300 : vector<32x4xf32>
    %302 = arith.mulf %296, %301 : vector<32x4xf32>
    %c0_126 = arith.constant 0 : index
    %c0_127 = arith.constant 0 : index
    %303 = vector.load %arg11[%c0_126, %c0_127] : memref<32x4xf32, #tpu.memory_space<vmem>>, vector<32x4xf32>
    tpu.vector_store %arg11[%c0_126, %c0_127], %300 {strides = array<i32>} : memref<32x4xf32, #tpu.memory_space<vmem>>, vector<32x4xf32>,
    %c0_128 = arith.constant 0 : index
    %c0_129 = arith.constant 0 : index
    %304 = vector.load %arg10[%c0_128, %c0_129] : memref<32x4xf32, #tpu.memory_space<vmem>>, vector<32x4xf32>
    tpu.vector_store %arg10[%c0_128, %c0_129], %302 {strides = array<i32>} : memref<32x4xf32, #tpu.memory_space<vmem>>, vector<32x4xf32>,
    %cst_130 = arith.constant dense<0.000000e+00> : vector<10x4xf32>
    %305 = tpu.matmul %6, %302, %cst_130 {dimension_numbers = #tpu.dot_dimension_numbers<[1], [0], [0], [1], [0, 0, 1, 1], [], []>} : vector<10x32xf32>, vector<32x4xf32>, vector<10x4xf32> -> vector<10x4xf32>
    %306 = vector.broadcast %7 : vector<10x1xf32> to vector<10x4xf32>
    %307 = arith.addf %305, %306 : vector<10x4xf32>
    %cst_131 = arith.constant 0.000000e+00 : f32
    %308 = vector.broadcast %cst_131 : f32 to vector<10x4xf32>
    %309 = arith.maximumf %307, %308 : vector<10x4xf32>
    %310 = vector.extract_strided_slice %309 {offsets = [0, 0], sizes = [8, 4], strides = [1, 1]} : vector<10x4xf32> to vector<8x4xf32>
    %311 = arith.index_cast %c5_i32 : i32 to index
    %c0_132 = arith.constant 0 : index
    %c0_133 = arith.constant 0 : index
    %312 = vector.load %arg8[%311, %c0_132, %c0_133] : memref<8x8x4xf32, #tpu.memory_space<vmem>>, vector<1x8x4xf32>
    %313 = vector.shape_cast %312 : vector<1x8x4xf32> to vector<8x4xf32>
    %314 = vector.shape_cast %310 : vector<8x4xf32> to vector<1x8x4xf32>
    tpu.vector_store %arg8[%311, %c0_132, %c0_133], %314 {strides = array<i32>} : memref<8x8x4xf32, #tpu.memory_space<vmem>>, vector<1x8x4xf32>,
    %315 = vector.extract_strided_slice %309 {offsets = [8, 0], sizes = [2, 4], strides = [1, 1]} : vector<10x4xf32> to vector<2x4xf32>
    %316 = arith.index_cast %c5_i32 : i32 to index
    %c0_134 = arith.constant 0 : index
    %c0_135 = arith.constant 0 : index
    %317 = vector.load %arg9[%316, %c0_134, %c0_135] : memref<8x2x4xf32, #tpu.memory_space<vmem>>, vector<1x2x4xf32>
    %318 = vector.shape_cast %317 : vector<1x2x4xf32> to vector<2x4xf32>
    %319 = vector.shape_cast %315 : vector<2x4xf32> to vector<1x2x4xf32>
    tpu.vector_store %arg9[%316, %c0_134, %c0_135], %319 {strides = array<i32>} : memref<8x2x4xf32, #tpu.memory_space<vmem>>, vector<1x2x4xf32>,
    %c6_i32 = arith.constant 6 : i32
    %320 = arith.index_cast %c6_i32 : i32 to index
    %c0_136 = arith.constant 0 : index
    %c0_137 = arith.constant 0 : index
    %321 = vector.load %arg2[%320, %c0_136, %c0_137] : memref<8x4x4xf32, #tpu.memory_space<vmem>>, vector<1x4x4xf32>
    %322 = vector.shape_cast %321 : vector<1x4x4xf32> to vector<4x4xf32>
    %cst_138 = arith.constant dense<0.000000e+00> : vector<128x4xf32>
    %323 = tpu.matmul %3, %322, %cst_138 {dimension_numbers = #tpu.dot_dimension_numbers<[1], [0], [0], [1], [0, 0, 1, 1], [], []>} : vector<128x4xf32>, vector<4x4xf32>, vector<128x4xf32> -> vector<128x4xf32>
    %c0_139 = arith.constant 0 : index
    %c0_140 = arith.constant 0 : index
    %324 = vector.load %arg10[%c0_139, %c0_140] : memref<32x4xf32, #tpu.memory_space<vmem>>, vector<32x4xf32>
    %cst_141 = arith.constant dense<0.000000e+00> : vector<128x4xf32>
    %325 = tpu.matmul %5, %324, %cst_141 {dimension_numbers = #tpu.dot_dimension_numbers<[1], [0], [0], [1], [0, 0, 1, 1], [], []>} : vector<128x32xf32>, vector<32x4xf32>, vector<128x4xf32> -> vector<128x4xf32>
    %326 = arith.addf %323, %325 : vector<128x4xf32>
    %327 = vector.broadcast %4 : vector<128x1xf32> to vector<128x4xf32>
    %328 = arith.addf %326, %327 : vector<128x4xf32>
    %329 = vector.extract_strided_slice %328 {offsets = [0, 0], sizes = [32, 4], strides = [1, 1]} : vector<128x4xf32> to vector<32x4xf32>
    %330 = arith.negf %329 : vector<32x4xf32>
    %331 = math.exp %330 : vector<32x4xf32>
    %cst_142 = arith.constant 1.000000e+00 : f32
    %332 = vector.broadcast %cst_142 : f32 to vector<32x4xf32>
    %333 = arith.addf %332, %331 : vector<32x4xf32>
    %334 = arith.divf %332, %333 : vector<32x4xf32>
    %335 = vector.extract_strided_slice %328 {offsets = [32, 0], sizes = [32, 4], strides = [1, 1]} : vector<128x4xf32> to vector<32x4xf32>
    %336 = arith.negf %335 : vector<32x4xf32>
    %337 = math.exp %336 : vector<32x4xf32>
    %cst_143 = arith.constant 1.000000e+00 : f32
    %338 = vector.broadcast %cst_143 : f32 to vector<32x4xf32>
    %339 = arith.addf %338, %337 : vector<32x4xf32>
    %340 = arith.divf %338, %339 : vector<32x4xf32>
    %341 = vector.extract_strided_slice %328 {offsets = [64, 0], sizes = [32, 4], strides = [1, 1]} : vector<128x4xf32> to vector<32x4xf32>
    %342 = math.tanh %341 : vector<32x4xf32>
    %343 = vector.extract_strided_slice %328 {offsets = [96, 0], sizes = [32, 4], strides = [1, 1]} : vector<128x4xf32> to vector<32x4xf32>
    %344 = arith.negf %343 : vector<32x4xf32>
    %345 = math.exp %344 : vector<32x4xf32>
    %cst_144 = arith.constant 1.000000e+00 : f32
    %346 = vector.broadcast %cst_144 : f32 to vector<32x4xf32>
    %347 = arith.addf %346, %345 : vector<32x4xf32>
    %348 = arith.divf %346, %347 : vector<32x4xf32>
    %c0_145 = arith.constant 0 : index
    %c0_146 = arith.constant 0 : index
    %349 = vector.load %arg11[%c0_145, %c0_146] : memref<32x4xf32, #tpu.memory_space<vmem>>, vector<32x4xf32>
    %350 = arith.mulf %340, %349 : vector<32x4xf32>
    %351 = arith.mulf %334, %342 : vector<32x4xf32>
    %352 = arith.addf %350, %351 : vector<32x4xf32>
    %353 = math.tanh %352 : vector<32x4xf32>
    %354 = arith.mulf %348, %353 : vector<32x4xf32>
    %c0_147 = arith.constant 0 : index
    %c0_148 = arith.constant 0 : index
    %355 = vector.load %arg11[%c0_147, %c0_148] : memref<32x4xf32, #tpu.memory_space<vmem>>, vector<32x4xf32>
    tpu.vector_store %arg11[%c0_147, %c0_148], %352 {strides = array<i32>} : memref<32x4xf32, #tpu.memory_space<vmem>>, vector<32x4xf32>,
    %c0_149 = arith.constant 0 : index
    %c0_150 = arith.constant 0 : index
    %356 = vector.load %arg10[%c0_149, %c0_150] : memref<32x4xf32, #tpu.memory_space<vmem>>, vector<32x4xf32>
    tpu.vector_store %arg10[%c0_149, %c0_150], %354 {strides = array<i32>} : memref<32x4xf32, #tpu.memory_space<vmem>>, vector<32x4xf32>,
    %cst_151 = arith.constant dense<0.000000e+00> : vector<10x4xf32>
    %357 = tpu.matmul %6, %354, %cst_151 {dimension_numbers = #tpu.dot_dimension_numbers<[1], [0], [0], [1], [0, 0, 1, 1], [], []>} : vector<10x32xf32>, vector<32x4xf32>, vector<10x4xf32> -> vector<10x4xf32>
    %358 = vector.broadcast %7 : vector<10x1xf32> to vector<10x4xf32>
    %359 = arith.addf %357, %358 : vector<10x4xf32>
    %cst_152 = arith.constant 0.000000e+00 : f32
    %360 = vector.broadcast %cst_152 : f32 to vector<10x4xf32>
    %361 = arith.maximumf %359, %360 : vector<10x4xf32>
    %362 = vector.extract_strided_slice %361 {offsets = [0, 0], sizes = [8, 4], strides = [1, 1]} : vector<10x4xf32> to vector<8x4xf32>
    %363 = arith.index_cast %c6_i32 : i32 to index
    %c0_153 = arith.constant 0 : index
    %c0_154 = arith.constant 0 : index
    %364 = vector.load %arg8[%363, %c0_153, %c0_154] : memref<8x8x4xf32, #tpu.memory_space<vmem>>, vector<1x8x4xf32>
    %365 = vector.shape_cast %364 : vector<1x8x4xf32> to vector<8x4xf32>
    %366 = vector.shape_cast %362 : vector<8x4xf32> to vector<1x8x4xf32>
    tpu.vector_store %arg8[%363, %c0_153, %c0_154], %366 {strides = array<i32>} : memref<8x8x4xf32, #tpu.memory_space<vmem>>, vector<1x8x4xf32>,
    %367 = vector.extract_strided_slice %361 {offsets = [8, 0], sizes = [2, 4], strides = [1, 1]} : vector<10x4xf32> to vector<2x4xf32>
    %368 = arith.index_cast %c6_i32 : i32 to index
    %c0_155 = arith.constant 0 : index
    %c0_156 = arith.constant 0 : index
    %369 = vector.load %arg9[%368, %c0_155, %c0_156] : memref<8x2x4xf32, #tpu.memory_space<vmem>>, vector<1x2x4xf32>
    %370 = vector.shape_cast %369 : vector<1x2x4xf32> to vector<2x4xf32>
    %371 = vector.shape_cast %367 : vector<2x4xf32> to vector<1x2x4xf32>
    tpu.vector_store %arg9[%368, %c0_155, %c0_156], %371 {strides = array<i32>} : memref<8x2x4xf32, #tpu.memory_space<vmem>>, vector<1x2x4xf32>,
    %c7_i32 = arith.constant 7 : i32
    %372 = arith.index_cast %c7_i32 : i32 to index
    %c0_157 = arith.constant 0 : index
    %c0_158 = arith.constant 0 : index
    %373 = vector.load %arg2[%372, %c0_157, %c0_158] : memref<8x4x4xf32, #tpu.memory_space<vmem>>, vector<1x4x4xf32>
    %374 = vector.shape_cast %373 : vector<1x4x4xf32> to vector<4x4xf32>
    %cst_159 = arith.constant dense<0.000000e+00> : vector<128x4xf32>
    %375 = tpu.matmul %3, %374, %cst_159 {dimension_numbers = #tpu.dot_dimension_numbers<[1], [0], [0], [1], [0, 0, 1, 1], [], []>} : vector<128x4xf32>, vector<4x4xf32>, vector<128x4xf32> -> vector<128x4xf32>
    %c0_160 = arith.constant 0 : index
    %c0_161 = arith.constant 0 : index
    %376 = vector.load %arg10[%c0_160, %c0_161] : memref<32x4xf32, #tpu.memory_space<vmem>>, vector<32x4xf32>
    %cst_162 = arith.constant dense<0.000000e+00> : vector<128x4xf32>
    %377 = tpu.matmul %5, %376, %cst_162 {dimension_numbers = #tpu.dot_dimension_numbers<[1], [0], [0], [1], [0, 0, 1, 1], [], []>} : vector<128x32xf32>, vector<32x4xf32>, vector<128x4xf32> -> vector<128x4xf32>
    %378 = arith.addf %375, %377 : vector<128x4xf32>
    %379 = vector.broadcast %4 : vector<128x1xf32> to vector<128x4xf32>
    %380 = arith.addf %378, %379 : vector<128x4xf32>
    %381 = vector.extract_strided_slice %380 {offsets = [0, 0], sizes = [32, 4], strides = [1, 1]} : vector<128x4xf32> to vector<32x4xf32>
    %382 = arith.negf %381 : vector<32x4xf32>
    %383 = math.exp %382 : vector<32x4xf32>
    %cst_163 = arith.constant 1.000000e+00 : f32
    %384 = vector.broadcast %cst_163 : f32 to vector<32x4xf32>
    %385 = arith.addf %384, %383 : vector<32x4xf32>
    %386 = arith.divf %384, %385 : vector<32x4xf32>
    %387 = vector.extract_strided_slice %380 {offsets = [32, 0], sizes = [32, 4], strides = [1, 1]} : vector<128x4xf32> to vector<32x4xf32>
    %388 = arith.negf %387 : vector<32x4xf32>
    %389 = math.exp %388 : vector<32x4xf32>
    %cst_164 = arith.constant 1.000000e+00 : f32
    %390 = vector.broadcast %cst_164 : f32 to vector<32x4xf32>
    %391 = arith.addf %390, %389 : vector<32x4xf32>
    %392 = arith.divf %390, %391 : vector<32x4xf32>
    %393 = vector.extract_strided_slice %380 {offsets = [64, 0], sizes = [32, 4], strides = [1, 1]} : vector<128x4xf32> to vector<32x4xf32>
    %394 = math.tanh %393 : vector<32x4xf32>
    %395 = vector.extract_strided_slice %380 {offsets = [96, 0], sizes = [32, 4], strides = [1, 1]} : vector<128x4xf32> to vector<32x4xf32>
    %396 = arith.negf %395 : vector<32x4xf32>
    %397 = math.exp %396 : vector<32x4xf32>
    %cst_165 = arith.constant 1.000000e+00 : f32
    %398 = vector.broadcast %cst_165 : f32 to vector<32x4xf32>
    %399 = arith.addf %398, %397 : vector<32x4xf32>
    %400 = arith.divf %398, %399 : vector<32x4xf32>
    %c0_166 = arith.constant 0 : index
    %c0_167 = arith.constant 0 : index
    %401 = vector.load %arg11[%c0_166, %c0_167] : memref<32x4xf32, #tpu.memory_space<vmem>>, vector<32x4xf32>
    %402 = arith.mulf %392, %401 : vector<32x4xf32>
    %403 = arith.mulf %386, %394 : vector<32x4xf32>
    %404 = arith.addf %402, %403 : vector<32x4xf32>
    %405 = math.tanh %404 : vector<32x4xf32>
    %406 = arith.mulf %400, %405 : vector<32x4xf32>
    %c0_168 = arith.constant 0 : index
    %c0_169 = arith.constant 0 : index
    %407 = vector.load %arg11[%c0_168, %c0_169] : memref<32x4xf32, #tpu.memory_space<vmem>>, vector<32x4xf32>
    tpu.vector_store %arg11[%c0_168, %c0_169], %404 {strides = array<i32>} : memref<32x4xf32, #tpu.memory_space<vmem>>, vector<32x4xf32>,
    %c0_170 = arith.constant 0 : index
    %c0_171 = arith.constant 0 : index
    %408 = vector.load %arg10[%c0_170, %c0_171] : memref<32x4xf32, #tpu.memory_space<vmem>>, vector<32x4xf32>
    tpu.vector_store %arg10[%c0_170, %c0_171], %406 {strides = array<i32>} : memref<32x4xf32, #tpu.memory_space<vmem>>, vector<32x4xf32>,
    %cst_172 = arith.constant dense<0.000000e+00> : vector<10x4xf32>
    %409 = tpu.matmul %6, %406, %cst_172 {dimension_numbers = #tpu.dot_dimension_numbers<[1], [0], [0], [1], [0, 0, 1, 1], [], []>} : vector<10x32xf32>, vector<32x4xf32>, vector<10x4xf32> -> vector<10x4xf32>
    %410 = vector.broadcast %7 : vector<10x1xf32> to vector<10x4xf32>
    %411 = arith.addf %409, %410 : vector<10x4xf32>
    %cst_173 = arith.constant 0.000000e+00 : f32
    %412 = vector.broadcast %cst_173 : f32 to vector<10x4xf32>
    %413 = arith.maximumf %411, %412 : vector<10x4xf32>
    %414 = vector.extract_strided_slice %413 {offsets = [0, 0], sizes = [8, 4], strides = [1, 1]} : vector<10x4xf32> to vector<8x4xf32>
    %415 = arith.index_cast %c7_i32 : i32 to index
    %c0_174 = arith.constant 0 : index
    %c0_175 = arith.constant 0 : index
    %416 = vector.load %arg8[%415, %c0_174, %c0_175] : memref<8x8x4xf32, #tpu.memory_space<vmem>>, vector<1x8x4xf32>
    %417 = vector.shape_cast %416 : vector<1x8x4xf32> to vector<8x4xf32>
    %418 = vector.shape_cast %414 : vector<8x4xf32> to vector<1x8x4xf32>
    tpu.vector_store %arg8[%415, %c0_174, %c0_175], %418 {strides = array<i32>} : memref<8x8x4xf32, #tpu.memory_space<vmem>>, vector<1x8x4xf32>,
    %419 = vector.extract_strided_slice %413 {offsets = [8, 0], sizes = [2, 4], strides = [1, 1]} : vector<10x4xf32> to vector<2x4xf32>
    %420 = arith.index_cast %c7_i32 : i32 to index
    %c0_176 = arith.constant 0 : index
    %c0_177 = arith.constant 0 : index
    %421 = vector.load %arg9[%420, %c0_176, %c0_177] : memref<8x2x4xf32, #tpu.memory_space<vmem>>, vector<1x2x4xf32>
    %422 = vector.shape_cast %421 : vector<1x2x4xf32> to vector<2x4xf32>
    %423 = vector.shape_cast %419 : vector<2x4xf32> to vector<1x2x4xf32>
    tpu.vector_store %arg9[%420, %c0_176, %c0_177], %423 {strides = array<i32>} : memref<8x2x4xf32, #tpu.memory_space<vmem>>, vector<1x2x4xf32>,
    %c8_i32 = arith.constant 8 : i32
    return
  }
  func.func @transform_0(%arg0: i32, %arg1: i32) -> (i32, i32, i32) {
    %c0_i32 = arith.constant 0 : i32
    %c0_i32_0 = arith.constant 0 : i32
    return %arg1, %c0_i32, %arg0 : i32, i32, i32
  }
  func.func @transform_1(%arg0: i32, %arg1: i32) -> (i32, i32) {
    %c0_i32 = arith.constant 0 : i32
    %c0_i32_0 = arith.constant 0 : i32
    %c0_i32_1 = arith.constant 0 : i32
    return %c0_i32, %c0_i32_0 : i32, i32
  }
  func.func @transform_2(%arg0: i32, %arg1: i32) -> (i32, i32) {
    %c0_i32 = arith.constant 0 : i32
    %c0_i32_0 = arith.constant 0 : i32
    %c0_i32_1 = arith.constant 0 : i32
    return %c0_i32, %c0_i32_0 : i32, i32
  }
  func.func @transform_3(%arg0: i32, %arg1: i32) -> (i32, i32) {
    %c0_i32 = arith.constant 0 : i32
    %c0_i32_0 = arith.constant 0 : i32
    %c0_i32_1 = arith.constant 0 : i32
    return %c0_i32, %c0_i32_0 : i32, i32
  }
  func.func @transform_4(%arg0: i32, %arg1: i32) -> (i32, i32) {
    %c0_i32 = arith.constant 0 : i32
    %c0_i32_0 = arith.constant 0 : i32
    %c0_i32_1 = arith.constant 0 : i32
    return %c0_i32, %c0_i32_0 : i32, i32
  }
  func.func @transform_5(%arg0: i32, %arg1: i32) -> (i32, i32) {
    %c0_i32 = arith.constant 0 : i32
    %c0_i32_0 = arith.constant 0 : i32
    %c0_i32_1 = arith.constant 0 : i32
    return %c0_i32, %c0_i32_0 : i32, i32
  }
  func.func @transform_6(%arg0: i32, %arg1: i32) -> (i32, i32, i32) {
    %c0_i32 = arith.constant 0 : i32
    %c0_i32_0 = arith.constant 0 : i32
    return %arg1, %c0_i32, %arg0 : i32, i32, i32
  }
  func.func @transform_7(%arg0: i32, %arg1: i32) -> (i32, i32, i32) {
    %c0_i32 = arith.constant 0 : i32
    %c0_i32_0 = arith.constant 0 : i32
    return %arg1, %c0_i32, %arg0 : i32, i32, i32
  }
}

module attributes {stable_mosaic.version = 11 : i64} {
  func.func @_age_kernel(%arg0: i32, %arg1: i32, %arg2: memref<16x4xf32, #tpu.memory_space<vmem>>, %arg3: memref<8x8x4xf32, #tpu.memory_space<vmem>>, %arg4: memref<8x4xf32, #tpu.memory_space<vmem>>, %arg5: memref<3x8xf32, #tpu.memory_space<vmem>>, %arg6: memref<8x5x4xf32, #tpu.memory_space<vmem>>) attributes {dimension_semantics = [#tpu.dimension_semantics<parallel>, #tpu.dimension_semantics<parallel>], iteration_bounds = array<i64: 1, 2>, scalar_prefetch = 0 : i64, scratch_operands = 0 : i64, tpu.core_type = #tpu.core_type<tc>, window_params = [{transform_indices = @transform_0, window_bounds = array<i64: 16, 4>}, {transform_indices = @transform_1, window_bounds = array<i64: 8, 8, 4>}, {transform_indices = @transform_2, window_bounds = array<i64: 8, 4>}, {pipeline_mode = #tpu.pipeline_mode<synchronous>, transform_indices = @transform_3, window_bounds = array<i64: 3, 8>}, {transform_indices = @transform_4, window_bounds = array<i64: 8, 5, 4>}]} {
    %c8_i32 = arith.constant 8 : i32
    %0 = arith.muli %arg1, %c8_i32 : i32
    %c0 = arith.constant 0 : index
    %c0_0 = arith.constant 0 : index
    %1 = vector.load %arg5[%c0, %c0_0] : memref<3x8xf32, #tpu.memory_space<vmem>>, vector<3x8xf32>
    %c8_i32_1 = arith.constant 8 : i32
    %2 = arith.addi %0, %c8_i32_1 : i32
    %c8_i32_2 = arith.constant 8 : i32
    %3 = arith.cmpi sle, %2, %c8_i32_2 : i32
    %c8_i32_3 = arith.constant 8 : i32
    %4 = arith.cmpi sge, %0, %c8_i32_3 : i32
    %c8_i32_4 = arith.constant 8 : i32
    %5 = arith.addi %0, %c8_i32_4 : i32
    %c16_i32 = arith.constant 16 : i32
    %6 = arith.cmpi sle, %5, %c16_i32 : i32
    %7 = arith.andi %4, %6 : i1
    %8 = arith.extui %3 : i1 to i32
    %c0_i32 = arith.constant 0 : i32
    %9 = arith.cmpi ne, %8, %c0_i32 : i32
    scf.if %9 {
      %cst = arith.constant 0.000000e+00 : f32
      %16 = vector.broadcast %cst : f32 to vector<8x5x4xf32>
      %c0_7 = arith.constant 0 : index
      %c0_8 = arith.constant 0 : index
      %c0_9 = arith.constant 0 : index
      %17 = vector.load %arg6[%c0_7, %c0_8, %c0_9] : memref<8x5x4xf32, #tpu.memory_space<vmem>>, vector<8x5x4xf32>
      tpu.vector_store %arg6[%c0_7, %c0_8, %c0_9], %16 {strides = array<i32>} : memref<8x5x4xf32, #tpu.memory_space<vmem>>, vector<8x5x4xf32>,
    } else {
    }
    %10 = arith.extui %7 : i1 to i32
    %c0_i32_5 = arith.constant 0 : i32
    %11 = arith.cmpi ne, %10, %c0_i32_5 : i32
    scf.if %11 {
      %c0_i32_7 = arith.constant 0 : i32
      %16 = arith.addi %0, %c0_i32_7 : i32
      %c8_i32_8 = arith.constant 8 : i32
      %17 = arith.subi %16, %c8_i32_8 : i32
      %18 = arith.index_cast %17 : i32 to index
      %c0_9 = arith.constant 0 : index
      %19 = vector.load %arg2[%18, %c0_9] : memref<16x4xf32, #tpu.memory_space<vmem>>, vector<8x4xf32>
      %c0_10 = arith.constant 0 : index
      %c0_11 = arith.constant 0 : index
      %c0_12 = arith.constant 0 : index
      %20 = vector.load %arg3[%c0_10, %c0_11, %c0_12] : memref<8x8x4xf32, #tpu.memory_space<vmem>>, vector<1x8x4xf32>
      %21 = vector.shape_cast %20 : vector<1x8x4xf32> to vector<8x4xf32>
      %22 = arith.mulf %19, %21 : vector<8x4xf32>
      %cst = arith.constant dense<0.000000e+00> : vector<4xf32>
      %23 = vector.multi_reduction <add>, %22, %cst [0] : vector<8x4xf32> to vector<4xf32>
      %24 = vector.shape_cast %23 : vector<4xf32> to vector<1x4xf32>
      %cst_13 = arith.constant dense<0.000000e+00> : vector<3x4xf32>
      %25 = tpu.matmul %1, %22, %cst_13 {dimension_numbers = #tpu.dot_dimension_numbers<[1], [0], [0], [1], [0, 0, 1, 1], [], []>} : vector<3x8xf32>, vector<8x4xf32>, vector<3x4xf32> -> vector<3x4xf32>
      %c0_14 = arith.constant 0 : index
      %c0_15 = arith.constant 0 : index
      %26 = vector.load %arg4[%c0_14, %c0_15] : memref<8x4xf32, #tpu.memory_space<vmem>>, vector<1x4xf32>
      %27 = arith.mulf %24, %26 : vector<1x4xf32>
      %cst_16 = arith.constant 0.000000e+00 : f32
      %28 = vector.broadcast %cst_16 : f32 to vector<1x4xf32>
      %29 = tpu.reciprocal %24 {approx = true} : vector<1x4xf32> -> vector<1x4xf32>
      %30 = vector.broadcast %29 : vector<1x4xf32> to vector<3x4xf32>
      %31 = arith.mulf %25, %30 : vector<3x4xf32>
      %32 = tpu.concatenate %27, %28, %31 in 0 : vector<1x4xf32>, vector<1x4xf32>, vector<3x4xf32> -> vector<5x4xf32>
      %c0_17 = arith.constant 0 : index
      %c0_18 = arith.constant 0 : index
      %c0_19 = arith.constant 0 : index
      %33 = vector.load %arg6[%c0_17, %c0_18, %c0_19] : memref<8x5x4xf32, #tpu.memory_space<vmem>>, vector<1x5x4xf32>
      %34 = vector.shape_cast %33 : vector<1x5x4xf32> to vector<5x4xf32>
      %35 = vector.shape_cast %32 : vector<5x4xf32> to vector<1x5x4xf32>
      tpu.vector_store %arg6[%c0_17, %c0_18, %c0_19], %35 {strides = array<i32>} : memref<8x5x4xf32, #tpu.memory_space<vmem>>, vector<1x5x4xf32>,
      %c1_i32 = arith.constant 1 : i32
      %36 = arith.addi %0, %c1_i32 : i32
      %c8_i32_20 = arith.constant 8 : i32
      %37 = arith.subi %36, %c8_i32_20 : i32
      %38 = arith.index_cast %37 : i32 to index
      %c0_21 = arith.constant 0 : index
      %39 = vector.load %arg2[%38, %c0_21] : memref<16x4xf32, #tpu.memory_space<vmem>>, vector<8x4xf32>
      %c1 = arith.constant 1 : index
      %c0_22 = arith.constant 0 : index
      %c0_23 = arith.constant 0 : index
      %40 = vector.load %arg3[%c1, %c0_22, %c0_23] : memref<8x8x4xf32, #tpu.memory_space<vmem>>, vector<1x8x4xf32>
      %41 = vector.shape_cast %40 : vector<1x8x4xf32> to vector<8x4xf32>
      %42 = arith.mulf %39, %41 : vector<8x4xf32>
      %cst_24 = arith.constant dense<0.000000e+00> : vector<4xf32>
      %43 = vector.multi_reduction <add>, %42, %cst_24 [0] : vector<8x4xf32> to vector<4xf32>
      %44 = vector.shape_cast %43 : vector<4xf32> to vector<1x4xf32>
      %cst_25 = arith.constant dense<0.000000e+00> : vector<3x4xf32>
      %45 = tpu.matmul %1, %42, %cst_25 {dimension_numbers = #tpu.dot_dimension_numbers<[1], [0], [0], [1], [0, 0, 1, 1], [], []>} : vector<3x8xf32>, vector<8x4xf32>, vector<3x4xf32> -> vector<3x4xf32>
      %c1_26 = arith.constant 1 : index
      %c0_27 = arith.constant 0 : index
      %46 = vector.load %arg4[%c1_26, %c0_27] : memref<8x4xf32, #tpu.memory_space<vmem>>, vector<1x4xf32>
      %47 = arith.mulf %44, %46 : vector<1x4xf32>
      %cst_28 = arith.constant 0.000000e+00 : f32
      %48 = vector.broadcast %cst_28 : f32 to vector<1x4xf32>
      %49 = tpu.reciprocal %44 {approx = true} : vector<1x4xf32> -> vector<1x4xf32>
      %50 = vector.broadcast %49 : vector<1x4xf32> to vector<3x4xf32>
      %51 = arith.mulf %45, %50 : vector<3x4xf32>
      %52 = tpu.concatenate %47, %48, %51 in 0 : vector<1x4xf32>, vector<1x4xf32>, vector<3x4xf32> -> vector<5x4xf32>
      %c1_29 = arith.constant 1 : index
      %c0_30 = arith.constant 0 : index
      %c0_31 = arith.constant 0 : index
      %53 = vector.load %arg6[%c1_29, %c0_30, %c0_31] : memref<8x5x4xf32, #tpu.memory_space<vmem>>, vector<1x5x4xf32>
      %54 = vector.shape_cast %53 : vector<1x5x4xf32> to vector<5x4xf32>
      %55 = vector.shape_cast %52 : vector<5x4xf32> to vector<1x5x4xf32>
      tpu.vector_store %arg6[%c1_29, %c0_30, %c0_31], %55 {strides = array<i32>} : memref<8x5x4xf32, #tpu.memory_space<vmem>>, vector<1x5x4xf32>,
      %c2_i32 = arith.constant 2 : i32
      %56 = arith.addi %0, %c2_i32 : i32
      %c8_i32_32 = arith.constant 8 : i32
      %57 = arith.subi %56, %c8_i32_32 : i32
      %58 = arith.index_cast %57 : i32 to index
      %c0_33 = arith.constant 0 : index
      %59 = vector.load %arg2[%58, %c0_33] : memref<16x4xf32, #tpu.memory_space<vmem>>, vector<8x4xf32>
      %c2 = arith.constant 2 : index
      %c0_34 = arith.constant 0 : index
      %c0_35 = arith.constant 0 : index
      %60 = vector.load %arg3[%c2, %c0_34, %c0_35] : memref<8x8x4xf32, #tpu.memory_space<vmem>>, vector<1x8x4xf32>
      %61 = vector.shape_cast %60 : vector<1x8x4xf32> to vector<8x4xf32>
      %62 = arith.mulf %59, %61 : vector<8x4xf32>
      %cst_36 = arith.constant dense<0.000000e+00> : vector<4xf32>
      %63 = vector.multi_reduction <add>, %62, %cst_36 [0] : vector<8x4xf32> to vector<4xf32>
      %64 = vector.shape_cast %63 : vector<4xf32> to vector<1x4xf32>
      %cst_37 = arith.constant dense<0.000000e+00> : vector<3x4xf32>
      %65 = tpu.matmul %1, %62, %cst_37 {dimension_numbers = #tpu.dot_dimension_numbers<[1], [0], [0], [1], [0, 0, 1, 1], [], []>} : vector<3x8xf32>, vector<8x4xf32>, vector<3x4xf32> -> vector<3x4xf32>
      %c2_38 = arith.constant 2 : index
      %c0_39 = arith.constant 0 : index
      %66 = vector.load %arg4[%c2_38, %c0_39] : memref<8x4xf32, #tpu.memory_space<vmem>>, vector<1x4xf32>
      %67 = arith.mulf %64, %66 : vector<1x4xf32>
      %cst_40 = arith.constant 0.000000e+00 : f32
      %68 = vector.broadcast %cst_40 : f32 to vector<1x4xf32>
      %69 = tpu.reciprocal %64 {approx = true} : vector<1x4xf32> -> vector<1x4xf32>
      %70 = vector.broadcast %69 : vector<1x4xf32> to vector<3x4xf32>
      %71 = arith.mulf %65, %70 : vector<3x4xf32>
      %72 = tpu.concatenate %67, %68, %71 in 0 : vector<1x4xf32>, vector<1x4xf32>, vector<3x4xf32> -> vector<5x4xf32>
      %c2_41 = arith.constant 2 : index
      %c0_42 = arith.constant 0 : index
      %c0_43 = arith.constant 0 : index
      %73 = vector.load %arg6[%c2_41, %c0_42, %c0_43] : memref<8x5x4xf32, #tpu.memory_space<vmem>>, vector<1x5x4xf32>
      %74 = vector.shape_cast %73 : vector<1x5x4xf32> to vector<5x4xf32>
      %75 = vector.shape_cast %72 : vector<5x4xf32> to vector<1x5x4xf32>
      tpu.vector_store %arg6[%c2_41, %c0_42, %c0_43], %75 {strides = array<i32>} : memref<8x5x4xf32, #tpu.memory_space<vmem>>, vector<1x5x4xf32>,
      %c3_i32 = arith.constant 3 : i32
      %76 = arith.addi %0, %c3_i32 : i32
      %c8_i32_44 = arith.constant 8 : i32
      %77 = arith.subi %76, %c8_i32_44 : i32
      %78 = arith.index_cast %77 : i32 to index
      %c0_45 = arith.constant 0 : index
      %79 = vector.load %arg2[%78, %c0_45] : memref<16x4xf32, #tpu.memory_space<vmem>>, vector<8x4xf32>
      %c3 = arith.constant 3 : index
      %c0_46 = arith.constant 0 : index
      %c0_47 = arith.constant 0 : index
      %80 = vector.load %arg3[%c3, %c0_46, %c0_47] : memref<8x8x4xf32, #tpu.memory_space<vmem>>, vector<1x8x4xf32>
      %81 = vector.shape_cast %80 : vector<1x8x4xf32> to vector<8x4xf32>
      %82 = arith.mulf %79, %81 : vector<8x4xf32>
      %cst_48 = arith.constant dense<0.000000e+00> : vector<4xf32>
      %83 = vector.multi_reduction <add>, %82, %cst_48 [0] : vector<8x4xf32> to vector<4xf32>
      %84 = vector.shape_cast %83 : vector<4xf32> to vector<1x4xf32>
      %cst_49 = arith.constant dense<0.000000e+00> : vector<3x4xf32>
      %85 = tpu.matmul %1, %82, %cst_49 {dimension_numbers = #tpu.dot_dimension_numbers<[1], [0], [0], [1], [0, 0, 1, 1], [], []>} : vector<3x8xf32>, vector<8x4xf32>, vector<3x4xf32> -> vector<3x4xf32>
      %c3_50 = arith.constant 3 : index
      %c0_51 = arith.constant 0 : index
      %86 = vector.load %arg4[%c3_50, %c0_51] : memref<8x4xf32, #tpu.memory_space<vmem>>, vector<1x4xf32>
      %87 = arith.mulf %84, %86 : vector<1x4xf32>
      %cst_52 = arith.constant 0.000000e+00 : f32
      %88 = vector.broadcast %cst_52 : f32 to vector<1x4xf32>
      %89 = tpu.reciprocal %84 {approx = true} : vector<1x4xf32> -> vector<1x4xf32>
      %90 = vector.broadcast %89 : vector<1x4xf32> to vector<3x4xf32>
      %91 = arith.mulf %85, %90 : vector<3x4xf32>
      %92 = tpu.concatenate %87, %88, %91 in 0 : vector<1x4xf32>, vector<1x4xf32>, vector<3x4xf32> -> vector<5x4xf32>
      %c3_53 = arith.constant 3 : index
      %c0_54 = arith.constant 0 : index
      %c0_55 = arith.constant 0 : index
      %93 = vector.load %arg6[%c3_53, %c0_54, %c0_55] : memref<8x5x4xf32, #tpu.memory_space<vmem>>, vector<1x5x4xf32>
      %94 = vector.shape_cast %93 : vector<1x5x4xf32> to vector<5x4xf32>
      %95 = vector.shape_cast %92 : vector<5x4xf32> to vector<1x5x4xf32>
      tpu.vector_store %arg6[%c3_53, %c0_54, %c0_55], %95 {strides = array<i32>} : memref<8x5x4xf32, #tpu.memory_space<vmem>>, vector<1x5x4xf32>,
      %c4_i32 = arith.constant 4 : i32
      %96 = arith.addi %0, %c4_i32 : i32
      %c8_i32_56 = arith.constant 8 : i32
      %97 = arith.subi %96, %c8_i32_56 : i32
      %98 = arith.index_cast %97 : i32 to index
      %c0_57 = arith.constant 0 : index
      %99 = vector.load %arg2[%98, %c0_57] : memref<16x4xf32, #tpu.memory_space<vmem>>, vector<8x4xf32>
      %c4 = arith.constant 4 : index
      %c0_58 = arith.constant 0 : index
      %c0_59 = arith.constant 0 : index
      %100 = vector.load %arg3[%c4, %c0_58, %c0_59] : memref<8x8x4xf32, #tpu.memory_space<vmem>>, vector<1x8x4xf32>
      %101 = vector.shape_cast %100 : vector<1x8x4xf32> to vector<8x4xf32>
      %102 = arith.mulf %99, %101 : vector<8x4xf32>
      %cst_60 = arith.constant dense<0.000000e+00> : vector<4xf32>
      %103 = vector.multi_reduction <add>, %102, %cst_60 [0] : vector<8x4xf32> to vector<4xf32>
      %104 = vector.shape_cast %103 : vector<4xf32> to vector<1x4xf32>
      %cst_61 = arith.constant dense<0.000000e+00> : vector<3x4xf32>
      %105 = tpu.matmul %1, %102, %cst_61 {dimension_numbers = #tpu.dot_dimension_numbers<[1], [0], [0], [1], [0, 0, 1, 1], [], []>} : vector<3x8xf32>, vector<8x4xf32>, vector<3x4xf32> -> vector<3x4xf32>
      %c4_62 = arith.constant 4 : index
      %c0_63 = arith.constant 0 : index
      %106 = vector.load %arg4[%c4_62, %c0_63] : memref<8x4xf32, #tpu.memory_space<vmem>>, vector<1x4xf32>
      %107 = arith.mulf %104, %106 : vector<1x4xf32>
      %cst_64 = arith.constant 0.000000e+00 : f32
      %108 = vector.broadcast %cst_64 : f32 to vector<1x4xf32>
      %109 = tpu.reciprocal %104 {approx = true} : vector<1x4xf32> -> vector<1x4xf32>
      %110 = vector.broadcast %109 : vector<1x4xf32> to vector<3x4xf32>
      %111 = arith.mulf %105, %110 : vector<3x4xf32>
      %112 = tpu.concatenate %107, %108, %111 in 0 : vector<1x4xf32>, vector<1x4xf32>, vector<3x4xf32> -> vector<5x4xf32>
      %c4_65 = arith.constant 4 : index
      %c0_66 = arith.constant 0 : index
      %c0_67 = arith.constant 0 : index
      %113 = vector.load %arg6[%c4_65, %c0_66, %c0_67] : memref<8x5x4xf32, #tpu.memory_space<vmem>>, vector<1x5x4xf32>
      %114 = vector.shape_cast %113 : vector<1x5x4xf32> to vector<5x4xf32>
      %115 = vector.shape_cast %112 : vector<5x4xf32> to vector<1x5x4xf32>
      tpu.vector_store %arg6[%c4_65, %c0_66, %c0_67], %115 {strides = array<i32>} : memref<8x5x4xf32, #tpu.memory_space<vmem>>, vector<1x5x4xf32>,
      %c5_i32 = arith.constant 5 : i32
      %116 = arith.addi %0, %c5_i32 : i32
      %c8_i32_68 = arith.constant 8 : i32
      %117 = arith.subi %116, %c8_i32_68 : i32
      %118 = arith.index_cast %117 : i32 to index
      %c0_69 = arith.constant 0 : index
      %119 = vector.load %arg2[%118, %c0_69] : memref<16x4xf32, #tpu.memory_space<vmem>>, vector<8x4xf32>
      %c5 = arith.constant 5 : index
      %c0_70 = arith.constant 0 : index
      %c0_71 = arith.constant 0 : index
      %120 = vector.load %arg3[%c5, %c0_70, %c0_71] : memref<8x8x4xf32, #tpu.memory_space<vmem>>, vector<1x8x4xf32>
      %121 = vector.shape_cast %120 : vector<1x8x4xf32> to vector<8x4xf32>
      %122 = arith.mulf %119, %121 : vector<8x4xf32>
      %cst_72 = arith.constant dense<0.000000e+00> : vector<4xf32>
      %123 = vector.multi_reduction <add>, %122, %cst_72 [0] : vector<8x4xf32> to vector<4xf32>
      %124 = vector.shape_cast %123 : vector<4xf32> to vector<1x4xf32>
      %cst_73 = arith.constant dense<0.000000e+00> : vector<3x4xf32>
      %125 = tpu.matmul %1, %122, %cst_73 {dimension_numbers = #tpu.dot_dimension_numbers<[1], [0], [0], [1], [0, 0, 1, 1], [], []>} : vector<3x8xf32>, vector<8x4xf32>, vector<3x4xf32> -> vector<3x4xf32>
      %c5_74 = arith.constant 5 : index
      %c0_75 = arith.constant 0 : index
      %126 = vector.load %arg4[%c5_74, %c0_75] : memref<8x4xf32, #tpu.memory_space<vmem>>, vector<1x4xf32>
      %127 = arith.mulf %124, %126 : vector<1x4xf32>
      %cst_76 = arith.constant 0.000000e+00 : f32
      %128 = vector.broadcast %cst_76 : f32 to vector<1x4xf32>
      %129 = tpu.reciprocal %124 {approx = true} : vector<1x4xf32> -> vector<1x4xf32>
      %130 = vector.broadcast %129 : vector<1x4xf32> to vector<3x4xf32>
      %131 = arith.mulf %125, %130 : vector<3x4xf32>
      %132 = tpu.concatenate %127, %128, %131 in 0 : vector<1x4xf32>, vector<1x4xf32>, vector<3x4xf32> -> vector<5x4xf32>
      %c5_77 = arith.constant 5 : index
      %c0_78 = arith.constant 0 : index
      %c0_79 = arith.constant 0 : index
      %133 = vector.load %arg6[%c5_77, %c0_78, %c0_79] : memref<8x5x4xf32, #tpu.memory_space<vmem>>, vector<1x5x4xf32>
      %134 = vector.shape_cast %133 : vector<1x5x4xf32> to vector<5x4xf32>
      %135 = vector.shape_cast %132 : vector<5x4xf32> to vector<1x5x4xf32>
      tpu.vector_store %arg6[%c5_77, %c0_78, %c0_79], %135 {strides = array<i32>} : memref<8x5x4xf32, #tpu.memory_space<vmem>>, vector<1x5x4xf32>,
      %c6_i32 = arith.constant 6 : i32
      %136 = arith.addi %0, %c6_i32 : i32
      %c8_i32_80 = arith.constant 8 : i32
      %137 = arith.subi %136, %c8_i32_80 : i32
      %138 = arith.index_cast %137 : i32 to index
      %c0_81 = arith.constant 0 : index
      %139 = vector.load %arg2[%138, %c0_81] : memref<16x4xf32, #tpu.memory_space<vmem>>, vector<8x4xf32>
      %c6 = arith.constant 6 : index
      %c0_82 = arith.constant 0 : index
      %c0_83 = arith.constant 0 : index
      %140 = vector.load %arg3[%c6, %c0_82, %c0_83] : memref<8x8x4xf32, #tpu.memory_space<vmem>>, vector<1x8x4xf32>
      %141 = vector.shape_cast %140 : vector<1x8x4xf32> to vector<8x4xf32>
      %142 = arith.mulf %139, %141 : vector<8x4xf32>
      %cst_84 = arith.constant dense<0.000000e+00> : vector<4xf32>
      %143 = vector.multi_reduction <add>, %142, %cst_84 [0] : vector<8x4xf32> to vector<4xf32>
      %144 = vector.shape_cast %143 : vector<4xf32> to vector<1x4xf32>
      %cst_85 = arith.constant dense<0.000000e+00> : vector<3x4xf32>
      %145 = tpu.matmul %1, %142, %cst_85 {dimension_numbers = #tpu.dot_dimension_numbers<[1], [0], [0], [1], [0, 0, 1, 1], [], []>} : vector<3x8xf32>, vector<8x4xf32>, vector<3x4xf32> -> vector<3x4xf32>
      %c6_86 = arith.constant 6 : index
      %c0_87 = arith.constant 0 : index
      %146 = vector.load %arg4[%c6_86, %c0_87] : memref<8x4xf32, #tpu.memory_space<vmem>>, vector<1x4xf32>
      %147 = arith.mulf %144, %146 : vector<1x4xf32>
      %cst_88 = arith.constant 0.000000e+00 : f32
      %148 = vector.broadcast %cst_88 : f32 to vector<1x4xf32>
      %149 = tpu.reciprocal %144 {approx = true} : vector<1x4xf32> -> vector<1x4xf32>
      %150 = vector.broadcast %149 : vector<1x4xf32> to vector<3x4xf32>
      %151 = arith.mulf %145, %150 : vector<3x4xf32>
      %152 = tpu.concatenate %147, %148, %151 in 0 : vector<1x4xf32>, vector<1x4xf32>, vector<3x4xf32> -> vector<5x4xf32>
      %c6_89 = arith.constant 6 : index
      %c0_90 = arith.constant 0 : index
      %c0_91 = arith.constant 0 : index
      %153 = vector.load %arg6[%c6_89, %c0_90, %c0_91] : memref<8x5x4xf32, #tpu.memory_space<vmem>>, vector<1x5x4xf32>
      %154 = vector.shape_cast %153 : vector<1x5x4xf32> to vector<5x4xf32>
      %155 = vector.shape_cast %152 : vector<5x4xf32> to vector<1x5x4xf32>
      tpu.vector_store %arg6[%c6_89, %c0_90, %c0_91], %155 {strides = array<i32>} : memref<8x5x4xf32, #tpu.memory_space<vmem>>, vector<1x5x4xf32>,
      %c7_i32 = arith.constant 7 : i32
      %156 = arith.addi %0, %c7_i32 : i32
      %c8_i32_92 = arith.constant 8 : i32
      %157 = arith.subi %156, %c8_i32_92 : i32
      %158 = arith.index_cast %157 : i32 to index
      %c0_93 = arith.constant 0 : index
      %159 = vector.load %arg2[%158, %c0_93] : memref<16x4xf32, #tpu.memory_space<vmem>>, vector<8x4xf32>
      %c7 = arith.constant 7 : index
      %c0_94 = arith.constant 0 : index
      %c0_95 = arith.constant 0 : index
      %160 = vector.load %arg3[%c7, %c0_94, %c0_95] : memref<8x8x4xf32, #tpu.memory_space<vmem>>, vector<1x8x4xf32>
      %161 = vector.shape_cast %160 : vector<1x8x4xf32> to vector<8x4xf32>
      %162 = arith.mulf %159, %161 : vector<8x4xf32>
      %cst_96 = arith.constant dense<0.000000e+00> : vector<4xf32>
      %163 = vector.multi_reduction <add>, %162, %cst_96 [0] : vector<8x4xf32> to vector<4xf32>
      %164 = vector.shape_cast %163 : vector<4xf32> to vector<1x4xf32>
      %cst_97 = arith.constant dense<0.000000e+00> : vector<3x4xf32>
      %165 = tpu.matmul %1, %162, %cst_97 {dimension_numbers = #tpu.dot_dimension_numbers<[1], [0], [0], [1], [0, 0, 1, 1], [], []>} : vector<3x8xf32>, vector<8x4xf32>, vector<3x4xf32> -> vector<3x4xf32>
      %c7_98 = arith.constant 7 : index
      %c0_99 = arith.constant 0 : index
      %166 = vector.load %arg4[%c7_98, %c0_99] : memref<8x4xf32, #tpu.memory_space<vmem>>, vector<1x4xf32>
      %167 = arith.mulf %164, %166 : vector<1x4xf32>
      %cst_100 = arith.constant 0.000000e+00 : f32
      %168 = vector.broadcast %cst_100 : f32 to vector<1x4xf32>
      %169 = tpu.reciprocal %164 {approx = true} : vector<1x4xf32> -> vector<1x4xf32>
      %170 = vector.broadcast %169 : vector<1x4xf32> to vector<3x4xf32>
      %171 = arith.mulf %165, %170 : vector<3x4xf32>
      %172 = tpu.concatenate %167, %168, %171 in 0 : vector<1x4xf32>, vector<1x4xf32>, vector<3x4xf32> -> vector<5x4xf32>
      %c7_101 = arith.constant 7 : index
      %c0_102 = arith.constant 0 : index
      %c0_103 = arith.constant 0 : index
      %173 = vector.load %arg6[%c7_101, %c0_102, %c0_103] : memref<8x5x4xf32, #tpu.memory_space<vmem>>, vector<1x5x4xf32>
      %174 = vector.shape_cast %173 : vector<1x5x4xf32> to vector<5x4xf32>
      %175 = vector.shape_cast %172 : vector<5x4xf32> to vector<1x5x4xf32>
      tpu.vector_store %arg6[%c7_101, %c0_102, %c0_103], %175 {strides = array<i32>} : memref<8x5x4xf32, #tpu.memory_space<vmem>>, vector<1x5x4xf32>,
    } else {
    }
    %12 = arith.ori %3, %7 : i1
    %true = arith.constant true
    %13 = arith.xori %12, %true : i1
    %14 = arith.extui %13 : i1 to i32
    %c0_i32_6 = arith.constant 0 : i32
    %15 = arith.cmpi ne, %14, %c0_i32_6 : i32
    scf.if %15 {
      %c0_i32_7 = arith.constant 0 : i32
      %16 = arith.addi %0, %c0_i32_7 : i32
      %c8_i32_8 = arith.constant 8 : i32
      %17 = arith.cmpi sge, %16, %c8_i32_8 : i32
      %c16_i32_9 = arith.constant 16 : i32
      %18 = arith.cmpi slt, %16, %c16_i32_9 : i32
      %19 = arith.andi %17, %18 : i1
      %20 = arith.extui %19 : i1 to i32
      %c0_i32_10 = arith.constant 0 : i32
      %21 = arith.cmpi ne, %20, %c0_i32_10 : i32
      scf.if %21 {
        %c8_i32_48 = arith.constant 8 : i32
        %88 = arith.subi %16, %c8_i32_48 : i32
        %89 = arith.index_cast %88 : i32 to index
        %c0_49 = arith.constant 0 : index
        %90 = vector.load %arg2[%89, %c0_49] : memref<16x4xf32, #tpu.memory_space<vmem>>, vector<8x4xf32>
        %c0_50 = arith.constant 0 : index
        %c0_51 = arith.constant 0 : index
        %c0_52 = arith.constant 0 : index
        %91 = vector.load %arg3[%c0_50, %c0_51, %c0_52] : memref<8x8x4xf32, #tpu.memory_space<vmem>>, vector<1x8x4xf32>
        %92 = vector.shape_cast %91 : vector<1x8x4xf32> to vector<8x4xf32>
        %93 = arith.mulf %90, %92 : vector<8x4xf32>
        %cst = arith.constant dense<0.000000e+00> : vector<4xf32>
        %94 = vector.multi_reduction <add>, %93, %cst [0] : vector<8x4xf32> to vector<4xf32>
        %95 = vector.shape_cast %94 : vector<4xf32> to vector<1x4xf32>
        %cst_53 = arith.constant dense<0.000000e+00> : vector<3x4xf32>
        %96 = tpu.matmul %1, %93, %cst_53 {dimension_numbers = #tpu.dot_dimension_numbers<[1], [0], [0], [1], [0, 0, 1, 1], [], []>} : vector<3x8xf32>, vector<8x4xf32>, vector<3x4xf32> -> vector<3x4xf32>
        %c0_54 = arith.constant 0 : index
        %c0_55 = arith.constant 0 : index
        %97 = vector.load %arg4[%c0_54, %c0_55] : memref<8x4xf32, #tpu.memory_space<vmem>>, vector<1x4xf32>
        %98 = arith.mulf %95, %97 : vector<1x4xf32>
        %cst_56 = arith.constant 0.000000e+00 : f32
        %99 = vector.broadcast %cst_56 : f32 to vector<1x4xf32>
        %100 = tpu.reciprocal %95 {approx = true} : vector<1x4xf32> -> vector<1x4xf32>
        %101 = vector.broadcast %100 : vector<1x4xf32> to vector<3x4xf32>
        %102 = arith.mulf %96, %101 : vector<3x4xf32>
        %103 = tpu.concatenate %98, %99, %102 in 0 : vector<1x4xf32>, vector<1x4xf32>, vector<3x4xf32> -> vector<5x4xf32>
        %c0_57 = arith.constant 0 : index
        %c0_58 = arith.constant 0 : index
        %c0_59 = arith.constant 0 : index
        %104 = vector.load %arg6[%c0_57, %c0_58, %c0_59] : memref<8x5x4xf32, #tpu.memory_space<vmem>>, vector<1x5x4xf32>
        %105 = vector.shape_cast %104 : vector<1x5x4xf32> to vector<5x4xf32>
        %106 = vector.shape_cast %103 : vector<5x4xf32> to vector<1x5x4xf32>
        tpu.vector_store %arg6[%c0_57, %c0_58, %c0_59], %106 {strides = array<i32>} : memref<8x5x4xf32, #tpu.memory_space<vmem>>, vector<1x5x4xf32>,
      } else {
      }
      %true_11 = arith.constant true
      %22 = arith.xori %19, %true_11 : i1
      %23 = arith.extui %22 : i1 to i32
      %c0_i32_12 = arith.constant 0 : i32
      %24 = arith.cmpi ne, %23, %c0_i32_12 : i32
      scf.if %24 {
        %cst = arith.constant 0.000000e+00 : f32
        %88 = vector.broadcast %cst : f32 to vector<5x4xf32>
        %c0_48 = arith.constant 0 : index
        %c0_49 = arith.constant 0 : index
        %c0_50 = arith.constant 0 : index
        %89 = vector.load %arg6[%c0_48, %c0_49, %c0_50] : memref<8x5x4xf32, #tpu.memory_space<vmem>>, vector<1x5x4xf32>
        %90 = vector.shape_cast %89 : vector<1x5x4xf32> to vector<5x4xf32>
        %91 = vector.shape_cast %88 : vector<5x4xf32> to vector<1x5x4xf32>
        tpu.vector_store %arg6[%c0_48, %c0_49, %c0_50], %91 {strides = array<i32>} : memref<8x5x4xf32, #tpu.memory_space<vmem>>, vector<1x5x4xf32>,
      } else {
      }
      %c1_i32 = arith.constant 1 : i32
      %25 = arith.addi %0, %c1_i32 : i32
      %c8_i32_13 = arith.constant 8 : i32
      %26 = arith.cmpi sge, %25, %c8_i32_13 : i32
      %c16_i32_14 = arith.constant 16 : i32
      %27 = arith.cmpi slt, %25, %c16_i32_14 : i32
      %28 = arith.andi %26, %27 : i1
      %29 = arith.extui %28 : i1 to i32
      %c0_i32_15 = arith.constant 0 : i32
      %30 = arith.cmpi ne, %29, %c0_i32_15 : i32
      scf.if %30 {
        %c8_i32_48 = arith.constant 8 : i32
        %88 = arith.subi %25, %c8_i32_48 : i32
        %89 = arith.index_cast %88 : i32 to index
        %c0_49 = arith.constant 0 : index
        %90 = vector.load %arg2[%89, %c0_49] : memref<16x4xf32, #tpu.memory_space<vmem>>, vector<8x4xf32>
        %c1 = arith.constant 1 : index
        %c0_50 = arith.constant 0 : index
        %c0_51 = arith.constant 0 : index
        %91 = vector.load %arg3[%c1, %c0_50, %c0_51] : memref<8x8x4xf32, #tpu.memory_space<vmem>>, vector<1x8x4xf32>
        %92 = vector.shape_cast %91 : vector<1x8x4xf32> to vector<8x4xf32>
        %93 = arith.mulf %90, %92 : vector<8x4xf32>
        %cst = arith.constant dense<0.000000e+00> : vector<4xf32>
        %94 = vector.multi_reduction <add>, %93, %cst [0] : vector<8x4xf32> to vector<4xf32>
        %95 = vector.shape_cast %94 : vector<4xf32> to vector<1x4xf32>
        %cst_52 = arith.constant dense<0.000000e+00> : vector<3x4xf32>
        %96 = tpu.matmul %1, %93, %cst_52 {dimension_numbers = #tpu.dot_dimension_numbers<[1], [0], [0], [1], [0, 0, 1, 1], [], []>} : vector<3x8xf32>, vector<8x4xf32>, vector<3x4xf32> -> vector<3x4xf32>
        %c1_53 = arith.constant 1 : index
        %c0_54 = arith.constant 0 : index
        %97 = vector.load %arg4[%c1_53, %c0_54] : memref<8x4xf32, #tpu.memory_space<vmem>>, vector<1x4xf32>
        %98 = arith.mulf %95, %97 : vector<1x4xf32>
        %cst_55 = arith.constant 0.000000e+00 : f32
        %99 = vector.broadcast %cst_55 : f32 to vector<1x4xf32>
        %100 = tpu.reciprocal %95 {approx = true} : vector<1x4xf32> -> vector<1x4xf32>
        %101 = vector.broadcast %100 : vector<1x4xf32> to vector<3x4xf32>
        %102 = arith.mulf %96, %101 : vector<3x4xf32>
        %103 = tpu.concatenate %98, %99, %102 in 0 : vector<1x4xf32>, vector<1x4xf32>, vector<3x4xf32> -> vector<5x4xf32>
        %c1_56 = arith.constant 1 : index
        %c0_57 = arith.constant 0 : index
        %c0_58 = arith.constant 0 : index
        %104 = vector.load %arg6[%c1_56, %c0_57, %c0_58] : memref<8x5x4xf32, #tpu.memory_space<vmem>>, vector<1x5x4xf32>
        %105 = vector.shape_cast %104 : vector<1x5x4xf32> to vector<5x4xf32>
        %106 = vector.shape_cast %103 : vector<5x4xf32> to vector<1x5x4xf32>
        tpu.vector_store %arg6[%c1_56, %c0_57, %c0_58], %106 {strides = array<i32>} : memref<8x5x4xf32, #tpu.memory_space<vmem>>, vector<1x5x4xf32>,
      } else {
      }
      %true_16 = arith.constant true
      %31 = arith.xori %28, %true_16 : i1
      %32 = arith.extui %31 : i1 to i32
      %c0_i32_17 = arith.constant 0 : i32
      %33 = arith.cmpi ne, %32, %c0_i32_17 : i32
      scf.if %33 {
        %cst = arith.constant 0.000000e+00 : f32
        %88 = vector.broadcast %cst : f32 to vector<5x4xf32>
        %c1 = arith.constant 1 : index
        %c0_48 = arith.constant 0 : index
        %c0_49 = arith.constant 0 : index
        %89 = vector.load %arg6[%c1, %c0_48, %c0_49] : memref<8x5x4xf32, #tpu.memory_space<vmem>>, vector<1x5x4xf32>
        %90 = vector.shape_cast %89 : vector<1x5x4xf32> to vector<5x4xf32>
        %91 = vector.shape_cast %88 : vector<5x4xf32> to vector<1x5x4xf32>
        tpu.vector_store %arg6[%c1, %c0_48, %c0_49], %91 {strides = array<i32>} : memref<8x5x4xf32, #tpu.memory_space<vmem>>, vector<1x5x4xf32>,
      } else {
      }
      %c2_i32 = arith.constant 2 : i32
      %34 = arith.addi %0, %c2_i32 : i32
      %c8_i32_18 = arith.constant 8 : i32
      %35 = arith.cmpi sge, %34, %c8_i32_18 : i32
      %c16_i32_19 = arith.constant 16 : i32
      %36 = arith.cmpi slt, %34, %c16_i32_19 : i32
      %37 = arith.andi %35, %36 : i1
      %38 = arith.extui %37 : i1 to i32
      %c0_i32_20 = arith.constant 0 : i32
      %39 = arith.cmpi ne, %38, %c0_i32_20 : i32
      scf.if %39 {
        %c8_i32_48 = arith.constant 8 : i32
        %88 = arith.subi %34, %c8_i32_48 : i32
        %89 = arith.index_cast %88 : i32 to index
        %c0_49 = arith.constant 0 : index
        %90 = vector.load %arg2[%89, %c0_49] : memref<16x4xf32, #tpu.memory_space<vmem>>, vector<8x4xf32>
        %c2 = arith.constant 2 : index
        %c0_50 = arith.constant 0 : index
        %c0_51 = arith.constant 0 : index
        %91 = vector.load %arg3[%c2, %c0_50, %c0_51] : memref<8x8x4xf32, #tpu.memory_space<vmem>>, vector<1x8x4xf32>
        %92 = vector.shape_cast %91 : vector<1x8x4xf32> to vector<8x4xf32>
        %93 = arith.mulf %90, %92 : vector<8x4xf32>
        %cst = arith.constant dense<0.000000e+00> : vector<4xf32>
        %94 = vector.multi_reduction <add>, %93, %cst [0] : vector<8x4xf32> to vector<4xf32>
        %95 = vector.shape_cast %94 : vector<4xf32> to vector<1x4xf32>
        %cst_52 = arith.constant dense<0.000000e+00> : vector<3x4xf32>
        %96 = tpu.matmul %1, %93, %cst_52 {dimension_numbers = #tpu.dot_dimension_numbers<[1], [0], [0], [1], [0, 0, 1, 1], [], []>} : vector<3x8xf32>, vector<8x4xf32>, vector<3x4xf32> -> vector<3x4xf32>
        %c2_53 = arith.constant 2 : index
        %c0_54 = arith.constant 0 : index
        %97 = vector.load %arg4[%c2_53, %c0_54] : memref<8x4xf32, #tpu.memory_space<vmem>>, vector<1x4xf32>
        %98 = arith.mulf %95, %97 : vector<1x4xf32>
        %cst_55 = arith.constant 0.000000e+00 : f32
        %99 = vector.broadcast %cst_55 : f32 to vector<1x4xf32>
        %100 = tpu.reciprocal %95 {approx = true} : vector<1x4xf32> -> vector<1x4xf32>
        %101 = vector.broadcast %100 : vector<1x4xf32> to vector<3x4xf32>
        %102 = arith.mulf %96, %101 : vector<3x4xf32>
        %103 = tpu.concatenate %98, %99, %102 in 0 : vector<1x4xf32>, vector<1x4xf32>, vector<3x4xf32> -> vector<5x4xf32>
        %c2_56 = arith.constant 2 : index
        %c0_57 = arith.constant 0 : index
        %c0_58 = arith.constant 0 : index
        %104 = vector.load %arg6[%c2_56, %c0_57, %c0_58] : memref<8x5x4xf32, #tpu.memory_space<vmem>>, vector<1x5x4xf32>
        %105 = vector.shape_cast %104 : vector<1x5x4xf32> to vector<5x4xf32>
        %106 = vector.shape_cast %103 : vector<5x4xf32> to vector<1x5x4xf32>
        tpu.vector_store %arg6[%c2_56, %c0_57, %c0_58], %106 {strides = array<i32>} : memref<8x5x4xf32, #tpu.memory_space<vmem>>, vector<1x5x4xf32>,
      } else {
      }
      %true_21 = arith.constant true
      %40 = arith.xori %37, %true_21 : i1
      %41 = arith.extui %40 : i1 to i32
      %c0_i32_22 = arith.constant 0 : i32
      %42 = arith.cmpi ne, %41, %c0_i32_22 : i32
      scf.if %42 {
        %cst = arith.constant 0.000000e+00 : f32
        %88 = vector.broadcast %cst : f32 to vector<5x4xf32>
        %c2 = arith.constant 2 : index
        %c0_48 = arith.constant 0 : index
        %c0_49 = arith.constant 0 : index
        %89 = vector.load %arg6[%c2, %c0_48, %c0_49] : memref<8x5x4xf32, #tpu.memory_space<vmem>>, vector<1x5x4xf32>
        %90 = vector.shape_cast %89 : vector<1x5x4xf32> to vector<5x4xf32>
        %91 = vector.shape_cast %88 : vector<5x4xf32> to vector<1x5x4xf32>
        tpu.vector_store %arg6[%c2, %c0_48, %c0_49], %91 {strides = array<i32>} : memref<8x5x4xf32, #tpu.memory_space<vmem>>, vector<1x5x4xf32>,
      } else {
      }
      %c3_i32 = arith.constant 3 : i32
      %43 = arith.addi %0, %c3_i32 : i32
      %c8_i32_23 = arith.constant 8 : i32
      %44 = arith.cmpi sge, %43, %c8_i32_23 : i32
      %c16_i32_24 = arith.constant 16 : i32
      %45 = arith.cmpi slt, %43, %c16_i32_24 : i32
      %46 = arith.andi %44, %45 : i1
      %47 = arith.extui %46 : i1 to i32
      %c0_i32_25 = arith.constant 0 : i32
      %48 = arith.cmpi ne, %47, %c0_i32_25 : i32
      scf.if %48 {
        %c8_i32_48 = arith.constant 8 : i32
        %88 = arith.subi %43, %c8_i32_48 : i32
        %89 = arith.index_cast %88 : i32 to index
        %c0_49 = arith.constant 0 : index
        %90 = vector.load %arg2[%89, %c0_49] : memref<16x4xf32, #tpu.memory_space<vmem>>, vector<8x4xf32>
        %c3 = arith.constant 3 : index
        %c0_50 = arith.constant 0 : index
        %c0_51 = arith.constant 0 : index
        %91 = vector.load %arg3[%c3, %c0_50, %c0_51] : memref<8x8x4xf32, #tpu.memory_space<vmem>>, vector<1x8x4xf32>
        %92 = vector.shape_cast %91 : vector<1x8x4xf32> to vector<8x4xf32>
        %93 = arith.mulf %90, %92 : vector<8x4xf32>
        %cst = arith.constant dense<0.000000e+00> : vector<4xf32>
        %94 = vector.multi_reduction <add>, %93, %cst [0] : vector<8x4xf32> to vector<4xf32>
        %95 = vector.shape_cast %94 : vector<4xf32> to vector<1x4xf32>
        %cst_52 = arith.constant dense<0.000000e+00> : vector<3x4xf32>
        %96 = tpu.matmul %1, %93, %cst_52 {dimension_numbers = #tpu.dot_dimension_numbers<[1], [0], [0], [1], [0, 0, 1, 1], [], []>} : vector<3x8xf32>, vector<8x4xf32>, vector<3x4xf32> -> vector<3x4xf32>
        %c3_53 = arith.constant 3 : index
        %c0_54 = arith.constant 0 : index
        %97 = vector.load %arg4[%c3_53, %c0_54] : memref<8x4xf32, #tpu.memory_space<vmem>>, vector<1x4xf32>
        %98 = arith.mulf %95, %97 : vector<1x4xf32>
        %cst_55 = arith.constant 0.000000e+00 : f32
        %99 = vector.broadcast %cst_55 : f32 to vector<1x4xf32>
        %100 = tpu.reciprocal %95 {approx = true} : vector<1x4xf32> -> vector<1x4xf32>
        %101 = vector.broadcast %100 : vector<1x4xf32> to vector<3x4xf32>
        %102 = arith.mulf %96, %101 : vector<3x4xf32>
        %103 = tpu.concatenate %98, %99, %102 in 0 : vector<1x4xf32>, vector<1x4xf32>, vector<3x4xf32> -> vector<5x4xf32>
        %c3_56 = arith.constant 3 : index
        %c0_57 = arith.constant 0 : index
        %c0_58 = arith.constant 0 : index
        %104 = vector.load %arg6[%c3_56, %c0_57, %c0_58] : memref<8x5x4xf32, #tpu.memory_space<vmem>>, vector<1x5x4xf32>
        %105 = vector.shape_cast %104 : vector<1x5x4xf32> to vector<5x4xf32>
        %106 = vector.shape_cast %103 : vector<5x4xf32> to vector<1x5x4xf32>
        tpu.vector_store %arg6[%c3_56, %c0_57, %c0_58], %106 {strides = array<i32>} : memref<8x5x4xf32, #tpu.memory_space<vmem>>, vector<1x5x4xf32>,
      } else {
      }
      %true_26 = arith.constant true
      %49 = arith.xori %46, %true_26 : i1
      %50 = arith.extui %49 : i1 to i32
      %c0_i32_27 = arith.constant 0 : i32
      %51 = arith.cmpi ne, %50, %c0_i32_27 : i32
      scf.if %51 {
        %cst = arith.constant 0.000000e+00 : f32
        %88 = vector.broadcast %cst : f32 to vector<5x4xf32>
        %c3 = arith.constant 3 : index
        %c0_48 = arith.constant 0 : index
        %c0_49 = arith.constant 0 : index
        %89 = vector.load %arg6[%c3, %c0_48, %c0_49] : memref<8x5x4xf32, #tpu.memory_space<vmem>>, vector<1x5x4xf32>
        %90 = vector.shape_cast %89 : vector<1x5x4xf32> to vector<5x4xf32>
        %91 = vector.shape_cast %88 : vector<5x4xf32> to vector<1x5x4xf32>
        tpu.vector_store %arg6[%c3, %c0_48, %c0_49], %91 {strides = array<i32>} : memref<8x5x4xf32, #tpu.memory_space<vmem>>, vector<1x5x4xf32>,
      } else {
      }
      %c4_i32 = arith.constant 4 : i32
      %52 = arith.addi %0, %c4_i32 : i32
      %c8_i32_28 = arith.constant 8 : i32
      %53 = arith.cmpi sge, %52, %c8_i32_28 : i32
      %c16_i32_29 = arith.constant 16 : i32
      %54 = arith.cmpi slt, %52, %c16_i32_29 : i32
      %55 = arith.andi %53, %54 : i1
      %56 = arith.extui %55 : i1 to i32
      %c0_i32_30 = arith.constant 0 : i32
      %57 = arith.cmpi ne, %56, %c0_i32_30 : i32
      scf.if %57 {
        %c8_i32_48 = arith.constant 8 : i32
        %88 = arith.subi %52, %c8_i32_48 : i32
        %89 = arith.index_cast %88 : i32 to index
        %c0_49 = arith.constant 0 : index
        %90 = vector.load %arg2[%89, %c0_49] : memref<16x4xf32, #tpu.memory_space<vmem>>, vector<8x4xf32>
        %c4 = arith.constant 4 : index
        %c0_50 = arith.constant 0 : index
        %c0_51 = arith.constant 0 : index
        %91 = vector.load %arg3[%c4, %c0_50, %c0_51] : memref<8x8x4xf32, #tpu.memory_space<vmem>>, vector<1x8x4xf32>
        %92 = vector.shape_cast %91 : vector<1x8x4xf32> to vector<8x4xf32>
        %93 = arith.mulf %90, %92 : vector<8x4xf32>
        %cst = arith.constant dense<0.000000e+00> : vector<4xf32>
        %94 = vector.multi_reduction <add>, %93, %cst [0] : vector<8x4xf32> to vector<4xf32>
        %95 = vector.shape_cast %94 : vector<4xf32> to vector<1x4xf32>
        %cst_52 = arith.constant dense<0.000000e+00> : vector<3x4xf32>
        %96 = tpu.matmul %1, %93, %cst_52 {dimension_numbers = #tpu.dot_dimension_numbers<[1], [0], [0], [1], [0, 0, 1, 1], [], []>} : vector<3x8xf32>, vector<8x4xf32>, vector<3x4xf32> -> vector<3x4xf32>
        %c4_53 = arith.constant 4 : index
        %c0_54 = arith.constant 0 : index
        %97 = vector.load %arg4[%c4_53, %c0_54] : memref<8x4xf32, #tpu.memory_space<vmem>>, vector<1x4xf32>
        %98 = arith.mulf %95, %97 : vector<1x4xf32>
        %cst_55 = arith.constant 0.000000e+00 : f32
        %99 = vector.broadcast %cst_55 : f32 to vector<1x4xf32>
        %100 = tpu.reciprocal %95 {approx = true} : vector<1x4xf32> -> vector<1x4xf32>
        %101 = vector.broadcast %100 : vector<1x4xf32> to vector<3x4xf32>
        %102 = arith.mulf %96, %101 : vector<3x4xf32>
        %103 = tpu.concatenate %98, %99, %102 in 0 : vector<1x4xf32>, vector<1x4xf32>, vector<3x4xf32> -> vector<5x4xf32>
        %c4_56 = arith.constant 4 : index
        %c0_57 = arith.constant 0 : index
        %c0_58 = arith.constant 0 : index
        %104 = vector.load %arg6[%c4_56, %c0_57, %c0_58] : memref<8x5x4xf32, #tpu.memory_space<vmem>>, vector<1x5x4xf32>
        %105 = vector.shape_cast %104 : vector<1x5x4xf32> to vector<5x4xf32>
        %106 = vector.shape_cast %103 : vector<5x4xf32> to vector<1x5x4xf32>
        tpu.vector_store %arg6[%c4_56, %c0_57, %c0_58], %106 {strides = array<i32>} : memref<8x5x4xf32, #tpu.memory_space<vmem>>, vector<1x5x4xf32>,
      } else {
      }
      %true_31 = arith.constant true
      %58 = arith.xori %55, %true_31 : i1
      %59 = arith.extui %58 : i1 to i32
      %c0_i32_32 = arith.constant 0 : i32
      %60 = arith.cmpi ne, %59, %c0_i32_32 : i32
      scf.if %60 {
        %cst = arith.constant 0.000000e+00 : f32
        %88 = vector.broadcast %cst : f32 to vector<5x4xf32>
        %c4 = arith.constant 4 : index
        %c0_48 = arith.constant 0 : index
        %c0_49 = arith.constant 0 : index
        %89 = vector.load %arg6[%c4, %c0_48, %c0_49] : memref<8x5x4xf32, #tpu.memory_space<vmem>>, vector<1x5x4xf32>
        %90 = vector.shape_cast %89 : vector<1x5x4xf32> to vector<5x4xf32>
        %91 = vector.shape_cast %88 : vector<5x4xf32> to vector<1x5x4xf32>
        tpu.vector_store %arg6[%c4, %c0_48, %c0_49], %91 {strides = array<i32>} : memref<8x5x4xf32, #tpu.memory_space<vmem>>, vector<1x5x4xf32>,
      } else {
      }
      %c5_i32 = arith.constant 5 : i32
      %61 = arith.addi %0, %c5_i32 : i32
      %c8_i32_33 = arith.constant 8 : i32
      %62 = arith.cmpi sge, %61, %c8_i32_33 : i32
      %c16_i32_34 = arith.constant 16 : i32
      %63 = arith.cmpi slt, %61, %c16_i32_34 : i32
      %64 = arith.andi %62, %63 : i1
      %65 = arith.extui %64 : i1 to i32
      %c0_i32_35 = arith.constant 0 : i32
      %66 = arith.cmpi ne, %65, %c0_i32_35 : i32
      scf.if %66 {
        %c8_i32_48 = arith.constant 8 : i32
        %88 = arith.subi %61, %c8_i32_48 : i32
        %89 = arith.index_cast %88 : i32 to index
        %c0_49 = arith.constant 0 : index
        %90 = vector.load %arg2[%89, %c0_49] : memref<16x4xf32, #tpu.memory_space<vmem>>, vector<8x4xf32>
        %c5 = arith.constant 5 : index
        %c0_50 = arith.constant 0 : index
        %c0_51 = arith.constant 0 : index
        %91 = vector.load %arg3[%c5, %c0_50, %c0_51] : memref<8x8x4xf32, #tpu.memory_space<vmem>>, vector<1x8x4xf32>
        %92 = vector.shape_cast %91 : vector<1x8x4xf32> to vector<8x4xf32>
        %93 = arith.mulf %90, %92 : vector<8x4xf32>
        %cst = arith.constant dense<0.000000e+00> : vector<4xf32>
        %94 = vector.multi_reduction <add>, %93, %cst [0] : vector<8x4xf32> to vector<4xf32>
        %95 = vector.shape_cast %94 : vector<4xf32> to vector<1x4xf32>
        %cst_52 = arith.constant dense<0.000000e+00> : vector<3x4xf32>
        %96 = tpu.matmul %1, %93, %cst_52 {dimension_numbers = #tpu.dot_dimension_numbers<[1], [0], [0], [1], [0, 0, 1, 1], [], []>} : vector<3x8xf32>, vector<8x4xf32>, vector<3x4xf32> -> vector<3x4xf32>
        %c5_53 = arith.constant 5 : index
        %c0_54 = arith.constant 0 : index
        %97 = vector.load %arg4[%c5_53, %c0_54] : memref<8x4xf32, #tpu.memory_space<vmem>>, vector<1x4xf32>
        %98 = arith.mulf %95, %97 : vector<1x4xf32>
        %cst_55 = arith.constant 0.000000e+00 : f32
        %99 = vector.broadcast %cst_55 : f32 to vector<1x4xf32>
        %100 = tpu.reciprocal %95 {approx = true} : vector<1x4xf32> -> vector<1x4xf32>
        %101 = vector.broadcast %100 : vector<1x4xf32> to vector<3x4xf32>
        %102 = arith.mulf %96, %101 : vector<3x4xf32>
        %103 = tpu.concatenate %98, %99, %102 in 0 : vector<1x4xf32>, vector<1x4xf32>, vector<3x4xf32> -> vector<5x4xf32>
        %c5_56 = arith.constant 5 : index
        %c0_57 = arith.constant 0 : index
        %c0_58 = arith.constant 0 : index
        %104 = vector.load %arg6[%c5_56, %c0_57, %c0_58] : memref<8x5x4xf32, #tpu.memory_space<vmem>>, vector<1x5x4xf32>
        %105 = vector.shape_cast %104 : vector<1x5x4xf32> to vector<5x4xf32>
        %106 = vector.shape_cast %103 : vector<5x4xf32> to vector<1x5x4xf32>
        tpu.vector_store %arg6[%c5_56, %c0_57, %c0_58], %106 {strides = array<i32>} : memref<8x5x4xf32, #tpu.memory_space<vmem>>, vector<1x5x4xf32>,
      } else {
      }
      %true_36 = arith.constant true
      %67 = arith.xori %64, %true_36 : i1
      %68 = arith.extui %67 : i1 to i32
      %c0_i32_37 = arith.constant 0 : i32
      %69 = arith.cmpi ne, %68, %c0_i32_37 : i32
      scf.if %69 {
        %cst = arith.constant 0.000000e+00 : f32
        %88 = vector.broadcast %cst : f32 to vector<5x4xf32>
        %c5 = arith.constant 5 : index
        %c0_48 = arith.constant 0 : index
        %c0_49 = arith.constant 0 : index
        %89 = vector.load %arg6[%c5, %c0_48, %c0_49] : memref<8x5x4xf32, #tpu.memory_space<vmem>>, vector<1x5x4xf32>
        %90 = vector.shape_cast %89 : vector<1x5x4xf32> to vector<5x4xf32>
        %91 = vector.shape_cast %88 : vector<5x4xf32> to vector<1x5x4xf32>
        tpu.vector_store %arg6[%c5, %c0_48, %c0_49], %91 {strides = array<i32>} : memref<8x5x4xf32, #tpu.memory_space<vmem>>, vector<1x5x4xf32>,
      } else {
      }
      %c6_i32 = arith.constant 6 : i32
      %70 = arith.addi %0, %c6_i32 : i32
      %c8_i32_38 = arith.constant 8 : i32
      %71 = arith.cmpi sge, %70, %c8_i32_38 : i32
      %c16_i32_39 = arith.constant 16 : i32
      %72 = arith.cmpi slt, %70, %c16_i32_39 : i32
      %73 = arith.andi %71, %72 : i1
      %74 = arith.extui %73 : i1 to i32
      %c0_i32_40 = arith.constant 0 : i32
      %75 = arith.cmpi ne, %74, %c0_i32_40 : i32
      scf.if %75 {
        %c8_i32_48 = arith.constant 8 : i32
        %88 = arith.subi %70, %c8_i32_48 : i32
        %89 = arith.index_cast %88 : i32 to index
        %c0_49 = arith.constant 0 : index
        %90 = vector.load %arg2[%89, %c0_49] : memref<16x4xf32, #tpu.memory_space<vmem>>, vector<8x4xf32>
        %c6 = arith.constant 6 : index
        %c0_50 = arith.constant 0 : index
        %c0_51 = arith.constant 0 : index
        %91 = vector.load %arg3[%c6, %c0_50, %c0_51] : memref<8x8x4xf32, #tpu.memory_space<vmem>>, vector<1x8x4xf32>
        %92 = vector.shape_cast %91 : vector<1x8x4xf32> to vector<8x4xf32>
        %93 = arith.mulf %90, %92 : vector<8x4xf32>
        %cst = arith.constant dense<0.000000e+00> : vector<4xf32>
        %94 = vector.multi_reduction <add>, %93, %cst [0] : vector<8x4xf32> to vector<4xf32>
        %95 = vector.shape_cast %94 : vector<4xf32> to vector<1x4xf32>
        %cst_52 = arith.constant dense<0.000000e+00> : vector<3x4xf32>
        %96 = tpu.matmul %1, %93, %cst_52 {dimension_numbers = #tpu.dot_dimension_numbers<[1], [0], [0], [1], [0, 0, 1, 1], [], []>} : vector<3x8xf32>, vector<8x4xf32>, vector<3x4xf32> -> vector<3x4xf32>
        %c6_53 = arith.constant 6 : index
        %c0_54 = arith.constant 0 : index
        %97 = vector.load %arg4[%c6_53, %c0_54] : memref<8x4xf32, #tpu.memory_space<vmem>>, vector<1x4xf32>
        %98 = arith.mulf %95, %97 : vector<1x4xf32>
        %cst_55 = arith.constant 0.000000e+00 : f32
        %99 = vector.broadcast %cst_55 : f32 to vector<1x4xf32>
        %100 = tpu.reciprocal %95 {approx = true} : vector<1x4xf32> -> vector<1x4xf32>
        %101 = vector.broadcast %100 : vector<1x4xf32> to vector<3x4xf32>
        %102 = arith.mulf %96, %101 : vector<3x4xf32>
        %103 = tpu.concatenate %98, %99, %102 in 0 : vector<1x4xf32>, vector<1x4xf32>, vector<3x4xf32> -> vector<5x4xf32>
        %c6_56 = arith.constant 6 : index
        %c0_57 = arith.constant 0 : index
        %c0_58 = arith.constant 0 : index
        %104 = vector.load %arg6[%c6_56, %c0_57, %c0_58] : memref<8x5x4xf32, #tpu.memory_space<vmem>>, vector<1x5x4xf32>
        %105 = vector.shape_cast %104 : vector<1x5x4xf32> to vector<5x4xf32>
        %106 = vector.shape_cast %103 : vector<5x4xf32> to vector<1x5x4xf32>
        tpu.vector_store %arg6[%c6_56, %c0_57, %c0_58], %106 {strides = array<i32>} : memref<8x5x4xf32, #tpu.memory_space<vmem>>, vector<1x5x4xf32>,
      } else {
      }
      %true_41 = arith.constant true
      %76 = arith.xori %73, %true_41 : i1
      %77 = arith.extui %76 : i1 to i32
      %c0_i32_42 = arith.constant 0 : i32
      %78 = arith.cmpi ne, %77, %c0_i32_42 : i32
      scf.if %78 {
        %cst = arith.constant 0.000000e+00 : f32
        %88 = vector.broadcast %cst : f32 to vector<5x4xf32>
        %c6 = arith.constant 6 : index
        %c0_48 = arith.constant 0 : index
        %c0_49 = arith.constant 0 : index
        %89 = vector.load %arg6[%c6, %c0_48, %c0_49] : memref<8x5x4xf32, #tpu.memory_space<vmem>>, vector<1x5x4xf32>
        %90 = vector.shape_cast %89 : vector<1x5x4xf32> to vector<5x4xf32>
        %91 = vector.shape_cast %88 : vector<5x4xf32> to vector<1x5x4xf32>
        tpu.vector_store %arg6[%c6, %c0_48, %c0_49], %91 {strides = array<i32>} : memref<8x5x4xf32, #tpu.memory_space<vmem>>, vector<1x5x4xf32>,
      } else {
      }
      %c7_i32 = arith.constant 7 : i32
      %79 = arith.addi %0, %c7_i32 : i32
      %c8_i32_43 = arith.constant 8 : i32
      %80 = arith.cmpi sge, %79, %c8_i32_43 : i32
      %c16_i32_44 = arith.constant 16 : i32
      %81 = arith.cmpi slt, %79, %c16_i32_44 : i32
      %82 = arith.andi %80, %81 : i1
      %83 = arith.extui %82 : i1 to i32
      %c0_i32_45 = arith.constant 0 : i32
      %84 = arith.cmpi ne, %83, %c0_i32_45 : i32
      scf.if %84 {
        %c8_i32_48 = arith.constant 8 : i32
        %88 = arith.subi %79, %c8_i32_48 : i32
        %89 = arith.index_cast %88 : i32 to index
        %c0_49 = arith.constant 0 : index
        %90 = vector.load %arg2[%89, %c0_49] : memref<16x4xf32, #tpu.memory_space<vmem>>, vector<8x4xf32>
        %c7 = arith.constant 7 : index
        %c0_50 = arith.constant 0 : index
        %c0_51 = arith.constant 0 : index
        %91 = vector.load %arg3[%c7, %c0_50, %c0_51] : memref<8x8x4xf32, #tpu.memory_space<vmem>>, vector<1x8x4xf32>
        %92 = vector.shape_cast %91 : vector<1x8x4xf32> to vector<8x4xf32>
        %93 = arith.mulf %90, %92 : vector<8x4xf32>
        %cst = arith.constant dense<0.000000e+00> : vector<4xf32>
        %94 = vector.multi_reduction <add>, %93, %cst [0] : vector<8x4xf32> to vector<4xf32>
        %95 = vector.shape_cast %94 : vector<4xf32> to vector<1x4xf32>
        %cst_52 = arith.constant dense<0.000000e+00> : vector<3x4xf32>
        %96 = tpu.matmul %1, %93, %cst_52 {dimension_numbers = #tpu.dot_dimension_numbers<[1], [0], [0], [1], [0, 0, 1, 1], [], []>} : vector<3x8xf32>, vector<8x4xf32>, vector<3x4xf32> -> vector<3x4xf32>
        %c7_53 = arith.constant 7 : index
        %c0_54 = arith.constant 0 : index
        %97 = vector.load %arg4[%c7_53, %c0_54] : memref<8x4xf32, #tpu.memory_space<vmem>>, vector<1x4xf32>
        %98 = arith.mulf %95, %97 : vector<1x4xf32>
        %cst_55 = arith.constant 0.000000e+00 : f32
        %99 = vector.broadcast %cst_55 : f32 to vector<1x4xf32>
        %100 = tpu.reciprocal %95 {approx = true} : vector<1x4xf32> -> vector<1x4xf32>
        %101 = vector.broadcast %100 : vector<1x4xf32> to vector<3x4xf32>
        %102 = arith.mulf %96, %101 : vector<3x4xf32>
        %103 = tpu.concatenate %98, %99, %102 in 0 : vector<1x4xf32>, vector<1x4xf32>, vector<3x4xf32> -> vector<5x4xf32>
        %c7_56 = arith.constant 7 : index
        %c0_57 = arith.constant 0 : index
        %c0_58 = arith.constant 0 : index
        %104 = vector.load %arg6[%c7_56, %c0_57, %c0_58] : memref<8x5x4xf32, #tpu.memory_space<vmem>>, vector<1x5x4xf32>
        %105 = vector.shape_cast %104 : vector<1x5x4xf32> to vector<5x4xf32>
        %106 = vector.shape_cast %103 : vector<5x4xf32> to vector<1x5x4xf32>
        tpu.vector_store %arg6[%c7_56, %c0_57, %c0_58], %106 {strides = array<i32>} : memref<8x5x4xf32, #tpu.memory_space<vmem>>, vector<1x5x4xf32>,
      } else {
      }
      %true_46 = arith.constant true
      %85 = arith.xori %82, %true_46 : i1
      %86 = arith.extui %85 : i1 to i32
      %c0_i32_47 = arith.constant 0 : i32
      %87 = arith.cmpi ne, %86, %c0_i32_47 : i32
      scf.if %87 {
        %cst = arith.constant 0.000000e+00 : f32
        %88 = vector.broadcast %cst : f32 to vector<5x4xf32>
        %c7 = arith.constant 7 : index
        %c0_48 = arith.constant 0 : index
        %c0_49 = arith.constant 0 : index
        %89 = vector.load %arg6[%c7, %c0_48, %c0_49] : memref<8x5x4xf32, #tpu.memory_space<vmem>>, vector<1x5x4xf32>
        %90 = vector.shape_cast %89 : vector<1x5x4xf32> to vector<5x4xf32>
        %91 = vector.shape_cast %88 : vector<5x4xf32> to vector<1x5x4xf32>
        tpu.vector_store %arg6[%c7, %c0_48, %c0_49], %91 {strides = array<i32>} : memref<8x5x4xf32, #tpu.memory_space<vmem>>, vector<1x5x4xf32>,
      } else {
      }
    } else {
    }
    return
  }
  func.func @transform_0(%arg0: i32, %arg1: i32) -> (i32, i32) {
    %c0_i32 = arith.constant 0 : i32
    %c0_i32_0 = arith.constant 0 : i32
    return %c0_i32, %arg0 : i32, i32
  }
  func.func @transform_1(%arg0: i32, %arg1: i32) -> (i32, i32, i32) {
    %c0_i32 = arith.constant 0 : i32
    %c0_i32_0 = arith.constant 0 : i32
    return %arg1, %c0_i32, %arg0 : i32, i32, i32
  }
  func.func @transform_2(%arg0: i32, %arg1: i32) -> (i32, i32) {
    %c0_i32 = arith.constant 0 : i32
    return %arg1, %arg0 : i32, i32
  }
  func.func @transform_3(%arg0: i32, %arg1: i32) -> (i32, i32) {
    %c0_i32 = arith.constant 0 : i32
    %c0_i32_0 = arith.constant 0 : i32
    %c0_i32_1 = arith.constant 0 : i32
    return %c0_i32, %c0_i32_0 : i32, i32
  }
  func.func @transform_4(%arg0: i32, %arg1: i32) -> (i32, i32, i32) {
    %c0_i32 = arith.constant 0 : i32
    %c0_i32_0 = arith.constant 0 : i32
    return %arg1, %c0_i32, %arg0 : i32, i32, i32
  }
}

</mosaic_0001>

<bundles_post_ra>
// kernel: age_lstm2_forward.3
= control target key start
LH: loop header
LB: loop body
LE: loop exit
PB: predicated region body
PF: predicated region fallthrough
CT: control target
= control target key end

     0   :  { %s2501_s15 = smov 0   ;;  %s2503_s16 = smov 0   ;;  %s2928_s0 = inlined_call_operand.vmem [shape: f32[16,4], index: 0, kind: input, shape index: {}]   ;;  %s2929_s1 = inlined_call_operand.vmem [shape: f32[16,8,4], index: 1, kind: input, shape index: {}]   ;;  %s2930_s2 = inlined_call_operand.vmem [shape: f32[16,4], index: 2, kind: input, shape index: {}]   ;;  %s2931_s3 = inlined_call_operand.vmem [shape: f32[3,8], index: 3, kind: input, shape index: {}]   ;;  %s2932_s4 = inlined_call_operand.vmem [shape: f32[16,5,4], index: 4, kind: output, shape index: {}]  }
   0x1   :  { %s2505_s17 = smov 0  }
   0x2 LB: > { %s23_s18 = sadd.s32 1, %s2443_s16  ;;  %p2137_p0 = scmp.ge.s32.totalorder %s2447_s17, 1  ;;  %s2447_s17 = sphi %s2505_s17, %s14_s17   ;;  %s2443_s16 = sphi %s2503_s16, %s2950_s16   ;;  %s2439_s15 = sphi %s2501_s15, %s2949_s15  }
   0x3   : > { %p24_p1 = scmp.ge.s32.totalorder %s23_s18, 2  ;;  %p205_p2 = scmp.lt.s32.totalorder %s2447_s17, 3 }
   0x5   : > { %s2952_s18 = smov (%p24_p1, %s23_s18), 0  ;;  %p206_p3 = pnand %p2137_p0, %p205_p2 }
   0x6   : > { %s2519_s19 = sshll.u32 (!%p206_p3), %s2439_s15, 3  ;;  %p261_p4 = scmp.lt.s32.totalorder (!%p206_p3), %s2439_s15, 1  ;;  %v2524_v0 = vld [vmem:[%s2931_s3] sm:$0x7] (!%p206_p3) }
   0x7   : > { %209 = sbr.rel (%p206_p3) target bundleno = 2136 (0x858), region = 36  ;;  %p253_p5 = scmp.lt.s32.totalorder (!%p206_p3), %s2519_s19, 15 }
   0x8   : > { %s2528_s22 = sadd.s32 (!%p206_p3), 8, %s2519_s19  ;;  %p281_p7 = scmp.ge.s32.totalorder (!%p206_p3), %s2519_s19, 8 }
   0x9   : > { %p280_p6 = scmp.le.s32.totalorder (!%p206_p3), %s2528_s22, 8  ;;  %p282_p8 = scmp.le.s32.totalorder (!%p206_p3), %s2528_s22, 16 }
   0xa   : > { %p2144_p11 = scmp.gt.s32.totalorder (!%p206_p3), %s2528_s22, 8 }
   0xb   : > { %p2551_p9 = pnand (!%p206_p3), %p282_p8, %p281_p7 }
   0xd   : > { %p284_p10 = pneg (!%p206_p3), %p2551_p9 }
   0xe   : > { %s2954_s15 = smov (!%p261_p4, %s2439_s15), 1  ;;  %287 = sbr.rel (%p2144_p11) target bundleno = 23 (0x17), region = 40 }
   0xf   : > { %s254_s23 = scalar_select %p253_p5, %s2519_s19, 15 }
  0x10   : > { %s2140_s24 = sshll.u32 %s2954_s15, 3  ;;  %vm288_vm0 = vcmask (!%p2144_p11), 28672   ;;  %v2449_v1 = vmov (!%p2144_p11), 0.0  }
  0x11   : > { %s2139_s25 = sshll.u32 %s254_s23, 3  ;;  %s2535_s28 = scalar_lea.vmem %s2930_s2, %s2140_s24 }
  0x12   : > { %s2540_s5 = scalar_lea.vmem %s2929_s1, %s2139_s25  ;;  %s2545_s8 = scalar_lea.vmem %s2932_s4, %s2139_s25 }
  0x13   : > { %289 = vst.msk [vmem:[%s2545_s8] sm:$0x1f] (!%p2144_p11), %vm288_vm0, %v2449_v1  ;;  %290 = vst.msk [vmem:[%s2545_s8 + $0x8] sm:$0x1f] (!%p2144_p11), %vm288_vm0, %v2449_v1 }
  0x14   : > { %291 = vst.msk [vmem:[%s2545_s8 + $0x10] sm:$0x1f] (!%p2144_p11), %vm288_vm0, %v2449_v1  ;;  %292 = vst.msk [vmem:[%s2545_s8 + $0x18] sm:$0x1f] (!%p2144_p11), %vm288_vm0, %v2449_v1 }
  0x15   : > { %293 = vst.msk [vmem:[%s2545_s8 + $0x20] sm:$0x1f] %vm288_vm0, %v2449_v1  ;;  %294 = vst.msk [vmem:[%s2545_s8 + $0x28] sm:$0x1f] %vm288_vm0, %v2449_v1 }
  0x16   : > { %295 = vst.msk [vmem:[%s2545_s8 + $0x30] sm:$0x1f] %vm288_vm0, %v2449_v1  ;;  %296 = vst.msk [vmem:[%s2545_s8 + $0x38] sm:$0x1f] %vm288_vm0, %v2449_v1 }
  0x17 PF: > { %298 = sbr.rel (%p2551_p9) target bundleno = 259 (0x103), region = 44  ;;  %s2572_s12 = scalar_lea.vmem (!%p2551_p9), %s2928_s0, %s2519_s19  ;;  %v302_v2 = vld [vmem:[%s2540_s5] sm:$0xff] (!%p2551_p9)  ;;  %v2150_v3 = vld [vmem:[%s2540_s5 + $0x8] sm:$0xff] (!%p2551_p9)  ;;  %v2450_v4 = vmov (!%p2551_p9), 0.0   ;;  %vm2451_vm1 = vmmov (!%p2551_p9), 0   ;;  %vm312_vm2 = vcmask (!%p2551_p9), 64512  }
  0x18   : > { %2262 = vmatprep.subr.mxu0 (!%p2551_p9), %v2450_v4  ;;  %2267 = vmatprep.subr.mxu1 (!%p2551_p9), %v2450_v4  ;;  %v2146_v5 = vld [vmem:[%s2572_s12 - $0x8] sm:$0xff] (!%p2551_p9)  ;;  %v2155_v10 = vld [vmem:[%s2540_s5 + $0x10] sm:$0xff] (!%p2551_p9)  ;;  %v2165_v16 = vld [vmem:[%s2540_s5 + $0x20] sm:$0xff] (!%p2551_p9)  ;;  %vm304_vm3 = vcmask (!%p2551_p9), 31744   ;;  %vm393_vm4 = vcmask (!%p2551_p9), 1040384   ;;  %vm395_vm5 = vcmask (!%p2551_p9), 1041408  }
  0x19   : > { %v2149_v6 = vld [vmem:[%s2572_s12 - $0x7] sm:$0xff] (!%p2551_p9)  ;;  %v303_v8 = vmul.f32 (!%p2551_p9), %v2146_v5, %v302_v2  ;;  %2264 = vmatprep.mubr.msk.f32.mxu0 (!%p2551_p9), %vm2451_vm1, %v2450_v4  ;;  %2269 = vmatprep.mubr.msk.f32.mxu1 (!%p2551_p9), %vm2451_vm1, %v2450_v4  ;;  %v2170_v18 = vld [vmem:[%s2540_s5 + $0x28] sm:$0xff] (!%p2551_p9)  ;;  %v2175_v22 = vld [vmem:[%s2540_s5 + $0x30] sm:$0xff] (!%p2551_p9)  ;;  %vm397_vm6 = vcmask (!%p2551_p9), 28672  }
  0x1a   : > { %v2154_v7 = vld [vmem:[%s2572_s12 - $0x6] sm:$0xff] (!%p2551_p9)  ;;  %v404_v9 = vmul.f32 (!%p2551_p9), %v2150_v3, %v2149_v6 }
  0x1b   : > { %v2159_v11 = vld [vmem:[%s2572_s12 - $0x5] sm:$0xff] (!%p2551_p9)  ;;  %v498_v13 = vmul.f32 (!%p2551_p9), %v2155_v10, %v2154_v7  ;;  %2263 = vmatpush3.msra.mxu0 (!%p2551_p9), %v303_v8  ;;  %v305_v27 = vsel (!%p2551_p9), %vm304_vm3, %v303_v8, 0.0 }
  0x1c   : > { %v2160_v12 = vld [vmem:[%s2540_s5 + $0x18] sm:$0xff] (!%p2551_p9)  ;;  %2268 = vmatpush3.msra.mxu1 (!%p2551_p9), %v404_v9  ;;  %2265 = vmatmul.mubr.msk.f32.vlgmr.msra.gmra.mrb[0].mxu0 (!%p2551_p9), %vm312_vm2, %v2524_v0  ;;  %v405_v28 = vsel (!%p2551_p9), %vm304_vm3, %v404_v9, 0.0  ;;  %v306_v29 = vrot.slane (!%p2551_p9), %v305_v27, 4 }
  0x1d   : > { %v592_v14 = vmul.f32 (!%p2551_p9), %v2160_v12, %v2159_v11  ;;  %v2164_v15 = vld [vmem:[%s2572_s12 - $0x4] sm:$0xff] (!%p2551_p9)  ;;  %2270 = vmatmul.mubr.msk.f32.vlgmr.msra.gmra.mrb[0].mxu1 (!%p2551_p9), %vm312_vm2, %v2524_v0  ;;  %2272 = vmatprep.subr.mxu0 (!%p2551_p9), %v2450_v4  ;;  %v406_v30 = vrot.slane (!%p2551_p9), %v405_v28, 4  ;;  %v499_v31 = vsel (!%p2551_p9), %vm304_vm3, %v498_v13, 0.0 }
  0x1e   : > { %v2169_v17 = vld [vmem:[%s2572_s12 - $0x3] sm:$0xff]  ;;  %2277 = vmatprep.subr.mxu1 %v2450_v4  ;;  %2273 = vmatpush3.msra.mxu0 %v498_v13  ;;  %v686_v19 = vmul.f32 %v2165_v16, %v2164_v15  ;;  %v307_v33 = vadd.f32 %v306_v29, %v305_v27  ;;  %v500_v34 = vrot.slane %v499_v31, 4 }
  0x1f   : > { %2278 = vmatpush3.msra.mxu1 %v592_v14  ;;  %v780_v20 = vmul.f32 %v2170_v18, %v2169_v17  ;;  %v2174_v21 = vld [vmem:[%s2572_s12 - $0x2] sm:$0xff]  ;;  %2274 = vmatprep.mubr.msk.f32.mxu0 %vm2451_vm1, %v2450_v4  ;;  %v593_v32 = vsel %vm304_vm3, %v592_v14, 0.0  ;;  %v407_v35 = vadd.f32 %v406_v30, %v405_v28 }
  0x20   : > { %2279 = vmatprep.mubr.msk.f32.mxu1 %vm2451_vm1, %v2450_v4  ;;  %v2179_v23 = vld [vmem:[%s2572_s12 - $0x1] sm:$0xff]  ;;  %2275 = vmatmul.mubr.msk.f32.vlgmr.msra.gmra.mrb[2].mxu0 %vm312_vm2, %v2524_v0  ;;  %v874_v25 = vmul.f32 %v2175_v22, %v2174_v21  ;;  %v594_v36 = vrot.slane %v593_v32, 4  ;;  %v687_v37 = vsel %vm304_vm3, %v686_v19, 0.0  ;;  %v308_v39 = vrot.slane %v307_v33, 2 }
  0x21   : > { %v2180_v24 = vld [vmem:[%s2540_s5 + $0x38] sm:$0xff]  ;;  %2280 = vmatmul.mubr.msk.f32.vlgmr.msra.gmra.mrb[2].mxu1 %vm312_vm2, %v2524_v0  ;;  %2282 = vmatprep.subr.mxu0 %v2450_v4  ;;  %v781_v38 = vsel %vm304_vm3, %v780_v20, 0.0  ;;  %v501_v40 = vadd.f32 %v500_v34, %v499_v31  ;;  %v688_v41 = vrot.slane %v687_v37, 4  ;;  %v408_v42 = vrot.slane %v407_v35, 2  ;;  %v386_v18 = vld [vmem:[%s2535_s28] sm:$0x1] }
  0x22   : > { %2287 = vmatprep.subr.mxu1 %v2450_v4  ;;  %2283 = vmatpush3.msra.mxu0 %v686_v19  ;;  %v968_v26 = vmul.f32 %v2180_v24, %v2179_v23  ;;  %v595_v43 = vadd.f32 %v594_v36, %v593_v32  ;;  %v782_v44 = vrot.slane %v781_v38, 4  ;;  %v875_v45 = vsel %vm304_vm3, %v874_v25, 0.0  ;;  %v482_v19 = vld [vmem:[%s2535_s28 + $0x1] sm:$0x1]  ;;  %v670_v27 = vld [vmem:[%s2535_s28 + $0x3] sm:$0x1] }
  0x23   : > { %2288 = vmatpush3.msra.mxu1 %v780_v20  ;;  %2284 = vmatprep.mubr.msk.f32.mxu0 %vm2451_vm1, %v2450_v4  ;;  %v309_v47 = vadd.f32 %v308_v39, %v307_v33  ;;  %v502_v48 = vrot.slane %v501_v40, 2  ;;  %v689_v49 = vadd.f32 %v688_v41, %v687_v37  ;;  %v876_v50 = vrot.slane %v875_v45, 4 }
  0x24   : > { %2289 = vmatprep.mubr.msk.f32.mxu1 %vm2451_vm1, %v2450_v4  ;;  %2285 = vmatmul.mubr.msk.f32.vlgmr.msra.gmra.mrb[4].mxu0 %vm312_vm2, %v2524_v0  ;;  %v969_v46 = vsel %vm304_vm3, %v968_v26, 0.0  ;;  %v409_v51 = vadd.f32 %v408_v42, %v407_v35  ;;  %v596_v52 = vrot.slane %v595_v43, 2  ;;  %v783_v53 = vadd.f32 %v782_v44, %v781_v38  ;;  %v764_v42 = vld [vmem:[%s2535_s28 + $0x4] sm:$0x1] }
  0x25   : > { %2290 = vmatmul.mubr.msk.f32.vlgmr.msra.gmra.mrb[4].mxu1 %vm312_vm2, %v2524_v0  ;;  %2292 = vmatprep.subr.mxu0 %v2450_v4  ;;  %v970_v54 = vrot.slane %v969_v46, 4  ;;  %v310_v55 = vrot.slane %v309_v47, 1  ;;  %v503_v56 = vadd.f32 %v502_v48, %v501_v40  ;;  %v690_v57 = vrot.slane %v689_v49, 2 }
  0x26   : > { %2297 = vmatprep.subr.mxu1 %v2450_v4  ;;  %2293 = vmatpush3.msra.mxu0 %v874_v25  ;;  %v877_v58 = vadd.f32 %v876_v50, %v875_v45  ;;  %v410_v59 = vrot.slane %v409_v51, 1  ;;  %v597_v60 = vadd.f32 %v596_v52, %v595_v43  ;;  %v784_v61 = vrot.slane %v783_v53, 2  ;;  %v858_v43 = vld [vmem:[%s2535_s28 + $0x5] sm:$0x1] }
  0x27   : > { %2298 = vmatpush3.msra.mxu1 %v968_v26  ;;  %2294 = vmatprep.mubr.msk.f32.mxu0 %vm2451_vm1, %v2450_v4  ;;  %v971_v62 = vadd.f32 %v970_v54, %v969_v46  ;;  %v311_v63 = vadd.f32 %v310_v55, %v309_v47  ;;  %v691_v1 = vadd.f32 %v690_v57, %v689_v49  ;;  %v504_v3 = vrot.slane %v503_v56, 1  ;;  %v576_v26 = vld [vmem:[%s2535_s28 + $0x2] sm:$0x1] }
  0x28   : > { %2299 = vmatprep.mubr.msk.f32.mxu1 %vm2451_vm1, %v2450_v4  ;;  %2295 = vmatmul.mubr.msk.f32.vlgmr.msra.gmra.mrb[6].mxu0 %vm312_vm2, %v2524_v0  ;;  %v878_v2 = vrot.slane %v877_v58, 2  ;;  %v411_v4 = vadd.f32 %v410_v59, %v409_v51  ;;  %v785_v5 = vadd.f32 %v784_v61, %v783_v53  ;;  %v598_v7 = vrot.slane %v597_v60, 1  ;;  %v1046_v61 = vld [vmem:[%s2535_s28 + $0x7] sm:$0x1] }
  0x29   : > { %2300 = vmatmul.mubr.msk.f32.vlgmr.msra.gmra.mrb[6].mxu1 %vm312_vm2, %v2524_v0  ;;  %v972_v6 = vrot.slane %v971_v62, 2  ;;  %2393 = vrcp.f32 %v311_v63  ;;  %v505_v9 = vadd.f32 %v504_v3, %v503_v56  ;;  %v692_v10 = vrot.slane %v691_v1, 1 }
  0x2a   : > { %v879_v8 = vadd.f32 %v878_v2, %v877_v58  ;;  %2395 = vrcp.f32 %v411_v4  ;;  %v599_v12 = vadd.f32 %v598_v7, %v597_v60  ;;  %v786_v13 = vrot.slane %v785_v5, 1  ;;  %v952_v60 = vld [vmem:[%s2535_s28 + $0x6] sm:$0x1] }
  0x2b   : > { %v973_v11 = vadd.f32 %v972_v6, %v971_v62  ;;  %2397 = vrcp.f32 %v505_v9  ;;  %v693_v14 = vadd.f32 %v692_v10, %v691_v1  ;;  %v387_v23 = vmul.f32 %v386_v18, %v311_v63 }
  0x2c   : > { %v880_v15 = vrot.slane %v879_v8, 1  ;;  %2399 = vrcp.f32 %v599_v12  ;;  %v787_v16 = vadd.f32 %v786_v13, %v785_v5  ;;  %v483_v25 = vmul.f32 %v482_v19, %v411_v4 }
  0x2d   : > { %v974_v17 = vrot.slane %v973_v11, 1  ;;  %2401 = vrcp.f32 %v693_v14  ;;  %v394_v32 = vsel %vm393_vm4, %v387_v23, 0.0  ;;  %v577_v38 = vmul.f32 %v576_v26, %v505_v9 }
  0x2e   : > { %v2624_v20 = vadd.f32 %v880_v15, %v879_v8  ;;  %2403 = vrcp.f32 %v787_v16  ;;  %v489_v37 = vsel %vm393_vm4, %v483_v25, 0.0  ;;  %v671_v39 = vmul.f32 %v670_v27, %v599_v12 }
  0x2f   : > { %v2626_v21 = vadd.f32 %v974_v17, %v973_v11  ;;  %v583_v54 = vsel %vm393_vm4, %v577_v38, 0.0  ;;  %v765_v56 = vmul.f32 %v764_v42, %v693_v14  ;;  %v859_v57 = vmul.f32 %v858_v43, %v787_v16 }
  0x30   : > { %2405 = vrcp.f32 %v2624_v20  ;;  %v677_v55 = vsel %vm393_vm4, %v671_v39, 0.0  ;;  %v953_v11 = vmul.f32 %v952_v60, %v2624_v20 }
  0x31   : > { %2407 = vrcp.f32 %v2626_v21  ;;  %v771_v9 = vsel %vm393_vm4, %v765_v56, 0.0  ;;  %v865_v10 = vsel %vm393_vm4, %v859_v57, 0.0  ;;  %v1047_v12 = vmul.f32 %v1046_v61, %v2626_v21 }
  0x32   : > { %v959_v20 = vsel %vm393_vm4, %v953_v11, 0.0 }
  0x33   : > { %v2394_v22 = vpop.eup %2393  ;;  %v1053_v21 = vsel %vm393_vm4, %v1047_v12, 0.0 }
  0x34   : > { %v2396_v24 = vpop.eup %2395 }
  0x35   : > { %v2398_v30 = vpop.eup %2397 }
  0x36   : > { %v2400_v36 = vpop.eup %2399 }
  0x37   : > { %v2402_v46 = vpop.eup %2401 }
  0x38   : > { %v2404_v53 = vpop.eup %2403 }
  0x3a   : > { %v2406_v1 = vpop.eup %2405 }
  0x3b   : > { %v2408_v8 = vpop.eup %2407 }
  0xef   : > { %v382_v28 = vpop.f32.mrb[0].mxu0 }
  0xf0   : > { %v478_v29 = vpop.f32.mrb[0].mxu1  ;;  %v389_v31 = vmul.f32 %v2394_v22, %v382_v28  ;;  %v2266_v34 = vpop.f32.mrb[1].mxu0 }
  0xf1   : > { %v485_v33 = vmul.f32 %v2396_v24, %v478_v29  ;;  %v2271_v35 = vpop.f32.mrb[1].mxu1 }
  0xf2   : > { %v391_v40 = vrot.slane %v389_v31, 6 }
  0xf3   : > { %v487_v41 = vrot.slane %v485_v33, 6  ;;  %v572_v44 = vpop.f32.mrb[2].mxu0 }
  0xf4   : > { %v666_v45 = vpop.f32.mrb[2].mxu1  ;;  %v396_v47 = vsel %vm395_vm5, %v394_v32, %v391_v40  ;;  %v579_v49 = vmul.f32 %v2398_v30, %v572_v44  ;;  %v2276_v51 = vpop.f32.mrb[3].mxu0 }
  0xf5   : > { %v490_v48 = vsel %vm395_vm5, %v489_v37, %v487_v41  ;;  %v673_v50 = vmul.f32 %v2400_v36, %v666_v45  ;;  %v2281_v52 = vpop.f32.mrb[3].mxu1  ;;  %398 = vst.msk [vmem:[%s2545_s8] sm:$0x1f] %vm397_vm6, %v396_v47 }
  0xf6   : > { %2152 = vst.msk [vmem:[%s2545_s8 + $0x8] sm:$0x1f] %vm397_vm6, %v490_v48  ;;  %v581_v58 = vrot.slane %v579_v49, 6 }
  0xf7   : > { %v675_v59 = vrot.slane %v673_v50, 6  ;;  %v760_v62 = vpop.f32.mrb[4].mxu0 }
  0xf8   : > { %v854_v63 = vpop.f32.mrb[4].mxu1  ;;  %v584_v2 = vsel %vm395_vm5, %v583_v54, %v581_v58  ;;  %v767_v4 = vmul.f32 %v2402_v46, %v760_v62  ;;  %v2286_v6 = vpop.f32.mrb[5].mxu0 }
  0xf9   : > { %v678_v3 = vsel %vm395_vm5, %v677_v55, %v675_v59  ;;  %v861_v5 = vmul.f32 %v2404_v53, %v854_v63  ;;  %v2291_v7 = vpop.f32.mrb[5].mxu1  ;;  %2157 = vst.msk [vmem:[%s2545_s8 + $0x10] sm:$0x1f] %vm397_vm6, %v584_v2 }
  0xfa   : > { %2162 = vst.msk [vmem:[%s2545_s8 + $0x18] sm:$0x1f] %vm397_vm6, %v678_v3  ;;  %v769_v13 = vrot.slane %v767_v4, 6 }
  0xfb   : > { %v863_v14 = vrot.slane %v861_v5, 6  ;;  %v948_v15 = vpop.f32.mrb[6].mxu0 }
  0xfc   : > { %v1042_v16 = vpop.f32.mrb[6].mxu1  ;;  %v772_v17 = vsel %vm395_vm5, %v771_v9, %v769_v13  ;;  %v955_v19 = vmul.f32 %v2406_v1, %v948_v15  ;;  %v2296_v23 = vpop.f32.mrb[7].mxu0 }
  0xfd   : > { %v866_v18 = vsel %vm395_vm5, %v865_v10, %v863_v14  ;;  %v1049_v22 = vmul.f32 %v2408_v8, %v1042_v16  ;;  %v2301_v24 = vpop.f32.mrb[7].mxu1  ;;  %2167 = vst.msk [vmem:[%s2545_s8 + $0x20] sm:$0x1f] %vm397_vm6, %v772_v17 }
  0xfe   : > { %2172 = vst.msk [vmem:[%s2545_s8 + $0x28] sm:$0x1f] %vm397_vm6, %v866_v18  ;;  %v957_v25 = vrot.slane %v955_v19, 6 }
  0xff   : > { %v1051_v26 = vrot.slane %v1049_v22, 6 }
 0x100   : > { %v960_v27 = vsel %vm395_vm5, %v959_v20, %v957_v25 }
 0x101   : > { %v1054_v28 = vsel %vm395_vm5, %v1053_v21, %v1051_v26  ;;  %2177 = vst.msk [vmem:[%s2545_s8 + $0x30] sm:$0x1f] %vm397_vm6, %v960_v27 }
 0x102   : > { %2182 = vst.msk [vmem:[%s2545_s8 + $0x38] sm:$0x1f] %vm397_vm6, %v1054_v28 }
 0x103 PF: > { %p1057_p12 = por %p284_p10, %p280_p6 }
 0x104   : > { %p1061_p13 = scmp.lt.s32.totalorder (!%p1057_p12), %s2519_s19, 16 }
 0x105   : > { %1060 = sbr.rel (%p1057_p12) target bundleno = 2136 (0x858), region = 48 }
 0x106   : > { %p2678_p0 = pnand (!%p1057_p12), %p1061_p13, %p281_p7 }
 0x10c   : > { %1065 = sbr.rel (%p2678_p0) target bundleno = 491 (0x1eb), region = 52  ;;  %s2059_s20 = scalar_lea.vmem (!%p2678_p0), %s2928_s0, %s2519_s19  ;;  %v1069_v29 = vld [vmem:[%s2540_s5] sm:$0xff] (!%p2678_p0)  ;;  %v2452_v30 = vmov (!%p2678_p0), 0.0   ;;  %vm2453_vm7 = vmmov (!%p2678_p0), 0   ;;  %vm1079_vm8 = vcmask (!%p2678_p0), 64512   ;;  %vm1071_vm9 = vcmask (!%p2678_p0), 31744  }
 0x10d   : > { %2302 = vmatprep.subr.mxu0 (!%p2678_p0), %v2452_v30  ;;  %v2184_v31 = vld [vmem:[%s2059_s20 - $0x8] sm:$0xff] (!%p2678_p0)  ;;  %2304 = vmatprep.mubr.msk.f32.mxu0 (!%p2678_p0), %vm2453_vm7, %v2452_v30  ;;  %v1153_v40 = vld [vmem:[%s2535_s28] sm:$0x1] (!%p2678_p0)  ;;  %vm1160_vm10 = vcmask (!%p2678_p0), 1040384   ;;  %vm1162_vm11 = vcmask (!%p2678_p0), 1041408   ;;  %vm1164_vm12 = vcmask (!%p2678_p0), 28672  }
 0x10e   : > { %v1070_v32 = vmul.f32 (!%p2678_p0), %v2184_v31, %v1069_v29 }
 0x110   : > { %2303 = vmatpush3.msra.mxu0 (!%p2678_p0), %v1070_v32  ;;  %v1072_v33 = vsel (!%p2678_p0), %vm1071_vm9, %v1070_v32, 0.0 }
 0x111   : > { %2305 = vmatmul.mubr.msk.f32.vlgmr.msra.gmra.mrb[0].mxu0 (!%p2678_p0), %vm1079_vm8, %v2524_v0  ;;  %v1073_v34 = vrot.slane (!%p2678_p0), %v1072_v33, 4 }
 0x113   : > { %v1074_v35 = vadd.f32 %v1073_v34, %v1072_v33 }
 0x115   : > { %v1075_v36 = vrot.slane %v1074_v35, 2 }
 0x117   : > { %v1076_v37 = vadd.f32 %v1075_v36, %v1074_v35 }
 0x119   : > { %v1077_v38 = vrot.slane %v1076_v37, 1 }
 0x11b   : > { %v1078_v39 = vadd.f32 %v1077_v38, %v1076_v37 }
 0x11d   : > { %2409 = vrcp.f32 %v1078_v39  ;;  %v1154_v42 = vmul.f32 %v1153_v40, %v1078_v39 }
 0x11f   : > { %v1161_v46 = vsel %vm1160_vm10, %v1154_v42, 0.0 }
 0x127   : > { %v2410_v41 = vpop.eup %2409 }
 0x1e4   : > { %v1149_v43 = vpop.f32.mrb[0].mxu0 }
 0x1e5   : > { %v1156_v44 = vmul.f32 %v2410_v41, %v1149_v43  ;;  %v2306_v45 = vpop.f32.mrb[1].mxu0 }
 0x1e7   : > { %v1158_v47 = vrot.slane %v1156_v44, 6 }
 0x1e9   : > { %v1163_v48 = vsel %vm1162_vm11, %v1161_v46, %v1158_v47 }
 0x1ea   : > { %1165 = vst.msk [vmem:[%s2545_s8] sm:$0x1f] %vm1164_vm12, %v1163_v48 }
 0x1eb PF: > { %1168 = sbr.rel (!%p2678_p0) target bundleno = 498 (0x1f2), region = 56  ;;  %vm1169_vm13 = vcmask (%p2678_p0), 28672   ;;  %v2454_v49 = vmov (%p2678_p0), 0.0  }
 0x1ec   : > { %1170 = vst.msk [vmem:[%s2545_s8] sm:$0x1f] (%p2678_p0), %vm1169_vm13, %v2454_v49 }
 0x1f2 PF: > { %s1171_s21 = sadd.s32 1, %s2519_s19 }
 0x1f3   : > { %p2696_p1 = scmp.ge.s32.totalorder %s1171_s21, 8  ;;  %p2700_p2 = scmp.lt.s32.totalorder %s1171_s21, 16 }
 0x1f5   : > { %p1174_p3 = pnand %p2700_p2, %p2696_p1 }
 0x1f6   : > { %s2062_s26 = scalar_lea.vmem (!%p1174_p3), %s2928_s0, %s2519_s19  ;;  %v2188_v50 = vld [vmem:[%s2540_s5 + $0x8] sm:$0xff] (!%p1174_p3)  ;;  %v2455_v51 = vmov (!%p1174_p3), 0.0   ;;  %vm2456_vm14 = vmmov (!%p1174_p3), 0   ;;  %vm1192_vm15 = vcmask (!%p1174_p3), 64512   ;;  %vm1184_vm0 = vcmask (!%p1174_p3), 31744  }
 0x1f7   : > { %1177 = sbr.rel (%p1174_p3) target bundleno = 725 (0x2d5), region = 60  ;;  %2307 = vmatprep.subr.mxu0 (!%p1174_p3), %v2455_v51  ;;  %v2187_v52 = vld [vmem:[%s2062_s26 - $0x7] sm:$0xff] (!%p1174_p3)  ;;  %2309 = vmatprep.mubr.msk.f32.mxu0 (!%p1174_p3), %vm2456_vm14, %v2455_v51  ;;  %v1266_v61 = vld [vmem:[%s2535_s28 + $0x1] sm:$0x1] (!%p1174_p3)  ;;  %vm1273_vm1 = vcmask (!%p1174_p3), 1040384   ;;  %vm1275_vm2 = vcmask (!%p1174_p3), 1041408  }
 0x1f8   : > { %v1183_v53 = vmul.f32 (!%p1174_p3), %v2188_v50, %v2187_v52  ;;  %vm1278_vm3 = vcmask (!%p1174_p3), 28672  }
 0x1fa   : > { %2308 = vmatpush3.msra.mxu0 (!%p1174_p3), %v1183_v53  ;;  %v1185_v54 = vsel (!%p1174_p3), %vm1184_vm0, %v1183_v53, 0.0 }
 0x1fb   : > { %2310 = vmatmul.mubr.msk.f32.vlgmr.msra.gmra.mrb[0].mxu0 (!%p1174_p3), %vm1192_vm15, %v2524_v0  ;;  %v1186_v55 = vrot.slane (!%p1174_p3), %v1185_v54, 4 }
 0x1fd   : > { %v1187_v56 = vadd.f32 (!%p1174_p3), %v1186_v55, %v1185_v54 }
 0x1ff   : > { %v1188_v57 = vrot.slane %v1187_v56, 2 }
 0x201   : > { %v1189_v58 = vadd.f32 %v1188_v57, %v1187_v56 }
 0x203   : > { %v1190_v59 = vrot.slane %v1189_v58, 1 }
 0x205   : > { %v1191_v60 = vadd.f32 %v1190_v59, %v1189_v58 }
 0x207   : > { %2411 = vrcp.f32 %v1191_v60  ;;  %v1267_v63 = vmul.f32 %v1266_v61, %v1191_v60 }
 0x209   : > { %v1274_v4 = vsel %vm1273_vm1, %v1267_v63, 0.0 }
 0x211   : > { %v2412_v62 = vpop.eup %2411 }
 0x2ce   : > { %v1262_v1 = vpop.f32.mrb[0].mxu0 }
 0x2cf   : > { %v1269_v2 = vmul.f32 %v2412_v62, %v1262_v1  ;;  %v2311_v3 = vpop.f32.mrb[1].mxu0 }
 0x2d1   : > { %v1271_v5 = vrot.slane %v1269_v2, 6 }
 0x2d3   : > { %v1276_v6 = vsel %vm1275_vm2, %v1274_v4, %v1271_v5 }
 0x2d4   : > { %2190 = vst.msk [vmem:[%s2545_s8 + $0x8] sm:$0x1f] %vm1278_vm3, %v1276_v6 }
 0x2d5 PF: > { %1282 = sbr.rel (!%p1174_p3) target bundleno = 732 (0x2dc), region = 64  ;;  %vm1284_vm4 = vcmask (%p1174_p3), 28672   ;;  %v2457_v7 = vmov (%p1174_p3), 0.0  }
 0x2d6   : > { %2191 = vst.msk [vmem:[%s2545_s8 + $0x8] sm:$0x1f] (%p1174_p3), %vm1284_vm4, %v2457_v7 }
 0x2dc PF: > { %s1286_s27 = sadd.s32 2, %s2519_s19 }
 0x2dd   : > { %p2728_p4 = scmp.ge.s32.totalorder %s1286_s27, 8  ;;  %p2732_p5 = scmp.lt.s32.totalorder %s1286_s27, 16 }
 0x2df   : > { %p1289_p6 = pnand %p2732_p5, %p2728_p4 }
 0x2e0   : > { %s2065_s9 = scalar_lea.vmem (!%p1289_p6), %s2928_s0, %s2519_s19  ;;  %v2194_v8 = vld [vmem:[%s2540_s5 + $0x10] sm:$0xff] (!%p1289_p6)  ;;  %v2458_v9 = vmov (!%p1289_p6), 0.0   ;;  %vm2459_vm5 = vmmov (!%p1289_p6), 0   ;;  %vm1307_vm6 = vcmask (!%p1289_p6), 64512   ;;  %vm1299_vm7 = vcmask (!%p1289_p6), 31744  }
 0x2e1   : > { %1292 = sbr.rel (%p1289_p6) target bundleno = 959 (0x3bf), region = 68  ;;  %2312 = vmatprep.subr.mxu0 (!%p1289_p6), %v2458_v9  ;;  %v2193_v10 = vld [vmem:[%s2065_s9 - $0x6] sm:$0xff] (!%p1289_p6)  ;;  %2314 = vmatprep.mubr.msk.f32.mxu0 (!%p1289_p6), %vm2459_vm5, %v2458_v9  ;;  %v1381_v19 = vld [vmem:[%s2535_s28 + $0x2] sm:$0x1] (!%p1289_p6)  ;;  %vm1388_vm8 = vcmask (!%p1289_p6), 1040384   ;;  %vm1390_vm9 = vcmask (!%p1289_p6), 1041408  }
 0x2e2   : > { %v1298_v11 = vmul.f32 (!%p1289_p6), %v2194_v8, %v2193_v10  ;;  %vm1393_vm10 = vcmask (!%p1289_p6), 28672  }
 0x2e4   : > { %2313 = vmatpush3.msra.mxu0 (!%p1289_p6), %v1298_v11  ;;  %v1300_v12 = vsel (!%p1289_p6), %vm1299_vm7, %v1298_v11, 0.0 }
 0x2e5   : > { %2315 = vmatmul.mubr.msk.f32.vlgmr.msra.gmra.mrb[0].mxu0 (!%p1289_p6), %vm1307_vm6, %v2524_v0  ;;  %v1301_v13 = vrot.slane (!%p1289_p6), %v1300_v12, 4 }
 0x2e7   : > { %v1302_v14 = vadd.f32 (!%p1289_p6), %v1301_v13, %v1300_v12 }
 0x2e9   : > { %v1303_v15 = vrot.slane %v1302_v14, 2 }
 0x2eb   : > { %v1304_v16 = vadd.f32 %v1303_v15, %v1302_v14 }
 0x2ed   : > { %v1305_v17 = vrot.slane %v1304_v16, 1 }
 0x2ef   : > { %v1306_v18 = vadd.f32 %v1305_v17, %v1304_v16 }
 0x2f1   : > { %2413 = vrcp.f32 %v1306_v18  ;;  %v1382_v23 = vmul.f32 %v1381_v19, %v1306_v18 }
 0x2f3   : > { %v1389_v25 = vsel %vm1388_vm8, %v1382_v23, 0.0 }
 0x2fb   : > { %v2414_v22 = vpop.eup %2413 }
 0x3b8   : > { %v1377_v24 = vpop.f32.mrb[0].mxu0 }
 0x3b9   : > { %v1384_v20 = vmul.f32 %v2414_v22, %v1377_v24  ;;  %v2316_v21 = vpop.f32.mrb[1].mxu0 }
 0x3bb   : > { %v1386_v26 = vrot.slane %v1384_v20, 6 }
 0x3bd   : > { %v1391_v27 = vsel %vm1390_vm9, %v1389_v25, %v1386_v26 }
 0x3be   : > { %2196 = vst.msk [vmem:[%s2545_s8 + $0x10] sm:$0x1f] %vm1393_vm10, %v1391_v27 }
 0x3bf PF: > { %1397 = sbr.rel (!%p1289_p6) target bundleno = 966 (0x3c6), region = 72  ;;  %vm1399_vm11 = vcmask (%p1289_p6), 28672   ;;  %v2460_v28 = vmov (%p1289_p6), 0.0  }
 0x3c0   : > { %2197 = vst.msk [vmem:[%s2545_s8 + $0x10] sm:$0x1f] (%p1289_p6), %vm1399_vm11, %v2460_v28 }
 0x3c6 PF: > { %s1401_s10 = sadd.s32 3, %s2519_s19 }
 0x3c7   : > { %p2760_p7 = scmp.ge.s32.totalorder %s1401_s10, 8  ;;  %p2764_p8 = scmp.lt.s32.totalorder %s1401_s10, 16 }
 0x3c9   : > { %p1404_p9 = pnand %p2764_p8, %p2760_p7 }
 0x3ca   : > { %s2068_s15 = scalar_lea.vmem (!%p1404_p9), %s2928_s0, %s2519_s19  ;;  %v2200_v29 = vld [vmem:[%s2540_s5 + $0x18] sm:$0xff] (!%p1404_p9)  ;;  %v2461_v30 = vmov (!%p1404_p9), 0.0   ;;  %vm2462_vm12 = vmmov (!%p1404_p9), 0   ;;  %vm1422_vm13 = vcmask (!%p1404_p9), 64512   ;;  %vm1414_vm14 = vcmask (!%p1404_p9), 31744  }
 0x3cb   : > { %1407 = sbr.rel (%p1404_p9) target bundleno = 1193 (0x4a9), region = 76  ;;  %2317 = vmatprep.subr.mxu0 (!%p1404_p9), %v2461_v30  ;;  %v2199_v31 = vld [vmem:[%s2068_s15 - $0x5] sm:$0xff] (!%p1404_p9)  ;;  %2319 = vmatprep.mubr.msk.f32.mxu0 (!%p1404_p9), %vm2462_vm12, %v2461_v30  ;;  %v1496_v40 = vld [vmem:[%s2535_s28 + $0x3] sm:$0x1] (!%p1404_p9)  ;;  %vm1503_vm15 = vcmask (!%p1404_p9), 1040384   ;;  %vm1505_vm0 = vcmask (!%p1404_p9), 1041408  }
 0x3cc   : > { %v1413_v32 = vmul.f32 (!%p1404_p9), %v2200_v29, %v2199_v31  ;;  %vm1508_vm1 = vcmask (!%p1404_p9), 28672  }
 0x3ce   : > { %2318 = vmatpush3.msra.mxu0 (!%p1404_p9), %v1413_v32  ;;  %v1415_v33 = vsel (!%p1404_p9), %vm1414_vm14, %v1413_v32, 0.0 }
 0x3cf   : > { %2320 = vmatmul.mubr.msk.f32.vlgmr.msra.gmra.mrb[0].mxu0 (!%p1404_p9), %vm1422_vm13, %v2524_v0  ;;  %v1416_v34 = vrot.slane (!%p1404_p9), %v1415_v33, 4 }
 0x3d1   : > { %v1417_v35 = vadd.f32 (!%p1404_p9), %v1416_v34, %v1415_v33 }
 0x3d3   : > { %v1418_v36 = vrot.slane %v1417_v35, 2 }
 0x3d5   : > { %v1419_v37 = vadd.f32 %v1418_v36, %v1417_v35 }
 0x3d7   : > { %v1420_v38 = vrot.slane %v1419_v37, 1 }
 0x3d9   : > { %v1421_v39 = vadd.f32 %v1420_v38, %v1419_v37 }
 0x3db   : > { %2415 = vrcp.f32 %v1421_v39  ;;  %v1497_v42 = vmul.f32 %v1496_v40, %v1421_v39 }
 0x3dd   : > { %v1504_v46 = vsel %vm1503_vm15, %v1497_v42, 0.0 }
 0x3e5   : > { %v2416_v41 = vpop.eup %2415 }
 0x4a2   : > { %v1492_v43 = vpop.f32.mrb[0].mxu0 }
 0x4a3   : > { %v1499_v44 = vmul.f32 %v2416_v41, %v1492_v43  ;;  %v2321_v45 = vpop.f32.mrb[1].mxu0 }
 0x4a5   : > { %v1501_v47 = vrot.slane %v1499_v44, 6 }
 0x4a7   : > { %v1506_v48 = vsel %vm1505_vm0, %v1504_v46, %v1501_v47 }
 0x4a8   : > { %2202 = vst.msk [vmem:[%s2545_s8 + $0x18] sm:$0x1f] %vm1508_vm1, %v1506_v48 }
 0x4a9 PF: > { %1512 = sbr.rel (!%p1404_p9) target bundleno = 1200 (0x4b0), region = 80  ;;  %vm1514_vm2 = vcmask (%p1404_p9), 28672   ;;  %v2463_v49 = vmov (%p1404_p9), 0.0  }
 0x4aa   : > { %2203 = vst.msk [vmem:[%s2545_s8 + $0x18] sm:$0x1f] (%p1404_p9), %vm1514_vm2, %v2463_v49 }
 0x4b0 PF: > { %s1516_s20 = sadd.s32 4, %s2519_s19 }
 0x4b1   : > { %p2792_p10 = scmp.ge.s32.totalorder %s1516_s20, 8  ;;  %p2796_p11 = scmp.lt.s32.totalorder %s1516_s20, 16 }
 0x4b3   : > { %p1519_p12 = pnand %p2796_p11, %p2792_p10 }
 0x4b4   : > { %s2071_s25 = scalar_lea.vmem (!%p1519_p12), %s2928_s0, %s2519_s19  ;;  %v2206_v50 = vld [vmem:[%s2540_s5 + $0x20] sm:$0xff] (!%p1519_p12)  ;;  %v2464_v51 = vmov (!%p1519_p12), 0.0   ;;  %vm2465_vm3 = vmmov (!%p1519_p12), 0   ;;  %vm1537_vm4 = vcmask (!%p1519_p12), 64512   ;;  %vm1529_vm5 = vcmask (!%p1519_p12), 31744  }
 0x4b5   : > { %1522 = sbr.rel (%p1519_p12) target bundleno = 1427 (0x593), region = 84  ;;  %2322 = vmatprep.subr.mxu0 (!%p1519_p12), %v2464_v51  ;;  %v2205_v52 = vld [vmem:[%s2071_s25 - $0x4] sm:$0xff] (!%p1519_p12)  ;;  %2324 = vmatprep.mubr.msk.f32.mxu0 (!%p1519_p12), %vm2465_vm3, %v2464_v51  ;;  %v1611_v61 = vld [vmem:[%s2535_s28 + $0x4] sm:$0x1] (!%p1519_p12)  ;;  %vm1618_vm6 = vcmask (!%p1519_p12), 1040384   ;;  %vm1620_vm7 = vcmask (!%p1519_p12), 1041408  }
 0x4b6   : > { %v1528_v53 = vmul.f32 (!%p1519_p12), %v2206_v50, %v2205_v52  ;;  %vm1623_vm8 = vcmask (!%p1519_p12), 28672  }
 0x4b8   : > { %2323 = vmatpush3.msra.mxu0 (!%p1519_p12), %v1528_v53  ;;  %v1530_v54 = vsel (!%p1519_p12), %vm1529_vm5, %v1528_v53, 0.0 }
 0x4b9   : > { %2325 = vmatmul.mubr.msk.f32.vlgmr.msra.gmra.mrb[0].mxu0 (!%p1519_p12), %vm1537_vm4, %v2524_v0  ;;  %v1531_v55 = vrot.slane (!%p1519_p12), %v1530_v54, 4 }
 0x4bb   : > { %v1532_v56 = vadd.f32 (!%p1519_p12), %v1531_v55, %v1530_v54 }
 0x4bd   : > { %v1533_v57 = vrot.slane %v1532_v56, 2 }
 0x4bf   : > { %v1534_v58 = vadd.f32 %v1533_v57, %v1532_v56 }
 0x4c1   : > { %v1535_v59 = vrot.slane %v1534_v58, 1 }
 0x4c3   : > { %v1536_v60 = vadd.f32 %v1535_v59, %v1534_v58 }
 0x4c5   : > { %2417 = vrcp.f32 %v1536_v60  ;;  %v1612_v63 = vmul.f32 %v1611_v61, %v1536_v60 }
 0x4c7   : > { %v1619_v4 = vsel %vm1618_vm6, %v1612_v63, 0.0 }
 0x4cf   : > { %v2418_v62 = vpop.eup %2417 }
 0x58c   : > { %v1607_v1 = vpop.f32.mrb[0].mxu0 }
 0x58d   : > { %v1614_v2 = vmul.f32 %v2418_v62, %v1607_v1  ;;  %v2326_v3 = vpop.f32.mrb[1].mxu0 }
 0x58f   : > { %v1616_v5 = vrot.slane %v1614_v2, 6 }
 0x591   : > { %v1621_v6 = vsel %vm1620_vm7, %v1619_v4, %v1616_v5 }
 0x592   : > { %2208 = vst.msk [vmem:[%s2545_s8 + $0x20] sm:$0x1f] %vm1623_vm8, %v1621_v6 }
 0x593 PF: > { %1627 = sbr.rel (!%p1519_p12) target bundleno = 1434 (0x59a), region = 88  ;;  %vm1629_vm9 = vcmask (%p1519_p12), 28672   ;;  %v2466_v7 = vmov (%p1519_p12), 0.0  }
 0x594   : > { %2209 = vst.msk [vmem:[%s2545_s8 + $0x20] sm:$0x1f] (%p1519_p12), %vm1629_vm9, %v2466_v7 }
 0x59a PF: > { %s1631_s26 = sadd.s32 5, %s2519_s19 }
 0x59b   : > { %p2824_p13 = scmp.ge.s32.totalorder %s1631_s26, 8  ;;  %p2828_p0 = scmp.lt.s32.totalorder %s1631_s26, 16 }
 0x59d   : > { %p1634_p1 = pnand %p2828_p0, %p2824_p13 }
 0x59e   : > { %s2074_s7 = scalar_lea.vmem (!%p1634_p1), %s2928_s0, %s2519_s19  ;;  %v2212_v8 = vld [vmem:[%s2540_s5 + $0x28] sm:$0xff] (!%p1634_p1)  ;;  %v2467_v9 = vmov (!%p1634_p1), 0.0   ;;  %vm2468_vm10 = vmmov (!%p1634_p1), 0   ;;  %vm1652_vm11 = vcmask (!%p1634_p1), 64512   ;;  %vm1644_vm12 = vcmask (!%p1634_p1), 31744  }
 0x59f   : > { %1637 = sbr.rel (%p1634_p1) target bundleno = 1661 (0x67d), region = 92  ;;  %2327 = vmatprep.subr.mxu0 (!%p1634_p1), %v2467_v9  ;;  %v2211_v10 = vld [vmem:[%s2074_s7 - $0x3] sm:$0xff] (!%p1634_p1)  ;;  %2329 = vmatprep.mubr.msk.f32.mxu0 (!%p1634_p1), %vm2468_vm10, %v2467_v9  ;;  %v1726_v19 = vld [vmem:[%s2535_s28 + $0x5] sm:$0x1] (!%p1634_p1)  ;;  %vm1733_vm13 = vcmask (!%p1634_p1), 1040384   ;;  %vm1735_vm14 = vcmask (!%p1634_p1), 1041408  }
 0x5a0   : > { %v1643_v11 = vmul.f32 (!%p1634_p1), %v2212_v8, %v2211_v10  ;;  %vm1738_vm15 = vcmask (!%p1634_p1), 28672  }
 0x5a2   : > { %2328 = vmatpush3.msra.mxu0 (!%p1634_p1), %v1643_v11  ;;  %v1645_v12 = vsel (!%p1634_p1), %vm1644_vm12, %v1643_v11, 0.0 }
 0x5a3   : > { %2330 = vmatmul.mubr.msk.f32.vlgmr.msra.gmra.mrb[0].mxu0 (!%p1634_p1), %vm1652_vm11, %v2524_v0  ;;  %v1646_v13 = vrot.slane (!%p1634_p1), %v1645_v12, 4 }
 0x5a5   : > { %v1647_v14 = vadd.f32 (!%p1634_p1), %v1646_v13, %v1645_v12 }
 0x5a7   : > { %v1648_v15 = vrot.slane %v1647_v14, 2 }
 0x5a9   : > { %v1649_v16 = vadd.f32 %v1648_v15, %v1647_v14 }
 0x5ab   : > { %v1650_v17 = vrot.slane %v1649_v16, 1 }
 0x5ad   : > { %v1651_v18 = vadd.f32 %v1650_v17, %v1649_v16 }
 0x5af   : > { %2419 = vrcp.f32 %v1651_v18  ;;  %v1727_v23 = vmul.f32 %v1726_v19, %v1651_v18 }
 0x5b1   : > { %v1734_v25 = vsel %vm1733_vm13, %v1727_v23, 0.0 }
 0x5b9   : > { %v2420_v22 = vpop.eup %2419 }
 0x676   : > { %v1722_v24 = vpop.f32.mrb[0].mxu0 }
 0x677   : > { %v1729_v20 = vmul.f32 %v2420_v22, %v1722_v24  ;;  %v2331_v21 = vpop.f32.mrb[1].mxu0 }
 0x679   : > { %v1731_v26 = vrot.slane %v1729_v20, 6 }
 0x67b   : > { %v1736_v27 = vsel %vm1735_vm14, %v1734_v25, %v1731_v26 }
 0x67c   : > { %2214 = vst.msk [vmem:[%s2545_s8 + $0x28] sm:$0x1f] %vm1738_vm15, %v1736_v27 }
 0x67d PF: > { %1742 = sbr.rel (!%p1634_p1) target bundleno = 1668 (0x684), region = 96  ;;  %vm1744_vm0 = vcmask (%p1634_p1), 28672   ;;  %v2469_v28 = vmov (%p1634_p1), 0.0  }
 0x67e   : > { %2215 = vst.msk [vmem:[%s2545_s8 + $0x28] sm:$0x1f] (%p1634_p1), %vm1744_vm0, %v2469_v28 }
 0x684 PF: > { %s1746_s9 = sadd.s32 6, %s2519_s19 }
 0x685   : > { %p2856_p2 = scmp.ge.s32.totalorder %s1746_s9, 8  ;;  %p2860_p3 = scmp.lt.s32.totalorder %s1746_s9, 16 }
 0x687   : > { %p1749_p4 = pnand %p2860_p3, %p2856_p2 }
 0x688   : > { %s2077_s14 = scalar_lea.vmem (!%p1749_p4), %s2928_s0, %s2519_s19  ;;  %v2218_v29 = vld [vmem:[%s2540_s5 + $0x30] sm:$0xff] (!%p1749_p4)  ;;  %v2470_v30 = vmov (!%p1749_p4), 0.0   ;;  %vm2471_vm1 = vmmov (!%p1749_p4), 0   ;;  %vm1767_vm2 = vcmask (!%p1749_p4), 64512   ;;  %vm1759_vm3 = vcmask (!%p1749_p4), 31744  }
 0x689   : > { %1752 = sbr.rel (%p1749_p4) target bundleno = 1895 (0x767), region = 100  ;;  %2332 = vmatprep.subr.mxu0 (!%p1749_p4), %v2470_v30  ;;  %v2217_v31 = vld [vmem:[%s2077_s14 - $0x2] sm:$0xff] (!%p1749_p4)  ;;  %2334 = vmatprep.mubr.msk.f32.mxu0 (!%p1749_p4), %vm2471_vm1, %v2470_v30  ;;  %v1841_v40 = vld [vmem:[%s2535_s28 + $0x6] sm:$0x1] (!%p1749_p4)  ;;  %vm1848_vm4 = vcmask (!%p1749_p4), 1040384   ;;  %vm1850_vm5 = vcmask (!%p1749_p4), 1041408  }
 0x68a   : > { %v1758_v32 = vmul.f32 (!%p1749_p4), %v2218_v29, %v2217_v31  ;;  %vm1853_vm6 = vcmask (!%p1749_p4), 28672  }
 0x68c   : > { %2333 = vmatpush3.msra.mxu0 (!%p1749_p4), %v1758_v32  ;;  %v1760_v33 = vsel (!%p1749_p4), %vm1759_vm3, %v1758_v32, 0.0 }
 0x68d   : > { %2335 = vmatmul.mubr.msk.f32.vlgmr.msra.gmra.mrb[0].mxu0 (!%p1749_p4), %vm1767_vm2, %v2524_v0  ;;  %v1761_v34 = vrot.slane (!%p1749_p4), %v1760_v33, 4 }
 0x68f   : > { %v1762_v35 = vadd.f32 (!%p1749_p4), %v1761_v34, %v1760_v33 }
 0x691   : > { %v1763_v36 = vrot.slane %v1762_v35, 2 }
 0x693   : > { %v1764_v37 = vadd.f32 %v1763_v36, %v1762_v35 }
 0x695   : > { %v1765_v38 = vrot.slane %v1764_v37, 1 }
 0x697   : > { %v1766_v39 = vadd.f32 %v1765_v38, %v1764_v37 }
 0x699   : > { %2421 = vrcp.f32 %v1766_v39  ;;  %v1842_v42 = vmul.f32 %v1841_v40, %v1766_v39 }
 0x69b   : > { %v1849_v46 = vsel %vm1848_vm4, %v1842_v42, 0.0 }
 0x6a3   : > { %v2422_v41 = vpop.eup %2421 }
 0x760   : > { %v1837_v43 = vpop.f32.mrb[0].mxu0 }
 0x761   : > { %v1844_v44 = vmul.f32 %v2422_v41, %v1837_v43  ;;  %v2336_v45 = vpop.f32.mrb[1].mxu0 }
 0x763   : > { %v1846_v47 = vrot.slane %v1844_v44, 6 }
 0x765   : > { %v1851_v48 = vsel %vm1850_vm5, %v1849_v46, %v1846_v47 }
 0x766   : > { %2220 = vst.msk [vmem:[%s2545_s8 + $0x30] sm:$0x1f] %vm1853_vm6, %v1851_v48 }
 0x767 PF: > { %1857 = sbr.rel (!%p1749_p4) target bundleno = 1902 (0x76e), region = 104  ;;  %vm1859_vm7 = vcmask (%p1749_p4), 28672   ;;  %v2472_v49 = vmov (%p1749_p4), 0.0  }
 0x768   : > { %2221 = vst.msk [vmem:[%s2545_s8 + $0x30] sm:$0x1f] (%p1749_p4), %vm1859_vm7, %v2472_v49 }
 0x76e PF: > { %s1861_s15 = sadd.s32 7, %s2519_s19 }
 0x76f   : > { %p2888_p5 = scmp.ge.s32.totalorder %s1861_s15, 8  ;;  %p2892_p6 = scmp.lt.s32.totalorder %s1861_s15, 16 }
 0x771   : > { %p1864_p7 = pnand %p2892_p6, %p2888_p5 }
 0x772   : > { %s2080_s24 = scalar_lea.vmem (!%p1864_p7), %s2928_s0, %s2519_s19  ;;  %v2224_v50 = vld [vmem:[%s2540_s5 + $0x38] sm:$0xff] (!%p1864_p7)  ;;  %v2473_v51 = vmov (!%p1864_p7), 0.0   ;;  %vm2474_vm8 = vmmov (!%p1864_p7), 0   ;;  %vm1882_vm9 = vcmask (!%p1864_p7), 64512   ;;  %vm1874_vm10 = vcmask (!%p1864_p7), 31744  }
 0x773   : > { %1867 = sbr.rel (%p1864_p7) target bundleno = 2129 (0x851), region = 108  ;;  %2337 = vmatprep.subr.mxu0 (!%p1864_p7), %v2473_v51  ;;  %v2223_v52 = vld [vmem:[%s2080_s24 - $0x1] sm:$0xff] (!%p1864_p7)  ;;  %2339 = vmatprep.mubr.msk.f32.mxu0 (!%p1864_p7), %vm2474_vm8, %v2473_v51  ;;  %v1956_v61 = vld [vmem:[%s2535_s28 + $0x7] sm:$0x1] (!%p1864_p7)  ;;  %vm1963_vm11 = vcmask (!%p1864_p7), 1040384   ;;  %vm1965_vm12 = vcmask (!%p1864_p7), 1041408  }
 0x774   : > { %v1873_v53 = vmul.f32 (!%p1864_p7), %v2224_v50, %v2223_v52  ;;  %vm1968_vm13 = vcmask (!%p1864_p7), 28672  }
 0x776   : > { %2338 = vmatpush3.msra.mxu0 (!%p1864_p7), %v1873_v53  ;;  %v1875_v54 = vsel (!%p1864_p7), %vm1874_vm10, %v1873_v53, 0.0 }
 0x777   : > { %2340 = vmatmul.mubr.msk.f32.vlgmr.msra.gmra.mrb[0].mxu0 (!%p1864_p7), %vm1882_vm9, %v2524_v0  ;;  %v1876_v55 = vrot.slane (!%p1864_p7), %v1875_v54, 4 }
 0x779   : > { %v1877_v56 = vadd.f32 (!%p1864_p7), %v1876_v55, %v1875_v54 }
 0x77b   : > { %v1878_v57 = vrot.slane %v1877_v56, 2 }
 0x77d   : > { %v1879_v58 = vadd.f32 %v1878_v57, %v1877_v56 }
 0x77f   : > { %v1880_v59 = vrot.slane %v1879_v58, 1 }
 0x781   : > { %v1881_v60 = vadd.f32 %v1880_v59, %v1879_v58 }
 0x783   : > { %2423 = vrcp.f32 %v1881_v60  ;;  %v1957_v63 = vmul.f32 %v1956_v61, %v1881_v60 }
 0x785   : > { %v1964_v4 = vsel %vm1963_vm11, %v1957_v63, 0.0 }
 0x78d   : > { %v2424_v62 = vpop.eup %2423 }
 0x84a   : > { %v1952_v1 = vpop.f32.mrb[0].mxu0 }
 0x84b   : > { %v1959_v2 = vmul.f32 %v2424_v62, %v1952_v1  ;;  %v2341_v3 = vpop.f32.mrb[1].mxu0 }
 0x84d   : > { %v1961_v0 = vrot.slane %v1959_v2, 6 }
 0x84f   : > { %v1966_v5 = vsel %vm1965_vm12, %v1964_v4, %v1961_v0 }
 0x850   : > { %2226 = vst.msk [vmem:[%s2545_s8 + $0x38] sm:$0x1f] %vm1968_vm13, %v1966_v5 }
 0x851 PF: > { %1972 = sbr.rel (!%p1864_p7) target bundleno = 2136 (0x858), region = 112  ;;  %vm1974_vm14 = vcmask (%p1864_p7), 28672   ;;  %v2475_v6 = vmov (%p1864_p7), 0.0  }
 0x852   : > { %2227 = vst.msk [vmem:[%s2545_s8 + $0x38] sm:$0x1f] (%p1864_p7), %vm1974_vm14, %v2475_v6 }
 0x858 PF: > { %s14_s17 = sadd.s32 1, %s2447_s17   ;;  %s2949_s15 = smov %s2443_s16 }
 0x859   : > { %p11_p8 = scmp.ge.s32.totalorder %s14_s17, 4   ;;  %s2950_s16 = smov %s2952_s18 }
 0x85b   :  { %13 = sbr.rel (!%p11_p8) target bundleno = 2 (0x2), region = 199 }

// kernel: age_lstm2_forward.2
= control target key start
LH: loop header
LB: loop body
LE: loop exit
PB: predicated region body
PF: predicated region fallthrough
CT: control target
= control target key end

     0   :  { %s6984_s24 = smov 0   ;;  %s6986_s25 = smov 0   ;;  %s8431_s0 = inlined_call_operand.vmem [shape: f32[16,4,4], index: 0, kind: input, shape index: {}]   ;;  %s8432_s1 = inlined_call_operand.vmem [shape: f32[128,4], index: 1, kind: input, shape index: {}]   ;;  %s8433_s2 = inlined_call_operand.vmem [shape: f32[128,1], index: 2, kind: input, shape index: {}]   ;;  %s8434_s3 = inlined_call_operand.vmem [shape: f32[128,32], index: 3, kind: input, shape index: {}]   ;;  %s8435_s4 = inlined_call_operand.vmem [shape: f32[10,32], index: 4, kind: input, shape index: {}]   ;;  %s8436_s5 = inlined_call_operand.vmem [shape: f32[10,1], index: 5, kind: input, shape index: {}]   ;;  %s8437_s6 = inlined_call_operand.vmem [shape: f32[16,8,4], index: 6, kind: output, shape index: {0}]   ;;  %s8438_s7 = inlined_call_operand.vmem [shape: f32[16,2,4], index: 7, kind: output, shape index: {1}]  }
   0x1   :  { %s6988_s26 = smov 0  }
   0x2 LB: > { %s27_s27 = sadd.s32 1, %s6936_s25  ;;  %p4751_p0 = scmp.ge.s32.totalorder %s6940_s26, 1  ;;  %s6940_s26 = sphi %s6988_s26, %s18_s26   ;;  %s6936_s25 = sphi %s6986_s25, %s8569_s25   ;;  %s6932_s24 = sphi %s6984_s24, %s8568_s24  }
   0x3   : > { %p28_p1 = scmp.ge.s32.totalorder %s27_s27, 2  ;;  %p262_p2 = scmp.lt.s32.totalorder %s6940_s26, 3 }
   0x5   : > { %s8571_s27 = smov (%p28_p1, %s27_s27), 0  ;;  %p263_p3 = pnand %p4751_p0, %p262_p2 }
   0x7   : > { %266 = sbr.rel (%p263_p3) target bundleno = 2796 (0xaec), region = 44 }
   0xe   : > { %s4752_s28 = sshll.u32 %s6932_s24, 3  ;;  %p4758_p5 = scmp.ne.s32.totalorder %s6932_s24, 0 }
   0xf   : > { %p309_p4 = scmp.lt.s32.totalorder %s4752_s28, 15  ;;  %vm339_vm0 = vcmask (!%p4758_p5), 31744   ;;  %v6942_v0 = vmov (!%p4758_p5), 0.0  }
  0x10   : > { %338 = sbr.rel (%p4758_p5) target bundleno = 23 (0x17), region = 48  ;;  %340 = vst.msk [vmem:[#allocation2] sm:$0xff] (!%p4758_p5), %vm339_vm0, %v6942_v0  ;;  %341 = vst.msk [vmem:[#allocation2 + $0x8] sm:$0xff] (!%p4758_p5), %vm339_vm0, %v6942_v0 }
  0x11   : > { %s8573_s28 = smov (!%p309_p4, %s4752_s28), 15  ;;  %342 = vst.msk [vmem:[#allocation2 + $0x10] sm:$0xff] (!%p4758_p5), %vm339_vm0, %v6942_v0  ;;  %343 = vst.msk [vmem:[#allocation2 + $0x18] sm:$0xff] (!%p4758_p5), %vm339_vm0, %v6942_v0 }
  0x12   : > { %s4753_s29 = sshll.u32 %s8573_s28, 2  ;;  %s4755_s30 = sshll.u32 %s8573_s28, 3  ;;  %344 = vst.msk [vmem:[#allocation3] sm:$0xff] (!%p4758_p5), %vm339_vm0, %v6942_v0  ;;  %345 = vst.msk [vmem:[#allocation3 + $0x8] sm:$0xff] (!%p4758_p5), %vm339_vm0, %v6942_v0 }
  0x13   : > { %s7005_s10 = scalar_lea.vmem %s8431_s0, %s4753_s29  ;;  %s7010_s13 = scalar_lea.vmem %s8437_s6, %s4755_s30  ;;  %346 = vst.msk [vmem:[#allocation3 + $0x10] sm:$0xff] (!%p4758_p5), %vm339_vm0, %v6942_v0  ;;  %347 = vst.msk [vmem:[#allocation3 + $0x18] sm:$0xff] (!%p4758_p5), %vm339_vm0, %v6942_v0 }
  0x14   : > { %s4757_s14 = sshll.u32 %s8573_s28, 1 }
  0x15   : > { %s7015_s17 = scalar_lea.vmem %s8438_s7, %s4757_s14 }
  0x17 PF: > { %v401_v1 = vld [vmem:[#allocation2] sm:$0xff]  ;;  %v402_v2 = vld [vmem:[#allocation2 + $0x8] sm:$0xff]  ;;  %vm405_vm1 = vcmask 261120   ;;  %v6943_v8 = vmov 0   ;;  %vm648_vm2 = vcmask 1043456   ;;  %v7033_v11 = vld [vmem:[%s8434_s3 + $0x10] sm:$0xff] }
  0x18   : > { %v403_v3 = vld [vmem:[#allocation2 + $0x10] sm:$0xff]  ;;  %v6054_v4 = vpack.c.bf16 %v402_v2, %v401_v1  ;;  %v404_v5 = vld [vmem:[#allocation2 + $0x18] sm:$0xff]  ;;  %v7020_v6 = vld [vmem:[%s8434_s3] sm:$0xff]  ;;  %6337 = vset.pattern.permute.xlu1 %v6943_v8  ;;  %6336 = vset.pattern.permute.xlu0 %v6943_v8  ;;  %vm599_vm3 = vcmask 31744   ;;  %vm1095_vm4 = vcmask 25600  }
  0x19   : > { %v6058_v7 = vpack.c.bf16 %v404_v5, %v403_v3  ;;  %5510 = vmatprep.mubr.msk.f32.mxu0 %vm405_vm1, %v7020_v6  ;;  %v400_v9 = vld [vmem:[%s7005_s10] sm:$0xf]  ;;  %v7028_v10 = vld [vmem:[%s8434_s3 + $0x8] sm:$0xff]  ;;  %v7043_v12 = vld [vmem:[%s8434_s3 + $0x18] sm:$0xff] }
  0x1a   : > { %6055 = vmatprep.subr.bf16.mxu0 %v6054_v4  ;;  %v368_v13 = vld [vmem:[%s8433_s2 + $0x20] sm:$0xff]  ;;  %v369_v16 = vld [vmem:[%s8433_s2 + $0x28] sm:$0xff]  ;;  %v7075_v19 = vld [vmem:[%s8434_s3 + $0x30] sm:$0xff] }
  0x1b   : > { %6057 = vmatpush3.bf16.msra.mxu0 %v6054_v4  ;;  %v364_v14 = vld [vmem:[%s8433_s2] sm:$0xff]  ;;  %819 = vperm.xlu1 %6337, %v368_v13   ;;  %v365_v17 = vld [vmem:[%s8433_s2 + $0x8] sm:$0xff]  ;;  %v367_v20 = vld [vmem:[%s8433_s2 + $0x18] sm:$0xff] }
  0x1c   : > { %6059 = vmatprep.subr.bf16.mxu0 %v6058_v7  ;;  %v7055_v15 = vld [vmem:[%s8434_s3 + $0x20] sm:$0xff]  ;;  %799 = vperm.xlu0 %6336, %v364_v14   ;;  %v7070_v18 = vld [vmem:[%s8434_s3 + $0x28] sm:$0xff]  ;;  %v366_v21 = vld [vmem:[%s8433_s2 + $0x10] sm:$0xff] }
  0x1d   : > { %v7090_v22 = vld [vmem:[%s8434_s3 + $0x38] sm:$0xff]  ;;  %v7095_v23 = vld [vmem:[%s8434_s3 + $0x40] sm:$0xff]  ;;  %v370_v25 = vld [vmem:[%s8433_s2 + $0x30] sm:$0xff] }
  0x1e   : > { %v371_v24 = vld [vmem:[%s8433_s2 + $0x38] sm:$0xff]  ;;  %v7110_v26 = vld [vmem:[%s8434_s3 + $0x48] sm:$0xff]  ;;  %v7115_v27 = vld [vmem:[%s8434_s3 + $0x50] sm:$0xff] }
  0x1f   : > { %6061 = vmatpush3.bf16.msra.mxu0 %v6058_v7  ;;  %824 = vperm.xlu1 %6337, %v369_v16   ;;  %v373_v28 = vld [vmem:[%s8433_s2 + $0x48] sm:$0xff]  ;;  %v372_v29 = vld [vmem:[%s8433_s2 + $0x40] sm:$0xff]  ;;  %v7130_v30 = vld [vmem:[%s8434_s3 + $0x58] sm:$0xff] }
  0x20   : > { %5534 = vmatprep.subr.msk.mxu0 %vm648_vm2, %v400_v9  ;;  %804 = vperm.xlu0 %6336, %v365_v17   ;;  %v7135_v31 = vld [vmem:[%s8434_s3 + $0x60] sm:$0xff]  ;;  %v377_v32 = vld [vmem:[%s8433_s2 + $0x68] sm:$0xff]  ;;  %v7155_v35 = vld [vmem:[%s8434_s3 + $0x70] sm:$0xff] }
  0x21   : > { %v376_v33 = vld [vmem:[%s8433_s2 + $0x60] sm:$0xff]  ;;  %v7150_v34 = vld [vmem:[%s8434_s3 + $0x68] sm:$0xff]  ;;  %v375_v36 = vld [vmem:[%s8433_s2 + $0x58] sm:$0xff] }
  0x22   : > { %5511 = vmatmul.mubr.msk.f32.vlgmr.msra.gmra.mrb[0].mxu0 %vm405_vm1, %v7028_v10  ;;  %v374_v37 = vld [vmem:[%s8433_s2 + $0x50] sm:$0xff]  ;;  %v7170_v38 = vld [vmem:[%s8434_s3 + $0x78] sm:$0xff]  ;;  %v7175_v39 = vld [vmem:[%s8432_s1] sm:$0xff] }
  0x23   : > { %5513 = vmatprep.mubr.msk.f32.mxu0 %vm405_vm1, %v7033_v11  ;;  %5535 = vmatpush3.msk.msra.mxu0 %vm648_vm2, %v400_v9  ;;  %v379_v40 = vld [vmem:[%s8433_s2 + $0x78] sm:$0xff]  ;;  %v378_v41 = vld [vmem:[%s8433_s2 + $0x70] sm:$0xff]  ;;  %v7190_v42 = vld [vmem:[%s8432_s1 + $0x8] sm:$0xff] }
  0x24   : > { %814 = vperm.xlu1 %6337, %v367_v20   ;;  %809 = vperm.xlu0 %6336, %v366_v21   ;;  %v7195_v43 = vld [vmem:[%s8432_s1 + $0x10] sm:$0xff]  ;;  %v399_v44 = vld [vmem:[%s8436_s5 + $0x8] sm:$0x3]  ;;  %v398_v45 = vld [vmem:[%s8436_s5] sm:$0xff] }
  0x25   : > { %v7210_v46 = vld [vmem:[%s8432_s1 + $0x18] sm:$0xff]  ;;  %v7215_v47 = vld [vmem:[%s8432_s1 + $0x20] sm:$0xff]  ;;  %v7224_v48 = vld [vmem:[%s8432_s1 + $0x28] sm:$0xff] }
  0x26   : > { %5514 = vmatmul.mubr.msk.f32.gmra.mrb[2].mxu0 %vm405_vm1, %v7043_v12  ;;  %v7229_v49 = vld [vmem:[%s8432_s1 + $0x30] sm:$0xff]  ;;  %v7238_v50 = vld [vmem:[%s8432_s1 + $0x38] sm:$0xff]  ;;  %v7243_v51 = vld [vmem:[%s8432_s1 + $0x40] sm:$0xff] }
  0x27   : > { %5516 = vmatprep.mubr.msk.f32.mxu0 %vm405_vm1, %v7055_v15  ;;  %v7252_v52 = vld [vmem:[%s8432_s1 + $0x48] sm:$0xff]  ;;  %v7257_v53 = vld [vmem:[%s8432_s1 + $0x50] sm:$0xff]  ;;  %v7266_v54 = vld [vmem:[%s8432_s1 + $0x58] sm:$0xff] }
  0x28   : > { %834 = vperm.xlu1 %6337, %v371_v24   ;;  %829 = vperm.xlu0 %6336, %v370_v25   ;;  %v7271_v55 = vld [vmem:[%s8432_s1 + $0x60] sm:$0xff]  ;;  %v7280_v56 = vld [vmem:[%s8432_s1 + $0x68] sm:$0xff]  ;;  %v7285_v57 = vld [vmem:[%s8432_s1 + $0x70] sm:$0xff] }
  0x29   : > { %v7294_v58 = vld [vmem:[%s8432_s1 + $0x78] sm:$0xff]  ;;  %v7301_v59 = vld [vmem:[%s8435_s4] sm:$0xff] }
  0x2a   : > { %5517 = vmatmul.mubr.msk.f32.gmra.mrb[4].mxu0 %vm405_vm1, %v7070_v18  ;;  %5568 = vmatprep.mubr.msk.f32.mxu1 %vm405_vm1, %v7301_v59 }
  0x2b   : > { %5519 = vmatprep.mubr.msk.f32.mxu0 %vm405_vm1, %v7075_v19 }
  0x2c   : > { %844 = vperm.xlu1 %6337, %v373_v28   ;;  %839 = vperm.xlu0 %6336, %v372_v29  }
  0x2e   : > { %5520 = vmatmul.mubr.msk.f32.gmra.mrb[6].mxu0 %vm405_vm1, %v7090_v22 }
  0x2f   : > { %5522 = vmatprep.mubr.msk.f32.mxu0 %vm405_vm1, %v7095_v23 }
  0x30   : > { %864 = vperm.xlu1 %6337, %v377_v32   ;;  %859 = vperm.xlu0 %6336, %v376_v33  }
  0x32   : > { %5523 = vmatmul.mubr.msk.f32.gmra.mrb[8].mxu0 %vm405_vm1, %v7110_v26 }
  0x33   : > { %5525 = vmatprep.mubr.msk.f32.mxu0 %vm405_vm1, %v7115_v27 }
  0x34   : > { %854 = vperm.xlu1 %6337, %v375_v36   ;;  %849 = vperm.xlu0 %6336, %v374_v37  }
  0x36   : > { %5526 = vmatmul.mubr.msk.f32.gmra.mrb[10].mxu0 %vm405_vm1, %v7130_v30 }
  0x37   : > { %5528 = vmatprep.mubr.msk.f32.mxu0 %vm405_vm1, %v7135_v31 }
  0x38   : > { %874 = vperm.xlu1 %6337, %v379_v40   ;;  %869 = vperm.xlu0 %6336, %v378_v41  }
  0x3a   : > { %5529 = vmatmul.mubr.msk.f32.gmra.mrb[12].mxu0 %vm405_vm1, %v7150_v34 }
  0x3b   : > { %5531 = vmatprep.mubr.msk.f32.mxu0 %vm405_vm1, %v7155_v35 }
  0x3c   : > { %1008 = vperm.xlu1 %6337, %v399_v44   ;;  %1003 = vperm.xlu0 %6336, %v398_v45  }
  0x3e   : > { %5532 = vmatmul.mubr.msk.f32.gmra.mrb[14].mxu0 %vm405_vm1, %v7170_v38 }
  0x3f   : > { %5536 = vmatprep.mubr.msk.f32.mxu0 %vm599_vm3, %v7175_v39 }
  0x42   : > { %5537 = vmatmul.mubr.msk.f32.vlgmr.msra.gmra.mrb[0].mxu0 %vm599_vm3, %v7190_v42 }
  0x43   : > { %5539 = vmatprep.mubr.msk.f32.mxu0 %vm599_vm3, %v7195_v43 }
  0x46   : > { %5540 = vmatmul.mubr.msk.f32.gmra.mrb[2].mxu0 %vm599_vm3, %v7210_v46 }
  0x47   : > { %5542 = vmatprep.mubr.msk.f32.mxu0 %vm599_vm3, %v7215_v47 }
  0x4a   : > { %5543 = vmatmul.mubr.msk.f32.gmra.mrb[4].mxu0 %vm599_vm3, %v7224_v48 }
  0x4b   : > { %5545 = vmatprep.mubr.msk.f32.mxu0 %vm599_vm3, %v7229_v49 }
  0x4e   : > { %5546 = vmatmul.mubr.msk.f32.gmra.mrb[6].mxu0 %vm599_vm3, %v7238_v50 }
  0x4f   : > { %5548 = vmatprep.mubr.msk.f32.mxu0 %vm599_vm3, %v7243_v51 }
  0x52   : > { %5549 = vmatmul.mubr.msk.f32.gmra.mrb[8].mxu0 %vm599_vm3, %v7252_v52 }
  0x53   : > { %5551 = vmatprep.mubr.msk.f32.mxu0 %vm599_vm3, %v7257_v53 }
  0x56   : > { %5552 = vmatmul.mubr.msk.f32.gmra.mrb[10].mxu0 %vm599_vm3, %v7266_v54 }
  0x57   : > { %5554 = vmatprep.mubr.msk.f32.mxu0 %vm599_vm3, %v7271_v55 }
  0x5a   : > { %5555 = vmatmul.mubr.msk.f32.gmra.mrb[12].mxu0 %vm599_vm3, %v7280_v56 }
  0x5b   : > { %5557 = vmatprep.mubr.msk.f32.mxu0 %vm599_vm3, %v7285_v57 }
  0x5e   : > { %5558 = vmatmul.mubr.msk.f32.gmra.mrb[14].mxu0 %vm599_vm3, %v7294_v58 }
  0x5f   : > { %5637 = vmatprep.mubr.msk.f32.mxu0 %vm405_vm1, %v7301_v59 }
  0x9a   : > { %v7307_v60 = vpop.permute.xlu1 %819 }
  0x9b   : > { %8493 = vst [vmem:[#allocation4_spill] sm:$0xff] %v7307_v60  ;;  %v7309_v61 = vpop.permute.xlu0 %799 }
  0x9c   : > { %8494 = vst [vmem:[#allocation5_spill] sm:$0xff] %v7309_v61 }
  0x9e   : > { %v7311_v62 = vpop.permute.xlu1 %824 }
  0x9f   : > { %8495 = vst [vmem:[#allocation6_spill] sm:$0xff] %v7311_v62  ;;  %v7313_v63 = vpop.permute.xlu0 %804 }
  0xa3   : > { %v7315_v0 = vpop.permute.xlu1 %814  ;;  %v7317_v1 = vpop.permute.xlu0 %809 }
  0xa4   : > { %8496 = vst [vmem:[#allocation7_spill] sm:$0xff] %v7317_v1 }
  0xa7   : > { %v7320_v5 = vpop.permute.xlu1 %834  ;;  %v7323_v14 = vpop.permute.xlu0 %829 }
  0xa8   : > { %8497 = vst [vmem:[#allocation8_spill] sm:$0xff] %v7320_v5  ;;  %8498 = vst [vmem:[#allocation9_spill] sm:$0xff] %v7323_v14 }
  0xab   : > { %v7327_v24 = vpop.permute.xlu1 %844  ;;  %v7331_v36 = vpop.permute.xlu0 %839 }
  0xac   : > { %8499 = vst [vmem:[#allocation10_spill] sm:$0xff] %v7327_v24  ;;  %8500 = vst [vmem:[#allocation11_spill] sm:$0xff] %v7331_v36 }
 0x115   : > { %v5538_v2 = vpop.f32.mrb[0].mxu0 }
 0x116   : > { %v878_v3 = vadd.f32 %v5538_v2, %v7313_v63  ;;  %v718_v4 = vpop.f32.mrb[1].mxu0  ;;  %v7334_v2 = vpop.permute.xlu1 %864 }
 0x117   : > { %v877_v7 = vadd.f32 %v7309_v61, %v718_v4  ;;  %8501 = vst [vmem:[#allocation12_spill] sm:$0xff] %v7334_v2 }
 0x118   : > { %v4793_v8 = vmul.f32 -1.442695, %v878_v3 }
 0x119   : > { %v4792_v9 = vmul.f32 -1.442695, %v877_v7  ;;  %v5541_v13 = vpop.f32.mrb[2].mxu0 }
 0x11a   : > { %6338 = vpow2.f32 %v4793_v8  ;;  %v880_v16 = vadd.f32 %v5541_v13, %v7315_v0  ;;  %v728_v17 = vpop.f32.mrb[3].mxu0 }
 0x11b   : > { %6340 = vpow2.f32 %v4792_v9  ;;  %v879_v20 = vadd.f32 %v7317_v1, %v728_v17  ;;  %v7337_v17 = vpop.permute.xlu0 %859 }
 0x11c   : > { %v4795_v21 = vmul.f32 -1.442695, %v880_v16  ;;  %8502 = vst [vmem:[#allocation13_spill] sm:$0xff] %v7337_v17 }
 0x11d   : > { %v4794_v25 = vmul.f32 -1.442695, %v879_v20  ;;  %v5544_v28 = vpop.f32.mrb[4].mxu0 }
 0x11e   : > { %6342 = vpow2.f32 %v4795_v21  ;;  %v882_v29 = vadd.f32 %v5544_v28, %v7311_v62  ;;  %v738_v32 = vpop.f32.mrb[5].mxu0 }
 0x11f   : > { %6344 = vpow2.f32 %v4794_v25  ;;  %v881_v33 = vadd.f32 %v7307_v60, %v738_v32  ;;  %v7340_v32 = vpop.permute.xlu1 %854 }
 0x120   : > { %v4797_v37 = vmul.f32 -1.442695, %v882_v29  ;;  %8503 = vst [vmem:[#allocation14_spill] sm:$0xff] %v7340_v32 }
 0x121   : > { %v4796_v40 = vmul.f32 -1.442695, %v881_v33  ;;  %v5547_v41 = vpop.f32.mrb[6].mxu0 }
 0x122   : > { %6346 = vpow2.f32 %v4797_v37  ;;  %v884_v44 = vadd.f32 %v5547_v41, %v7320_v5  ;;  %v748_v45 = vpop.f32.mrb[7].mxu0 }
 0x123   : > { %6348 = vpow2.f32 %v4796_v40  ;;  %v883_v3 = vadd.f32 %v7323_v14, %v748_v45 }
 0x124   : > { %v6339_v4 = vpop.eup %6338  ;;  %v4799_v7 = vmul.f32 -1.442695, %v884_v44 }
 0x125   : > { %v6341_v8 = vpop.eup %6340  ;;  %v906_v9 = vadd.f32 1.0, %v6339_v4  ;;  %v4798_v13 = vmul.f32 -1.442695, %v883_v3  ;;  %v5550_v16 = vpop.f32.mrb[8].mxu0 }
 0x126   : > { %v905_v20 = vadd.f32 1.0, %v6341_v8  ;;  %6350 = vpow2.f32 %v4799_v7  ;;  %v886_v21 = vadd.f32 %v5550_v16, %v7327_v24  ;;  %v758_v25 = vpop.f32.mrb[9].mxu0  ;;  %v7344_v4 = vpop.permute.xlu0 %849 }
 0x127   : > { %6352 = vrcp.f32 %v906_v9  ;;  %v885_v37 = vadd.f32 %v7331_v36, %v758_v25  ;;  %8504 = vst [vmem:[#allocation15_spill] sm:$0xff] %v7344_v4  ;;  %v969_v36 = vld [vmem:[#allocation3] sm:$0xff] }
 0x128   : > { %v6343_v28 = vpop.eup %6342  ;;  %6354 = vrcp.f32 %v905_v20 }
 0x129   : > { %v6345_v29 = vpop.eup %6344  ;;  %v908_v33 = vadd.f32 1.0, %v6343_v28  ;;  %6356 = vpow2.f32 %v4798_v13  ;;  %v5553_v40 = vpop.f32.mrb[10].mxu0 }
 0x12a   : > { %v907_v41 = vadd.f32 1.0, %v6345_v29  ;;  %6358 = vtanh.f32 %v886_v21  ;;  %v888_v44 = vadd.f32 %v5553_v40, %v7340_v32  ;;  %v768_v45 = vpop.f32.mrb[11].mxu0  ;;  %v7349_v40 = vpop.permute.xlu1 %874  ;;  %v970_v32 = vld [vmem:[#allocation3 + $0x8] sm:$0xff] }
 0x12b   : > { %6360 = vrcp.f32 %v908_v33  ;;  %v887_v9 = vadd.f32 %v7344_v4, %v768_v45  ;;  %8505 = vst [vmem:[#allocation16_spill] sm:$0xff] %v7349_v40  ;;  %v7351_v4 = vpop.permute.xlu0 %869 }
 0x12c   : > { %v6347_v3 = vpop.eup %6346  ;;  %6362 = vrcp.f32 %v907_v41  ;;  %8506 = vst [vmem:[#allocation17_spill] sm:$0xff] %v7351_v4 }
 0x12d   : > { %v6349_v7 = vpop.eup %6348  ;;  %v930_v8 = vadd.f32 1.0, %v6347_v3  ;;  %6364 = vtanh.f32 %v885_v37  ;;  %v5556_v16 = vpop.f32.mrb[12].mxu0 }
 0x12e   : > { %v929_v13 = vadd.f32 1.0, %v6349_v7  ;;  %6366 = vtanh.f32 %v888_v44  ;;  %v890_v20 = vadd.f32 %v5556_v16, %v7334_v2  ;;  %v778_v25 = vpop.f32.mrb[13].mxu0 }
 0x12f   : > { %6368 = vrcp.f32 %v930_v8  ;;  %v889_v21 = vadd.f32 %v7337_v17, %v778_v25 }
 0x130   : > { %v6351_v28 = vpop.eup %6350  ;;  %6370 = vrcp.f32 %v929_v13  ;;  %v4801_v29 = vmul.f32 -1.442695, %v890_v20 }
 0x131   : > { %v6353_v33 = vpop.eup %6352  ;;  %v932_v41 = vadd.f32 1.0, %v6351_v28  ;;  %6372 = vtanh.f32 %v887_v9  ;;  %v4800_v37 = vmul.f32 -1.442695, %v889_v21  ;;  %v5559_v3 = vpop.f32.mrb[14].mxu0 }
 0x132   : > { %v6355_v45 = vpop.eup %6354  ;;  %6374 = vpow2.f32 %v4801_v29  ;;  %v892_v44 = vadd.f32 %v5559_v3, %v7349_v40  ;;  %v788_v7 = vpop.f32.mrb[15].mxu0 }
 0x133   : > { %v6357_v8 = vpop.eup %6356  ;;  %6376 = vrcp.f32 %v932_v41  ;;  %v891_v16 = vadd.f32 %v7351_v4, %v788_v7 }
 0x134   : > { %v6359_v13 = vpop.eup %6358  ;;  %v931_v20 = vadd.f32 1.0, %v6357_v8  ;;  %6378 = vpow2.f32 %v4800_v37  ;;  %v4803_v25 = vmul.f32 -1.442695, %v892_v44  ;;  %v972_v37 = vld [vmem:[#allocation3 + $0x18] sm:$0xff] }
 0x135   : > { %v6361_v17 = vpop.eup %6360  ;;  %v978_v28 = vmul.f32 %v6359_v13, %v6353_v33  ;;  %v4802_v9 = vmul.f32 -1.442695, %v891_v16 }
 0x136   : > { %v6363_v21 = vpop.eup %6362  ;;  %6380 = vrcp.f32 %v931_v20 }
 0x137   : > { %v6365_v2 = vpop.eup %6364  ;;  %6382 = vpow2.f32 %v4803_v25  ;;  %v971_v25 = vld [vmem:[#allocation3 + $0x10] sm:$0xff] }
 0x138   : > { %v6367_v29 = vpop.eup %6366  ;;  %v977_v3 = vmul.f32 %v6365_v2, %v6355_v45  ;;  %6384 = vpow2.f32 %v4802_v9 }
 0x139   : > { %v6369_v40 = vpop.eup %6368  ;;  %v980_v41 = vmul.f32 %v6367_v29, %v6361_v17 }
 0x13a   : > { %v6371_v24 = vpop.eup %6370  ;;  %v974_v7 = vmul.f32 %v6369_v40, %v970_v32 }
 0x13b   : > { %v6373_v4 = vpop.eup %6372  ;;  %v973_v8 = vmul.f32 %v6371_v24, %v969_v36 }
 0x13c   : > { %v6375_v44 = vpop.eup %6374  ;;  %v982_v14 = vadd.f32 %v978_v28, %v974_v7  ;;  %v979_v33 = vmul.f32 %v6373_v4, %v6363_v21 }
 0x13d   : > { %v6377_v16 = vpop.eup %6376  ;;  %v981_v13 = vadd.f32 %v977_v3, %v973_v8  ;;  %v958_v20 = vadd.f32 1.0, %v6375_v44 }
 0x13e   : > { %v6379_v5 = vpop.eup %6378  ;;  %v976_v60 = vmul.f32 %v6377_v16, %v972_v37  ;;  %994 = vst.msk [vmem:[#allocation3 + $0x8] sm:$0xff] %vm599_vm3, %v982_v14  ;;  %6386 = vtanh.f32 %v982_v14 }
 0x13f   : > { %993 = vst.msk [vmem:[#allocation3] sm:$0xff] %vm599_vm3, %v981_v13  ;;  %6388 = vrcp.f32 %v958_v20  ;;  %v957_v2 = vadd.f32 1.0, %v6379_v5 }
 0x140   : > { %v6381_v17 = vpop.eup %6380  ;;  %v984_v32 = vadd.f32 %v980_v41, %v976_v60  ;;  %6390 = vtanh.f32 %v981_v13 }
 0x141   : > { %v6383_v24 = vpop.eup %6382  ;;  %v975_v36 = vmul.f32 %v6381_v17, %v971_v25  ;;  %6392 = vrcp.f32 %v957_v2  ;;  %v7366_v25 = vld [vmem:[%s8435_s4 + $0x8] sm:$0x3] }
 0x142   : > { %v6385_v4 = vpop.eup %6384  ;;  %6394 = vtanh.f32 %v984_v32  ;;  %996 = vst.msk [vmem:[#allocation3 + $0x18] sm:$0xff] %vm599_vm3, %v984_v32  ;;  %v960_v40 = vadd.f32 1.0, %v6383_v24 }
 0x143   : > { %v983_v45 = vadd.f32 %v979_v33, %v975_v36  ;;  %v959_v28 = vadd.f32 1.0, %v6385_v4  ;;  %v4806_v36 = vld [vmem:[%s7005_s10 + $0x4] sm:$0xf]  ;;  %v7439_v4 = vpop.permute.xlu1 %1008 }
 0x144   : > { %6396 = vrcp.f32 %v960_v40  ;;  %8507 = vst [vmem:[#allocation18_spill] sm:$0xff] %v7439_v4 }
 0x145   : > { %6398 = vtanh.f32 %v983_v45  ;;  %995 = vst.msk [vmem:[#allocation3 + $0x10] sm:$0xff] %vm599_vm3, %v983_v45  ;;  %v7441_v45 = vpop.permute.xlu0 %1003 }
 0x146   : > { %6400 = vrcp.f32 %v959_v28 }
 0x148   : > { %v6387_v14 = vpop.eup %6386 }
 0x149   : > { %v6389_v5 = vpop.eup %6388 }
 0x14a   : > { %v6391_v9 = vpop.eup %6390  ;;  %v990_v60 = vmul.f32 %v6389_v5, %v6387_v14 }
 0x14b   : > { %v6393_v21 = vpop.eup %6392 }
 0x14c   : > { %v6395_v29 = vpop.eup %6394  ;;  %v989_v3 = vmul.f32 %v6393_v21, %v6391_v9  ;;  %998 = vst.msk [vmem:[#allocation2 + $0x8] sm:$0xff] %vm599_vm3, %v990_v60 }
 0x14e   : > { %v6397_v41 = vpop.eup %6396  ;;  %997 = vst.msk [vmem:[#allocation2] sm:$0xff] %vm599_vm3, %v989_v3  ;;  %v6062_v7 = vpack.c.bf16 %v990_v60, %v989_v3 }
 0x14f   : > { %v6399_v8 = vpop.eup %6398  ;;  %v992_v37 = vmul.f32 %v6397_v41, %v6395_v29 }
 0x150   : > { %v6401_v44 = vpop.eup %6400  ;;  %6063 = vmatprep.subr.bf16.mxu1 %v6062_v7 }
 0x151   : > { %6065 = vmatpush3.bf16.msra.mxu1 %v6062_v7  ;;  %v991_v33 = vmul.f32 %v6401_v44, %v6399_v8  ;;  %1000 = vst.msk [vmem:[#allocation2 + $0x18] sm:$0xff] %vm599_vm3, %v992_v37 }
 0x153   : > { %999 = vst.msk [vmem:[#allocation2 + $0x10] sm:$0xff] %vm599_vm3, %v991_v33  ;;  %v6066_v16 = vpack.c.bf16 %v992_v37, %v991_v33  ;;  %v1100_v13 = vld [vmem:[#allocation2 + $0x8] sm:$0xff] }
 0x155   : > { %6067 = vmatprep.subr.bf16.mxu1 %v6066_v16  ;;  %v1099_v20 = vld [vmem:[#allocation2] sm:$0xff] }
 0x156   : > { %6069 = vmatpush3.bf16.msra.mxu1 %v6066_v16  ;;  %v6070_v2 = vpack.c.bf16 %v1100_v13, %v1099_v20 }
 0x158   : > { %6071 = vmatprep.subr.bf16.mxu1 %v6070_v2  ;;  %v1102_v17 = vld [vmem:[#allocation2 + $0x18] sm:$0xff] }
 0x159   : > { %5569 = vmatmul.mubr.msk.f32.vlgmr.msra.gmra.mrb[0].mxu1 %vm405_vm1, %v7366_v25 }
 0x15a   : > { %6073 = vmatpush3.bf16.msra.mxu1 %v6070_v2  ;;  %v1101_v32 = vld [vmem:[#allocation2 + $0x10] sm:$0xff]  ;;  %5579 = vmatprep.mubr.msk.f32.mxu1 %vm405_vm1, %v7020_v6 }
 0x15b   : > { %v6074_v24 = vpack.c.bf16 %v1102_v17, %v1101_v32 }
 0x15d   : > { %6075 = vmatprep.subr.bf16.mxu1 %v6074_v24 }
 0x15e   : > { %6077 = vmatpush3.bf16.msra.mxu1 %v6074_v24  ;;  %v8508_v24 = vld [vmem:[#allocation4_spill] sm:$0xff] }
 0x15f   : > { %5603 = vmatprep.subr.msk.mxu1 %vm648_vm2, %v4806_v36 }
 0x161   : > { %5580 = vmatmul.mubr.msk.f32.vlgmr.msra.gmra.mrb[2].mxu1 %vm405_vm1, %v7028_v10 }
 0x162   : > { %5582 = vmatprep.mubr.msk.f32.mxu1 %vm405_vm1, %v7033_v11  ;;  %5604 = vmatpush3.msk.msra.mxu1 %vm648_vm2, %v4806_v36 }
 0x165   : > { %5583 = vmatmul.mubr.msk.f32.gmra.mrb[4].mxu1 %vm405_vm1, %v7043_v12 }
 0x166   : > { %5585 = vmatprep.mubr.msk.f32.mxu1 %vm405_vm1, %v7055_v15 }
 0x169   : > { %5586 = vmatmul.mubr.msk.f32.gmra.mrb[6].mxu1 %vm405_vm1, %v7070_v18 }
 0x16a   : > { %5588 = vmatprep.mubr.msk.f32.mxu1 %vm405_vm1, %v7075_v19 }
 0x16d   : > { %5589 = vmatmul.mubr.msk.f32.gmra.mrb[8].mxu1 %vm405_vm1, %v7090_v22 }
 0x16e   : > { %5591 = vmatprep.mubr.msk.f32.mxu1 %vm405_vm1, %v7095_v23 }
 0x171   : > { %5592 = vmatmul.mubr.msk.f32.gmra.mrb[10].mxu1 %vm405_vm1, %v7110_v26 }
 0x172   : > { %5594 = vmatprep.mubr.msk.f32.mxu1 %vm405_vm1, %v7115_v27 }
 0x175   : > { %5595 = vmatmul.mubr.msk.f32.gmra.mrb[12].mxu1 %vm405_vm1, %v7130_v30 }
 0x176   : > { %5597 = vmatprep.mubr.msk.f32.mxu1 %vm405_vm1, %v7135_v31 }
 0x179   : > { %5598 = vmatmul.mubr.msk.f32.gmra.mrb[14].mxu1 %vm405_vm1, %v7150_v34 }
 0x17a   : > { %5600 = vmatprep.mubr.msk.f32.mxu1 %vm405_vm1, %v7155_v35 }
 0x17d   : > { %5601 = vmatmul.mubr.msk.f32.gmra.mrb[16].mxu1 %vm405_vm1, %v7170_v38 }
 0x17e   : > { %5605 = vmatprep.mubr.msk.f32.mxu1 %vm599_vm3, %v7175_v39 }
 0x181   : > { %5606 = vmatmul.mubr.msk.f32.vlgmr.msra.gmra.mrb[2].mxu1 %vm599_vm3, %v7190_v42 }
 0x182   : > { %5608 = vmatprep.mubr.msk.f32.mxu1 %vm599_vm3, %v7195_v43 }
 0x185   : > { %5609 = vmatmul.mubr.msk.f32.gmra.mrb[4].mxu1 %vm599_vm3, %v7210_v46 }
 0x186   : > { %5611 = vmatprep.mubr.msk.f32.mxu1 %vm599_vm3, %v7215_v47 }
 0x189   : > { %5612 = vmatmul.mubr.msk.f32.gmra.mrb[6].mxu1 %vm599_vm3, %v7224_v48 }
 0x18a   : > { %5614 = vmatprep.mubr.msk.f32.mxu1 %vm599_vm3, %v7229_v49 }
 0x18d   : > { %5615 = vmatmul.mubr.msk.f32.gmra.mrb[8].mxu1 %vm599_vm3, %v7238_v50 }
 0x18e   : > { %5617 = vmatprep.mubr.msk.f32.mxu1 %vm599_vm3, %v7243_v51 }
 0x191   : > { %5618 = vmatmul.mubr.msk.f32.gmra.mrb[10].mxu1 %vm599_vm3, %v7252_v52 }
 0x192   : > { %5620 = vmatprep.mubr.msk.f32.mxu1 %vm599_vm3, %v7257_v53 }
 0x195   : > { %5621 = vmatmul.mubr.msk.f32.gmra.mrb[12].mxu1 %vm599_vm3, %v7266_v54 }
 0x196   : > { %5623 = vmatprep.mubr.msk.f32.mxu1 %vm599_vm3, %v7271_v55 }
 0x199   : > { %5624 = vmatmul.mubr.msk.f32.gmra.mrb[14].mxu1 %vm599_vm3, %v7280_v56 }
 0x19a   : > { %5626 = vmatprep.mubr.msk.f32.mxu1 %vm599_vm3, %v7285_v57 }
 0x19d   : > { %5627 = vmatmul.mubr.msk.f32.gmra.mrb[16].mxu1 %vm599_vm3, %v7294_v58 }
 0x19e   : > { %5706 = vmatprep.mubr.msk.f32.mxu1 %vm405_vm1, %v7301_v59 }
 0x22c   : > { %v5570_v40 = vpop.f32.mrb[0].mxu1 }
 0x22d   : > { %v1089_v28 = vadd.f32 %v5570_v40, %v7439_v4  ;;  %v1083_v14 = vpop.f32.mrb[1].mxu1 }
 0x22e   : > { %v1084_v5 = vadd.f32 %v1083_v14, %v7441_v45 }
 0x22f   : > { %v1093_v9 = vmax.f32 %v1089_v28, 0.0 }
 0x230   : > { %v1092_v60 = vmax.f32 %v1084_v5, 0.0  ;;  %v8509_v5 = vld [vmem:[#allocation8_spill] sm:$0xff] }
 0x231   : > { %1096 = vst.msk [vmem:[%s7015_s17] sm:$0x3] %vm1095_vm4, %v1093_v9 }
 0x232   : > { %1094 = vst.msk [vmem:[%s7010_s13] sm:$0xff] %vm599_vm3, %v1092_v60 }
 0x254   : > { %v5607_v21 = vpop.f32.mrb[2].mxu1 }
 0x255   : > { %v1397_v29 = vadd.f32 %v5607_v21, %v7313_v63  ;;  %v1317_v3 = vpop.f32.mrb[3].mxu1  ;;  %v8510_v21 = vld [vmem:[#allocation9_spill] sm:$0xff] }
 0x256   : > { %v1396_v41 = vadd.f32 %v1317_v3, %v7309_v61 }
 0x257   : > { %v4841_v7 = vmul.f32 -1.442695, %v1397_v29 }
 0x258   : > { %v4840_v8 = vmul.f32 -1.442695, %v1396_v41  ;;  %v5610_v37 = vpop.f32.mrb[4].mxu1 }
 0x259   : > { %6402 = vpow2.f32 %v4841_v7  ;;  %v1399_v44 = vadd.f32 %v5610_v37, %v7315_v0  ;;  %v1327_v33 = vpop.f32.mrb[5].mxu1 }
 0x25a   : > { %6404 = vpow2.f32 %v4840_v8  ;;  %v1398_v16 = vadd.f32 %v1327_v33, %v7317_v1 }
 0x25b   : > { %v4843_v13 = vmul.f32 -1.442695, %v1399_v44 }
 0x25c   : > { %v4842_v20 = vmul.f32 -1.442695, %v1398_v16  ;;  %v5613_v2 = vpop.f32.mrb[6].mxu1  ;;  %v8511_v16 = vld [vmem:[#allocation10_spill] sm:$0xff] }
 0x25d   : > { %6406 = vpow2.f32 %v4843_v13  ;;  %v1401_v17 = vadd.f32 %v5613_v2, %v7311_v62  ;;  %v1337_v32 = vpop.f32.mrb[7].mxu1 }
 0x25e   : > { %6408 = vpow2.f32 %v4842_v20  ;;  %v1400_v36 = vadd.f32 %v1337_v32, %v8508_v24 }
 0x25f   : > { %v4845_v40 = vmul.f32 -1.442695, %v1401_v17 }
 0x260   : > { %v4844_v28 = vmul.f32 -1.442695, %v1400_v36  ;;  %v5616_v14 = vpop.f32.mrb[8].mxu1  ;;  %v8512_v36 = vld [vmem:[#allocation11_spill] sm:$0xff] }
 0x261   : > { %6410 = vpow2.f32 %v4845_v40  ;;  %v1403_v9 = vadd.f32 %v5616_v14, %v8509_v5  ;;  %v1347_v60 = vpop.f32.mrb[9].mxu1 }
 0x262   : > { %6412 = vpow2.f32 %v4844_v28  ;;  %v1402_v29 = vadd.f32 %v1347_v60, %v8510_v21 }
 0x263   : > { %v6403_v3 = vpop.eup %6402  ;;  %v4847_v41 = vmul.f32 -1.442695, %v1403_v9  ;;  %v8513_v9 = vld [vmem:[#allocation14_spill] sm:$0xff] }
 0x264   : > { %v6405_v7 = vpop.eup %6404  ;;  %v1425_v8 = vadd.f32 1.0, %v6403_v3  ;;  %v4846_v37 = vmul.f32 -1.442695, %v1402_v29  ;;  %v5619_v44 = vpop.f32.mrb[10].mxu1 }
 0x265   : > { %v1424_v33 = vadd.f32 1.0, %v6405_v7  ;;  %6414 = vpow2.f32 %v4847_v41  ;;  %v1405_v13 = vadd.f32 %v5619_v44, %v8511_v16  ;;  %v1357_v20 = vpop.f32.mrb[11].mxu1 }
 0x266   : > { %6416 = vrcp.f32 %v1425_v8  ;;  %v1404_v40 = vadd.f32 %v1357_v20, %v8512_v36  ;;  %v8514_v8 = vld [vmem:[#allocation15_spill] sm:$0xff] }
 0x267   : > { %v6407_v2 = vpop.eup %6406  ;;  %6418 = vrcp.f32 %v1424_v33 }
 0x268   : > { %v6409_v17 = vpop.eup %6408  ;;  %v1427_v32 = vadd.f32 1.0, %v6407_v2  ;;  %6420 = vpow2.f32 %v4846_v37  ;;  %v5622_v28 = vpop.f32.mrb[12].mxu1  ;;  %v8515_v37 = vld [vmem:[#allocation12_spill] sm:$0xff] }
 0x269   : > { %v1426_v14 = vadd.f32 1.0, %v6409_v17  ;;  %6422 = vtanh.f32 %v1405_v13  ;;  %v1407_v60 = vadd.f32 %v5622_v28, %v8513_v9  ;;  %v1367_v29 = vpop.f32.mrb[13].mxu1  ;;  %v8516_v17 = vld [vmem:[#allocation13_spill] sm:$0xff] }
 0x26a   : > { %6424 = vrcp.f32 %v1427_v32  ;;  %v1406_v44 = vadd.f32 %v1367_v29, %v8514_v8  ;;  %v8517_v29 = vld [vmem:[#allocation16_spill] sm:$0xff] }
 0x26b   : > { %v6411_v3 = vpop.eup %6410  ;;  %6426 = vrcp.f32 %v1426_v14 }
 0x26c   : > { %v6413_v41 = vpop.eup %6412  ;;  %v1449_v7 = vadd.f32 1.0, %v6411_v3  ;;  %6428 = vtanh.f32 %v1404_v40  ;;  %v5625_v33 = vpop.f32.mrb[14].mxu1 }
 0x26d   : > { %v1448_v16 = vadd.f32 1.0, %v6413_v41  ;;  %6430 = vtanh.f32 %v1407_v60  ;;  %v1409_v2 = vadd.f32 %v5625_v33, %v8515_v37  ;;  %v1377_v20 = vpop.f32.mrb[15].mxu1  ;;  %v8518_v33 = vld [vmem:[#allocation17_spill] sm:$0xff] }
 0x26e   : > { %6432 = vrcp.f32 %v1449_v7  ;;  %v1408_v13 = vadd.f32 %v1377_v20, %v8516_v17 }
 0x26f   : > { %v6415_v36 = vpop.eup %6414  ;;  %6434 = vrcp.f32 %v1448_v16  ;;  %v4849_v28 = vmul.f32 -1.442695, %v1409_v2 }
 0x270   : > { %v6417_v32 = vpop.eup %6416  ;;  %v1451_v9 = vadd.f32 1.0, %v6415_v36  ;;  %6436 = vtanh.f32 %v1406_v44  ;;  %v4848_v14 = vmul.f32 -1.442695, %v1408_v13  ;;  %v5628_v3 = vpop.f32.mrb[16].mxu1 }
 0x271   : > { %v6419_v40 = vpop.eup %6418  ;;  %6438 = vpow2.f32 %v4849_v28  ;;  %v1411_v8 = vadd.f32 %v5628_v3, %v8517_v29  ;;  %v1387_v41 = vpop.f32.mrb[17].mxu1  ;;  %v1489_v29 = vld [vmem:[#allocation3 + $0x8] sm:$0xff] }
 0x272   : > { %v6421_v60 = vpop.eup %6420  ;;  %6440 = vrcp.f32 %v1451_v9  ;;  %v1410_v37 = vadd.f32 %v1387_v41, %v8518_v33  ;;  %v1488_v41 = vld [vmem:[#allocation3] sm:$0xff] }
 0x273   : > { %v6423_v7 = vpop.eup %6422  ;;  %v1450_v21 = vadd.f32 1.0, %v6421_v60  ;;  %6442 = vpow2.f32 %v4848_v14  ;;  %v4851_v20 = vmul.f32 -1.442695, %v1411_v8 }
 0x274   : > { %v6425_v16 = vpop.eup %6424  ;;  %v1497_v2 = vmul.f32 %v6423_v7, %v6417_v32  ;;  %v4850_v17 = vmul.f32 -1.442695, %v1410_v37  ;;  %v1491_v37 = vld [vmem:[#allocation3 + $0x18] sm:$0xff] }
 0x275   : > { %v6427_v36 = vpop.eup %6426  ;;  %6444 = vrcp.f32 %v1450_v21 }
 0x276   : > { %v6429_v44 = vpop.eup %6428  ;;  %6446 = vpow2.f32 %v4851_v20 }
 0x277   : > { %v6431_v13 = vpop.eup %6430  ;;  %v1496_v28 = vmul.f32 %v6429_v44, %v6419_v40  ;;  %6448 = vpow2.f32 %v4850_v17 }
 0x278   : > { %v6433_v3 = vpop.eup %6432  ;;  %v1499_v5 = vmul.f32 %v6431_v13, %v6425_v16 }
 0x279   : > { %v6435_v9 = vpop.eup %6434  ;;  %v1493_v24 = vmul.f32 %v6433_v3, %v1489_v29  ;;  %v1490_v29 = vld [vmem:[#allocation3 + $0x10] sm:$0xff] }
 0x27a   : > { %v6437_v33 = vpop.eup %6436  ;;  %v1492_v60 = vmul.f32 %v6435_v9, %v1488_v41 }
 0x27b   : > { %v6439_v14 = vpop.eup %6438  ;;  %v1501_v8 = vadd.f32 %v1497_v2, %v1493_v24  ;;  %v1498_v62 = vmul.f32 %v6437_v33, %v6427_v36 }
 0x27c   : > { %v6441_v32 = vpop.eup %6440  ;;  %v1500_v7 = vadd.f32 %v1496_v28, %v1492_v60  ;;  %v1477_v21 = vadd.f32 1.0, %v6439_v14 }
 0x27d   : > { %v6443_v1 = vpop.eup %6442  ;;  %v1495_v20 = vmul.f32 %v6441_v32, %v1491_v37  ;;  %6450 = vtanh.f32 %v1501_v8  ;;  %1513 = vst.msk [vmem:[#allocation3 + $0x8] sm:$0xff] %vm599_vm3, %v1501_v8 }
 0x27e   : > { %6452 = vtanh.f32 %v1500_v7  ;;  %1512 = vst.msk [vmem:[#allocation3] sm:$0xff] %vm599_vm3, %v1500_v7  ;;  %v1476_v17 = vadd.f32 1.0, %v6443_v1 }
 0x27f   : > { %v6445_v40 = vpop.eup %6444  ;;  %v1503_v16 = vadd.f32 %v1499_v5, %v1495_v20  ;;  %6454 = vrcp.f32 %v1477_v21 }
 0x280   : > { %v6447_v44 = vpop.eup %6446  ;;  %v1494_v24 = vmul.f32 %v6445_v40, %v1490_v29  ;;  %6456 = vrcp.f32 %v1476_v17 }
 0x281   : > { %v6449_v33 = vpop.eup %6448  ;;  %6458 = vtanh.f32 %v1503_v16  ;;  %1515 = vst.msk [vmem:[#allocation3 + $0x18] sm:$0xff] %vm599_vm3, %v1503_v16  ;;  %v1479_v2 = vadd.f32 1.0, %v6447_v44 }
 0x282   : > { %v1502_v36 = vadd.f32 %v1498_v62, %v1494_v24  ;;  %v1478_v13 = vadd.f32 1.0, %v6449_v33  ;;  %v4856_v24 = vld [vmem:[%s7005_s10 + $0x8] sm:$0xf] }
 0x283   : > { %6460 = vrcp.f32 %v1479_v2 }
 0x284   : > { %6462 = vtanh.f32 %v1502_v36  ;;  %1514 = vst.msk [vmem:[#allocation3 + $0x10] sm:$0xff] %vm599_vm3, %v1502_v36 }
 0x285   : > { %6464 = vrcp.f32 %v1478_v13 }
 0x287   : > { %v6451_v1 = vpop.eup %6450 }
 0x288   : > { %v6453_v28 = vpop.eup %6452 }
 0x289   : > { %v6455_v3 = vpop.eup %6454 }
 0x28a   : > { %v6457_v5 = vpop.eup %6456  ;;  %v1509_v9 = vmul.f32 %v6455_v3, %v6451_v1 }
 0x28b   : > { %v6459_v41 = vpop.eup %6458  ;;  %v1508_v60 = vmul.f32 %v6457_v5, %v6453_v28  ;;  %v8524_v5 = vld [vmem:[#allocation10_spill] sm:$0xff] }
 0x28c   : > { %1517 = vst.msk [vmem:[#allocation2 + $0x8] sm:$0xff] %vm599_vm3, %v1509_v9 }
 0x28d   : > { %v6461_v14 = vpop.eup %6460  ;;  %1516 = vst.msk [vmem:[#allocation2] sm:$0xff] %vm599_vm3, %v1508_v60  ;;  %v6078_v8 = vpack.c.bf16 %v1509_v9, %v1508_v60 }
 0x28e   : > { %v6463_v62 = vpop.eup %6462  ;;  %v1511_v32 = vmul.f32 %v6461_v14, %v6459_v41 }
 0x28f   : > { %v6465_v37 = vpop.eup %6464  ;;  %6079 = vmatprep.subr.bf16.mxu0 %v6078_v8 }
 0x290   : > { %6081 = vmatpush3.bf16.msra.mxu0 %v6078_v8  ;;  %v1510_v7 = vmul.f32 %v6465_v37, %v6463_v62  ;;  %1519 = vst.msk [vmem:[#allocation2 + $0x18] sm:$0xff] %vm599_vm3, %v1511_v32  ;;  %v8525_v62 = vld [vmem:[#allocation11_spill] sm:$0xff] }
 0x292   : > { %1518 = vst.msk [vmem:[#allocation2 + $0x10] sm:$0xff] %vm599_vm3, %v1510_v7  ;;  %v6082_v21 = vpack.c.bf16 %v1511_v32, %v1510_v7 }
 0x293   : > { %v1604_v20 = vld [vmem:[#allocation2 + $0x8] sm:$0xff] }
 0x294   : > { %6083 = vmatprep.subr.bf16.mxu0 %v6082_v21  ;;  %v1603_v17 = vld [vmem:[#allocation2] sm:$0xff] }
 0x295   : > { %6085 = vmatpush3.bf16.msra.mxu0 %v6082_v21  ;;  %v6086_v40 = vpack.c.bf16 %v1604_v20, %v1603_v17  ;;  %v8526_v21 = vld [vmem:[#allocation14_spill] sm:$0xff] }
 0x297   : > { %6087 = vmatprep.subr.bf16.mxu0 %v6086_v40  ;;  %v1606_v29 = vld [vmem:[#allocation2 + $0x18] sm:$0xff] }
 0x298   : > { %5638 = vmatmul.mubr.msk.f32.vlgmr.msra.gmra.mrb[16].mxu0 %vm405_vm1, %v7366_v25 }
 0x299   : > { %6089 = vmatpush3.bf16.msra.mxu0 %v6086_v40  ;;  %v1605_v16 = vld [vmem:[#allocation2 + $0x10] sm:$0xff]  ;;  %5648 = vmatprep.mubr.msk.f32.mxu0 %vm405_vm1, %v7020_v6 }
 0x29a   : > { %v6090_v44 = vpack.c.bf16 %v1606_v29, %v1605_v16 }
 0x29c   : > { %6091 = vmatprep.subr.bf16.mxu0 %v6090_v44 }
 0x29d   : > { %6093 = vmatpush3.bf16.msra.mxu0 %v6090_v44  ;;  %v8527_v44 = vld [vmem:[#allocation15_spill] sm:$0xff] }
 0x29e   : > { %5672 = vmatprep.subr.msk.mxu0 %vm648_vm2, %v4856_v24 }
 0x2a0   : > { %5649 = vmatmul.mubr.msk.f32.vlgmr.msra.gmra.mrb[18].mxu0 %vm405_vm1, %v7028_v10 }
 0x2a1   : > { %5651 = vmatprep.mubr.msk.f32.mxu0 %vm405_vm1, %v7033_v11  ;;  %5673 = vmatpush3.msk.msra.mxu0 %vm648_vm2, %v4856_v24 }
 0x2a4   : > { %5652 = vmatmul.mubr.msk.f32.gmra.mrb[20].mxu0 %vm405_vm1, %v7043_v12 }
 0x2a5   : > { %5654 = vmatprep.mubr.msk.f32.mxu0 %vm405_vm1, %v7055_v15 }
 0x2a8   : > { %5655 = vmatmul.mubr.msk.f32.gmra.mrb[22].mxu0 %vm405_vm1, %v7070_v18 }
 0x2a9   : > { %5657 = vmatprep.mubr.msk.f32.mxu0 %vm405_vm1, %v7075_v19 }
 0x2ac   : > { %5658 = vmatmul.mubr.msk.f32.gmra.mrb[24].mxu0 %vm405_vm1, %v7090_v22 }
 0x2ad   : > { %5660 = vmatprep.mubr.msk.f32.mxu0 %vm405_vm1, %v7095_v23 }
 0x2b0   : > { %5661 = vmatmul.mubr.msk.f32.gmra.mrb[26].mxu0 %vm405_vm1, %v7110_v26 }
 0x2b1   : > { %5663 = vmatprep.mubr.msk.f32.mxu0 %vm405_vm1, %v7115_v27 }
 0x2b4   : > { %5664 = vmatmul.mubr.msk.f32.gmra.mrb[28].mxu0 %vm405_vm1, %v7130_v30 }
 0x2b5   : > { %5666 = vmatprep.mubr.msk.f32.mxu0 %vm405_vm1, %v7135_v31 }
 0x2b8   : > { %5667 = vmatmul.mubr.msk.f32.gmra.mrb[30].mxu0 %vm405_vm1, %v7150_v34 }
 0x2b9   : > { %5669 = vmatprep.mubr.msk.f32.mxu0 %vm405_vm1, %v7155_v35 }
 0x2bc   : > { %5670 = vmatmul.mubr.msk.f32.gmra.mrb[32].mxu0 %vm405_vm1, %v7170_v38  ;;  %v8519_v38 = vld [vmem:[#allocation7_spill] sm:$0xff] }
 0x2bd   : > { %5674 = vmatprep.mubr.msk.f32.mxu0 %vm599_vm3, %v7175_v39 }
 0x2c0   : > { %5675 = vmatmul.mubr.msk.f32.vlgmr.msra.gmra.mrb[18].mxu0 %vm599_vm3, %v7190_v42 }
 0x2c1   : > { %5677 = vmatprep.mubr.msk.f32.mxu0 %vm599_vm3, %v7195_v43 }
 0x2c4   : > { %5678 = vmatmul.mubr.msk.f32.gmra.mrb[20].mxu0 %vm599_vm3, %v7210_v46 }
 0x2c5   : > { %5680 = vmatprep.mubr.msk.f32.mxu0 %vm599_vm3, %v7215_v47  ;;  %v8520_v47 = vld [vmem:[#allocation6_spill] sm:$0xff] }
 0x2c8   : > { %5681 = vmatmul.mubr.msk.f32.gmra.mrb[22].mxu0 %vm599_vm3, %v7224_v48 }
 0x2c9   : > { %5683 = vmatprep.mubr.msk.f32.mxu0 %vm599_vm3, %v7229_v49 }
 0x2cc   : > { %5684 = vmatmul.mubr.msk.f32.gmra.mrb[24].mxu0 %vm599_vm3, %v7238_v50  ;;  %v8521_v50 = vld [vmem:[#allocation4_spill] sm:$0xff] }
 0x2cd   : > { %5686 = vmatprep.mubr.msk.f32.mxu0 %vm599_vm3, %v7243_v51 }
 0x2d0   : > { %5687 = vmatmul.mubr.msk.f32.gmra.mrb[26].mxu0 %vm599_vm3, %v7252_v52 }
 0x2d1   : > { %5689 = vmatprep.mubr.msk.f32.mxu0 %vm599_vm3, %v7257_v53 }
 0x2d4   : > { %5690 = vmatmul.mubr.msk.f32.gmra.mrb[28].mxu0 %vm599_vm3, %v7266_v54 }
 0x2d5   : > { %5692 = vmatprep.mubr.msk.f32.mxu0 %vm599_vm3, %v7271_v55  ;;  %v8522_v55 = vld [vmem:[#allocation8_spill] sm:$0xff] }
 0x2d8   : > { %5693 = vmatmul.mubr.msk.f32.gmra.mrb[30].mxu0 %vm599_vm3, %v7280_v56 }
 0x2d9   : > { %5695 = vmatprep.mubr.msk.f32.mxu0 %vm599_vm3, %v7285_v57 }
 0x2dc   : > { %5696 = vmatmul.mubr.msk.f32.gmra.mrb[32].mxu0 %vm599_vm3, %v7294_v58  ;;  %v8523_v58 = vld [vmem:[#allocation9_spill] sm:$0xff] }
 0x2dd   : > { %5775 = vmatprep.mubr.msk.f32.mxu0 %vm405_vm1, %v7301_v59 }
 0x36b   : > { %v5639_v6 = vpop.f32.mrb[16].mxu0 }
 0x36c   : > { %v1592_v10 = vadd.f32 %v5639_v6, %v7439_v4  ;;  %v1586_v11 = vpop.f32.mrb[17].mxu0 }
 0x36d   : > { %v1587_v12 = vadd.f32 %v1586_v11, %v7441_v45  ;;  %v8528_v11 = vld [vmem:[#allocation12_spill] sm:$0xff] }
 0x36e   : > { %v1596_v15 = vmax.f32 %v1592_v10, 0.0 }
 0x36f   : > { %v1595_v18 = vmax.f32 %v1587_v12, 0.0 }
 0x370   : > { %4855 = vst.msk [vmem:[%s7015_s17 + $0x2] sm:$0x3] %vm1095_vm4, %v1596_v15 }
 0x371   : > { %4854 = vst.msk [vmem:[%s7010_s13 + $0x8] sm:$0xff] %vm599_vm3, %v1595_v18  ;;  %v8529_v18 = vld [vmem:[#allocation13_spill] sm:$0xff] }
 0x393   : > { %v5676_v19 = vpop.f32.mrb[18].mxu0 }
 0x394   : > { %v1901_v22 = vadd.f32 %v5676_v19, %v7313_v63  ;;  %v1821_v23 = vpop.f32.mrb[19].mxu0 }
 0x395   : > { %v1900_v26 = vadd.f32 %v1821_v23, %v7309_v61 }
 0x396   : > { %v4891_v27 = vmul.f32 -1.442695, %v1901_v22 }
 0x397   : > { %v4890_v30 = vmul.f32 -1.442695, %v1900_v26  ;;  %v5679_v31 = vpop.f32.mrb[20].mxu0 }
 0x398   : > { %6466 = vpow2.f32 %v4891_v27  ;;  %v1903_v34 = vadd.f32 %v5679_v31, %v7315_v0  ;;  %v1831_v35 = vpop.f32.mrb[21].mxu0 }
 0x399   : > { %6468 = vpow2.f32 %v4890_v30  ;;  %v1902_v39 = vadd.f32 %v1831_v35, %v8519_v38  ;;  %v8530_v35 = vld [vmem:[#allocation16_spill] sm:$0xff] }
 0x39a   : > { %v4893_v42 = vmul.f32 -1.442695, %v1903_v34 }
 0x39b   : > { %v4892_v43 = vmul.f32 -1.442695, %v1902_v39  ;;  %v5682_v46 = vpop.f32.mrb[22].mxu0 }
 0x39c   : > { %6470 = vpow2.f32 %v4893_v42  ;;  %v1905_v48 = vadd.f32 %v5682_v46, %v8520_v47  ;;  %v1841_v49 = vpop.f32.mrb[23].mxu0  ;;  %v8531_v46 = vld [vmem:[#allocation17_spill] sm:$0xff] }
 0x39d   : > { %6472 = vpow2.f32 %v4892_v43  ;;  %v1904_v51 = vadd.f32 %v1841_v49, %v8521_v50 }
 0x39e   : > { %v4895_v52 = vmul.f32 -1.442695, %v1905_v48 }
 0x39f   : > { %v4894_v53 = vmul.f32 -1.442695, %v1904_v51  ;;  %v5685_v54 = vpop.f32.mrb[24].mxu0 }
 0x3a0   : > { %6474 = vpow2.f32 %v4895_v52  ;;  %v1907_v56 = vadd.f32 %v5685_v54, %v8522_v55  ;;  %v1851_v57 = vpop.f32.mrb[25].mxu0 }
 0x3a1   : > { %6476 = vpow2.f32 %v4894_v53  ;;  %v1906_v59 = vadd.f32 %v1851_v57, %v8523_v58 }
 0x3a2   : > { %v6467_v33 = vpop.eup %6466  ;;  %v4897_v2 = vmul.f32 -1.442695, %v1907_v56 }
 0x3a3   : > { %v6469_v36 = vpop.eup %6468  ;;  %v1929_v13 = vadd.f32 1.0, %v6467_v33  ;;  %v4896_v1 = vmul.f32 -1.442695, %v1906_v59  ;;  %v5688_v28 = vpop.f32.mrb[26].mxu0 }
 0x3a4   : > { %v1928_v3 = vadd.f32 1.0, %v6469_v36  ;;  %6478 = vpow2.f32 %v4897_v2  ;;  %v1909_v9 = vadd.f32 %v5688_v28, %v8524_v5  ;;  %v1861_v41 = vpop.f32.mrb[27].mxu0 }
 0x3a5   : > { %6480 = vrcp.f32 %v1929_v13  ;;  %v1908_v32 = vadd.f32 %v1861_v41, %v8525_v62  ;;  %v1993_v13 = vld [vmem:[#allocation3 + $0x8] sm:$0xff] }
 0x3a6   : > { %v6471_v60 = vpop.eup %6470  ;;  %6482 = vrcp.f32 %v1928_v3 }
 0x3a7   : > { %v6473_v14 = vpop.eup %6472  ;;  %v1931_v8 = vadd.f32 1.0, %v6471_v60  ;;  %6484 = vpow2.f32 %v4896_v1  ;;  %v5691_v37 = vpop.f32.mrb[28].mxu0 }
 0x3a8   : > { %v1930_v7 = vadd.f32 1.0, %v6473_v14  ;;  %6486 = vtanh.f32 %v1909_v9  ;;  %v1911_v20 = vadd.f32 %v5691_v37, %v8526_v21  ;;  %v1871_v17 = vpop.f32.mrb[29].mxu0  ;;  %v1992_v9 = vld [vmem:[#allocation3] sm:$0xff] }
 0x3a9   : > { %6488 = vrcp.f32 %v1931_v8  ;;  %v1910_v24 = vadd.f32 %v1871_v17, %v8527_v44 }
 0x3aa   : > { %v6475_v40 = vpop.eup %6474  ;;  %6490 = vrcp.f32 %v1930_v7  ;;  %v1995_v7 = vld [vmem:[#allocation3 + $0x18] sm:$0xff] }
 0x3ab   : > { %v6477_v29 = vpop.eup %6476  ;;  %v1953_v16 = vadd.f32 1.0, %v6475_v40  ;;  %6492 = vtanh.f32 %v1908_v32  ;;  %v5694_v6 = vpop.f32.mrb[30].mxu0 }
 0x3ac   : > { %v1952_v10 = vadd.f32 1.0, %v6477_v29  ;;  %6494 = vtanh.f32 %v1911_v20  ;;  %v1913_v12 = vadd.f32 %v5694_v6, %v8528_v11  ;;  %v1881_v15 = vpop.f32.mrb[31].mxu0  ;;  %v1994_v6 = vld [vmem:[#allocation3 + $0x10] sm:$0xff] }
 0x3ad   : > { %6496 = vrcp.f32 %v1953_v16  ;;  %v1912_v19 = vadd.f32 %v1881_v15, %v8529_v18 }
 0x3ae   : > { %v6479_v22 = vpop.eup %6478  ;;  %6498 = vrcp.f32 %v1952_v10  ;;  %v4899_v23 = vmul.f32 -1.442695, %v1913_v12 }
 0x3af   : > { %v6481_v26 = vpop.eup %6480  ;;  %v1955_v27 = vadd.f32 1.0, %v6479_v22  ;;  %6500 = vtanh.f32 %v1910_v24  ;;  %v4898_v30 = vmul.f32 -1.442695, %v1912_v19  ;;  %v5697_v31 = vpop.f32.mrb[32].mxu0 }
 0x3b0   : > { %v6483_v34 = vpop.eup %6482  ;;  %6502 = vpow2.f32 %v4899_v23  ;;  %v1915_v39 = vadd.f32 %v5697_v31, %v8530_v35  ;;  %v1891_v42 = vpop.f32.mrb[33].mxu0 }
 0x3b1   : > { %v6485_v43 = vpop.eup %6484  ;;  %6504 = vrcp.f32 %v1955_v27  ;;  %v1914_v48 = vadd.f32 %v1891_v42, %v8531_v46 }
 0x3b2   : > { %v6487_v49 = vpop.eup %6486  ;;  %v1954_v51 = vadd.f32 1.0, %v6485_v43  ;;  %6506 = vpow2.f32 %v4898_v30  ;;  %v4901_v52 = vmul.f32 -1.442695, %v1915_v39 }
 0x3b3   : > { %v6489_v53 = vpop.eup %6488  ;;  %v2001_v54 = vmul.f32 %v6487_v49, %v6481_v26  ;;  %v4900_v56 = vmul.f32 -1.442695, %v1914_v48 }
 0x3b4   : > { %v6491_v57 = vpop.eup %6490  ;;  %6508 = vrcp.f32 %v1954_v51 }
 0x3b5   : > { %v6493_v59 = vpop.eup %6492  ;;  %6510 = vpow2.f32 %v4901_v52 }
 0x3b6   : > { %v6495_v33 = vpop.eup %6494  ;;  %v2000_v2 = vmul.f32 %v6493_v59, %v6483_v34  ;;  %6512 = vpow2.f32 %v4900_v56 }
 0x3b7   : > { %v6497_v36 = vpop.eup %6496  ;;  %v2003_v1 = vmul.f32 %v6495_v33, %v6489_v53 }
 0x3b8   : > { %v6499_v28 = vpop.eup %6498  ;;  %v1997_v3 = vmul.f32 %v6497_v36, %v1993_v13  ;;  %v7579_v13 = vld [vmem:[%s8434_s3] sm:$0xff] }
 0x3b9   : > { %v6501_v41 = vpop.eup %6500  ;;  %v1996_v60 = vmul.f32 %v6499_v28, %v1992_v9  ;;  %v4906_v28 = vld [vmem:[%s7005_s10 + $0xc] sm:$0xf]  ;;  %v7603_v9 = vld [vmem:[%s8434_s3 + $0x18] sm:$0xff] }
 0x3ba   : > { %v6503_v14 = vpop.eup %6502  ;;  %v2005_v8 = vadd.f32 %v2001_v54, %v1997_v3  ;;  %v2002_v32 = vmul.f32 %v6501_v41, %v6491_v57  ;;  %v7595_v3 = vld [vmem:[%s8434_s3 + $0x10] sm:$0xff]  ;;  %v7610_v41 = vld [vmem:[%s8434_s3 + $0x20] sm:$0xff] }
 0x3bb   : > { %v6505_v37 = vpop.eup %6504  ;;  %v2004_v20 = vadd.f32 %v2000_v2, %v1996_v60  ;;  %v1981_v17 = vadd.f32 1.0, %v6503_v14  ;;  %v7617_v60 = vld [vmem:[%s8434_s3 + $0x28] sm:$0xff]  ;;  %v7624_v14 = vld [vmem:[%s8434_s3 + $0x30] sm:$0xff] }
 0x3bc   : > { %v6507_v40 = vpop.eup %6506  ;;  %v1999_v29 = vmul.f32 %v6505_v37, %v1995_v7  ;;  %6514 = vtanh.f32 %v2005_v8  ;;  %2017 = vst.msk [vmem:[#allocation3 + $0x8] sm:$0xff] %vm599_vm3, %v2005_v8  ;;  %v7631_v8 = vld [vmem:[%s8434_s3 + $0x38] sm:$0xff]  ;;  %v7645_v37 = vld [vmem:[%s8434_s3 + $0x48] sm:$0xff]  ;;  %v7652_v7 = vld [vmem:[%s8434_s3 + $0x50] sm:$0xff] }
 0x3bd   : > { %6516 = vtanh.f32 %v2004_v20  ;;  %2016 = vst.msk [vmem:[#allocation3] sm:$0xff] %vm599_vm3, %v2004_v20  ;;  %v1980_v16 = vadd.f32 1.0, %v6507_v40  ;;  %v7659_v20 = vld [vmem:[%s8434_s3 + $0x58] sm:$0xff]  ;;  %v7673_v40 = vld [vmem:[%s8434_s3 + $0x68] sm:$0xff] }
 0x3be   : > { %v6509_v24 = vpop.eup %6508  ;;  %v2007_v10 = vadd.f32 %v2003_v1, %v1999_v29  ;;  %6518 = vrcp.f32 %v1981_v17  ;;  %v7666_v17 = vld [vmem:[%s8434_s3 + $0x60] sm:$0xff]  ;;  %v7680_v29 = vld [vmem:[%s8434_s3 + $0x70] sm:$0xff] }
 0x3bf   : > { %v6511_v12 = vpop.eup %6510  ;;  %v1998_v15 = vmul.f32 %v6509_v24, %v1994_v6  ;;  %6520 = vrcp.f32 %v1980_v16  ;;  %v7687_v16 = vld [vmem:[%s8434_s3 + $0x78] sm:$0xff]  ;;  %v7694_v24 = vld [vmem:[%s8432_s1] sm:$0xff]  ;;  %v7701_v6 = vld [vmem:[%s8432_s1 + $0x8] sm:$0xff] }
 0x3c0   : > { %v6513_v19 = vpop.eup %6512  ;;  %6522 = vtanh.f32 %v2007_v10  ;;  %2019 = vst.msk [vmem:[#allocation3 + $0x18] sm:$0xff] %vm599_vm3, %v2007_v10  ;;  %v1983_v22 = vadd.f32 1.0, %v6511_v12  ;;  %v7708_v10 = vld [vmem:[%s8432_s1 + $0x10] sm:$0xff]  ;;  %v7715_v12 = vld [vmem:[%s8432_s1 + $0x18] sm:$0xff] }
 0x3c1   : > { %v2006_v23 = vadd.f32 %v2002_v32, %v1998_v15  ;;  %v1982_v26 = vadd.f32 1.0, %v6513_v19  ;;  %v7638_v32 = vld [vmem:[%s8434_s3 + $0x40] sm:$0xff]  ;;  %v7729_v19 = vld [vmem:[%s8432_s1 + $0x28] sm:$0xff] }
 0x3c2   : > { %6524 = vrcp.f32 %v1983_v22  ;;  %v7722_v15 = vld [vmem:[%s8432_s1 + $0x20] sm:$0xff]  ;;  %v7736_v22 = vld [vmem:[%s8432_s1 + $0x30] sm:$0xff] }
 0x3c3   : > { %6526 = vtanh.f32 %v2006_v23  ;;  %2018 = vst.msk [vmem:[#allocation3 + $0x10] sm:$0xff] %vm599_vm3, %v2006_v23  ;;  %v7743_v23 = vld [vmem:[%s8432_s1 + $0x38] sm:$0xff] }
 0x3c4   : > { %6528 = vrcp.f32 %v1982_v26  ;;  %v7750_v26 = vld [vmem:[%s8432_s1 + $0x40] sm:$0xff] }
 0x3c6   : > { %v6515_v27 = vpop.eup %6514 }
 0x3c7   : > { %v6517_v30 = vpop.eup %6516 }
 0x3c8   : > { %v6519_v31 = vpop.eup %6518 }
 0x3c9   : > { %v6521_v34 = vpop.eup %6520  ;;  %v2013_v39 = vmul.f32 %v6519_v31, %v6515_v27  ;;  %v7757_v27 = vld [vmem:[%s8432_s1 + $0x48] sm:$0xff]  ;;  %v7771_v31 = vld [vmem:[%s8432_s1 + $0x58] sm:$0xff] }
 0x3ca   : > { %v6523_v42 = vpop.eup %6522  ;;  %v2012_v43 = vmul.f32 %v6521_v34, %v6517_v30  ;;  %v7764_v30 = vld [vmem:[%s8432_s1 + $0x50] sm:$0xff]  ;;  %v7778_v34 = vld [vmem:[%s8432_s1 + $0x60] sm:$0xff] }
 0x3cb   : > { %2021 = vst.msk [vmem:[#allocation2 + $0x8] sm:$0xff] %vm599_vm3, %v2013_v39 }
 0x3cc   : > { %v6525_v48 = vpop.eup %6524  ;;  %2020 = vst.msk [vmem:[#allocation2] sm:$0xff] %vm599_vm3, %v2012_v43  ;;  %v6094_v49 = vpack.c.bf16 %v2013_v39, %v2012_v43  ;;  %v7785_v39 = vld [vmem:[%s8432_s1 + $0x68] sm:$0xff]  ;;  %v7799_v43 = vld [vmem:[%s8432_s1 + $0x78] sm:$0xff] }
 0x3cd   : > { %v6527_v51 = vpop.eup %6526  ;;  %v2015_v52 = vmul.f32 %v6525_v48, %v6523_v42  ;;  %v7792_v42 = vld [vmem:[%s8432_s1 + $0x70] sm:$0xff]  ;;  %v7806_v48 = vld [vmem:[%s8435_s4] sm:$0xff] }
 0x3ce   : > { %v6529_v53 = vpop.eup %6528  ;;  %6095 = vmatprep.subr.bf16.mxu1 %v6094_v49 }
 0x3cf   : > { %6097 = vmatpush3.bf16.msra.mxu1 %v6094_v49  ;;  %v2014_v54 = vmul.f32 %v6529_v53, %v6527_v51  ;;  %2023 = vst.msk [vmem:[#allocation2 + $0x18] sm:$0xff] %vm599_vm3, %v2015_v52 }
 0x3d1   : > { %2022 = vst.msk [vmem:[#allocation2 + $0x10] sm:$0xff] %vm599_vm3, %v2014_v54  ;;  %v6098_v56 = vpack.c.bf16 %v2015_v52, %v2014_v54 }
 0x3d2   : > { %v2108_v57 = vld [vmem:[#allocation2 + $0x8] sm:$0xff] }
 0x3d3   : > { %6099 = vmatprep.subr.bf16.mxu1 %v6098_v56  ;;  %v2107_v59 = vld [vmem:[#allocation2] sm:$0xff] }
 0x3d4   : > { %6101 = vmatpush3.bf16.msra.mxu1 %v6098_v56  ;;  %v6102_v33 = vpack.c.bf16 %v2108_v57, %v2107_v59 }
 0x3d6   : > { %6103 = vmatprep.subr.bf16.mxu1 %v6102_v33  ;;  %v2110_v2 = vld [vmem:[#allocation2 + $0x18] sm:$0xff] }
 0x3d7   : > { %5707 = vmatmul.mubr.msk.f32.vlgmr.msra.gmra.mrb[18].mxu1 %vm405_vm1, %v7366_v25  ;;  %v7588_v25 = vld [vmem:[%s8434_s3 + $0x8] sm:$0xff] }
 0x3d8   : > { %6105 = vmatpush3.bf16.msra.mxu1 %v6102_v33  ;;  %v2109_v36 = vld [vmem:[#allocation2 + $0x10] sm:$0xff]  ;;  %5717 = vmatprep.mubr.msk.f32.mxu1 %vm405_vm1, %v7579_v13 }
 0x3d9   : > { %v6106_v1 = vpack.c.bf16 %v2110_v2, %v2109_v36 }
 0x3db   : > { %6107 = vmatprep.subr.bf16.mxu1 %v6106_v1 }
 0x3dc   : > { %6109 = vmatpush3.bf16.msra.mxu1 %v6106_v1 }
 0x3dd   : > { %5741 = vmatprep.subr.msk.mxu1 %vm648_vm2, %v4906_v28 }
 0x3df   : > { %5718 = vmatmul.mubr.msk.f32.vlgmr.msra.gmra.mrb[20].mxu1 %vm405_vm1, %v7588_v25 }
 0x3e0   : > { %5720 = vmatprep.mubr.msk.f32.mxu1 %vm405_vm1, %v7595_v3  ;;  %5742 = vmatpush3.msk.msra.mxu1 %vm648_vm2, %v4906_v28 }
 0x3e3   : > { %5721 = vmatmul.mubr.msk.f32.gmra.mrb[22].mxu1 %vm405_vm1, %v7603_v9 }
 0x3e4   : > { %5723 = vmatprep.mubr.msk.f32.mxu1 %vm405_vm1, %v7610_v41 }
 0x3e7   : > { %5724 = vmatmul.mubr.msk.f32.gmra.mrb[24].mxu1 %vm405_vm1, %v7617_v60 }
 0x3e8   : > { %5726 = vmatprep.mubr.msk.f32.mxu1 %vm405_vm1, %v7624_v14 }
 0x3eb   : > { %5727 = vmatmul.mubr.msk.f32.gmra.mrb[26].mxu1 %vm405_vm1, %v7631_v8 }
 0x3ec   : > { %5729 = vmatprep.mubr.msk.f32.mxu1 %vm405_vm1, %v7638_v32 }
 0x3ef   : > { %5730 = vmatmul.mubr.msk.f32.gmra.mrb[28].mxu1 %vm405_vm1, %v7645_v37 }
 0x3f0   : > { %5732 = vmatprep.mubr.msk.f32.mxu1 %vm405_vm1, %v7652_v7 }
 0x3f3   : > { %5733 = vmatmul.mubr.msk.f32.gmra.mrb[30].mxu1 %vm405_vm1, %v7659_v20 }
 0x3f4   : > { %5735 = vmatprep.mubr.msk.f32.mxu1 %vm405_vm1, %v7666_v17 }
 0x3f7   : > { %5736 = vmatmul.mubr.msk.f32.gmra.mrb[32].mxu1 %vm405_vm1, %v7673_v40 }
 0x3f8   : > { %5738 = vmatprep.mubr.msk.f32.mxu1 %vm405_vm1, %v7680_v29 }
 0x3fb   : > { %5739 = vmatmul.mubr.msk.f32.gmra.mrb[34].mxu1 %vm405_vm1, %v7687_v16 }
 0x3fc   : > { %5743 = vmatprep.mubr.msk.f32.mxu1 %vm599_vm3, %v7694_v24 }
 0x3ff   : > { %5744 = vmatmul.mubr.msk.f32.vlgmr.msra.gmra.mrb[20].mxu1 %vm599_vm3, %v7701_v6 }
 0x400   : > { %5746 = vmatprep.mubr.msk.f32.mxu1 %vm599_vm3, %v7708_v10 }
 0x403   : > { %5747 = vmatmul.mubr.msk.f32.gmra.mrb[22].mxu1 %vm599_vm3, %v7715_v12 }
 0x404   : > { %5749 = vmatprep.mubr.msk.f32.mxu1 %vm599_vm3, %v7722_v15 }
 0x407   : > { %5750 = vmatmul.mubr.msk.f32.gmra.mrb[24].mxu1 %vm599_vm3, %v7729_v19 }
 0x408   : > { %5752 = vmatprep.mubr.msk.f32.mxu1 %vm599_vm3, %v7736_v22 }
 0x40b   : > { %5753 = vmatmul.mubr.msk.f32.gmra.mrb[26].mxu1 %vm599_vm3, %v7743_v23 }
 0x40c   : > { %5755 = vmatprep.mubr.msk.f32.mxu1 %vm599_vm3, %v7750_v26 }
 0x40f   : > { %5756 = vmatmul.mubr.msk.f32.gmra.mrb[28].mxu1 %vm599_vm3, %v7757_v27 }
 0x410   : > { %5758 = vmatprep.mubr.msk.f32.mxu1 %vm599_vm3, %v7764_v30 }
 0x413   : > { %5759 = vmatmul.mubr.msk.f32.gmra.mrb[30].mxu1 %vm599_vm3, %v7771_v31 }
 0x414   : > { %5761 = vmatprep.mubr.msk.f32.mxu1 %vm599_vm3, %v7778_v34 }
 0x417   : > { %5762 = vmatmul.mubr.msk.f32.gmra.mrb[32].mxu1 %vm599_vm3, %v7785_v39 }
 0x418   : > { %5764 = vmatprep.mubr.msk.f32.mxu1 %vm599_vm3, %v7792_v42 }
 0x41b   : > { %5765 = vmatmul.mubr.msk.f32.gmra.mrb[34].mxu1 %vm599_vm3, %v7799_v43 }
 0x41c   : > { %5844 = vmatprep.mubr.msk.f32.mxu1 %vm405_vm1, %v7806_v48 }
 0x4aa   : > { %v5708_v49 = vpop.f32.mrb[18].mxu1 }
 0x4ab   : > { %v2096_v51 = vadd.f32 %v5708_v49, %v7439_v4  ;;  %v2090_v52 = vpop.f32.mrb[19].mxu1 }
 0x4ac   : > { %v2091_v53 = vadd.f32 %v2090_v52, %v7441_v45 }
 0x4ad   : > { %v2100_v54 = vmax.f32 %v2096_v51, 0.0 }
 0x4ae   : > { %v2099_v56 = vmax.f32 %v2091_v53, 0.0 }
 0x4af   : > { %4905 = vst.msk [vmem:[%s7015_s17 + $0x4] sm:$0x3] %vm1095_vm4, %v2100_v54 }
 0x4b0   : > { %4904 = vst.msk [vmem:[%s7010_s13 + $0x10] sm:$0xff] %vm599_vm3, %v2099_v56 }
 0x4d2   : > { %v5745_v57 = vpop.f32.mrb[20].mxu1 }
 0x4d3   : > { %v2405_v59 = vadd.f32 %v5745_v57, %v7313_v63  ;;  %v2325_v33 = vpop.f32.mrb[21].mxu1 }
 0x4d4   : > { %v2404_v2 = vadd.f32 %v2325_v33, %v7309_v61 }
 0x4d5   : > { %v4941_v36 = vmul.f32 -1.442695, %v2405_v59 }
 0x4d6   : > { %v4940_v1 = vmul.f32 -1.442695, %v2404_v2  ;;  %v5748_v28 = vpop.f32.mrb[22].mxu1 }
 0x4d7   : > { %6530 = vpow2.f32 %v4941_v36  ;;  %v2407_v49 = vadd.f32 %v5748_v28, %v7315_v0  ;;  %v2335_v4 = vpop.f32.mrb[23].mxu1 }
 0x4d8   : > { %6532 = vpow2.f32 %v4940_v1  ;;  %v2406_v51 = vadd.f32 %v2335_v4, %v8519_v38 }
 0x4d9   : > { %v4943_v52 = vmul.f32 -1.442695, %v2407_v49 }
 0x4da   : > { %v4942_v53 = vmul.f32 -1.442695, %v2406_v51  ;;  %v5751_v54 = vpop.f32.mrb[24].mxu1 }
 0x4db   : > { %6534 = vpow2.f32 %v4943_v52  ;;  %v2409_v56 = vadd.f32 %v5751_v54, %v8520_v47  ;;  %v2345_v57 = vpop.f32.mrb[25].mxu1 }
 0x4dc   : > { %6536 = vpow2.f32 %v4942_v53  ;;  %v2408_v33 = vadd.f32 %v2345_v57, %v8521_v50 }
 0x4dd   : > { %v4945_v59 = vmul.f32 -1.442695, %v2409_v56 }
 0x4de   : > { %v4944_v2 = vmul.f32 -1.442695, %v2408_v33  ;;  %v5754_v61 = vpop.f32.mrb[26].mxu1 }
 0x4df   : > { %6538 = vpow2.f32 %v4945_v59  ;;  %v2411_v36 = vadd.f32 %v5754_v61, %v8522_v55  ;;  %v2355_v28 = vpop.f32.mrb[27].mxu1 }
 0x4e0   : > { %6540 = vpow2.f32 %v4944_v2  ;;  %v2410_v4 = vadd.f32 %v2355_v28, %v8523_v58 }
 0x4e1   : > { %v6531_v1 = vpop.eup %6530  ;;  %v4947_v49 = vmul.f32 -1.442695, %v2411_v36 }
 0x4e2   : > { %v6533_v51 = vpop.eup %6532  ;;  %v2433_v52 = vadd.f32 1.0, %v6531_v1  ;;  %v4946_v38 = vmul.f32 -1.442695, %v2410_v4  ;;  %v5757_v54 = vpop.f32.mrb[28].mxu1 }
 0x4e3   : > { %v2432_v47 = vadd.f32 1.0, %v6533_v51  ;;  %6542 = vpow2.f32 %v4947_v49  ;;  %v2413_v53 = vadd.f32 %v5757_v54, %v8524_v5  ;;  %v2365_v56 = vpop.f32.mrb[29].mxu1 }
 0x4e4   : > { %6544 = vrcp.f32 %v2433_v52  ;;  %v2412_v59 = vadd.f32 %v2365_v56, %v8525_v62 }
 0x4e5   : > { %v6535_v57 = vpop.eup %6534  ;;  %6546 = vrcp.f32 %v2432_v47 }
 0x4e6   : > { %v6537_v33 = vpop.eup %6536  ;;  %v2435_v61 = vadd.f32 1.0, %v6535_v57  ;;  %6548 = vpow2.f32 %v4946_v38  ;;  %v5760_v2 = vpop.f32.mrb[30].mxu1 }
 0x4e7   : > { %v2434_v28 = vadd.f32 1.0, %v6537_v33  ;;  %6550 = vtanh.f32 %v2413_v53  ;;  %v2415_v36 = vadd.f32 %v5760_v2, %v8526_v21  ;;  %v2375_v4 = vpop.f32.mrb[31].mxu1 }
 0x4e8   : > { %6552 = vrcp.f32 %v2435_v61  ;;  %v2414_v52 = vadd.f32 %v2375_v4, %v8527_v44 }
 0x4e9   : > { %v6539_v1 = vpop.eup %6538  ;;  %6554 = vrcp.f32 %v2434_v28 }
 0x4ea   : > { %v6541_v49 = vpop.eup %6540  ;;  %v2457_v51 = vadd.f32 1.0, %v6539_v1  ;;  %6556 = vtanh.f32 %v2412_v59  ;;  %v5763_v47 = vpop.f32.mrb[32].mxu1 }
 0x4eb   : > { %v2456_v54 = vadd.f32 1.0, %v6541_v49  ;;  %6558 = vtanh.f32 %v2415_v36  ;;  %v2417_v38 = vadd.f32 %v5763_v47, %v8528_v11  ;;  %v2385_v56 = vpop.f32.mrb[33].mxu1 }
 0x4ec   : > { %6560 = vrcp.f32 %v2457_v51  ;;  %v2416_v53 = vadd.f32 %v2385_v56, %v8529_v18 }
 0x4ed   : > { %v6543_v57 = vpop.eup %6542  ;;  %6562 = vrcp.f32 %v2456_v54  ;;  %v4949_v33 = vmul.f32 -1.442695, %v2417_v38 }
 0x4ee   : > { %v6545_v61 = vpop.eup %6544  ;;  %v2459_v2 = vadd.f32 1.0, %v6543_v57  ;;  %6564 = vtanh.f32 %v2414_v52  ;;  %v4948_v28 = vmul.f32 -1.442695, %v2416_v53  ;;  %v5766_v1 = vpop.f32.mrb[34].mxu1 }
 0x4ef   : > { %v6547_v59 = vpop.eup %6546  ;;  %6566 = vpow2.f32 %v4949_v33  ;;  %v2419_v4 = vadd.f32 %v5766_v1, %v8530_v35  ;;  %v2395_v49 = vpop.f32.mrb[35].mxu1  ;;  %v2497_v35 = vld [vmem:[#allocation3 + $0x8] sm:$0xff] }
 0x4f0   : > { %v6549_v36 = vpop.eup %6548  ;;  %6568 = vrcp.f32 %v2459_v2  ;;  %v2418_v47 = vadd.f32 %v2395_v49, %v8531_v46  ;;  %v2496_v49 = vld [vmem:[#allocation3] sm:$0xff] }
 0x4f1   : > { %v6551_v51 = vpop.eup %6550  ;;  %v2458_v11 = vadd.f32 1.0, %v6549_v36  ;;  %6570 = vpow2.f32 %v4948_v28  ;;  %v4951_v56 = vmul.f32 -1.442695, %v2419_v4 }
 0x4f2   : > { %v6553_v54 = vpop.eup %6552  ;;  %v2505_v38 = vmul.f32 %v6551_v51, %v6545_v61  ;;  %v4950_v18 = vmul.f32 -1.442695, %v2418_v47  ;;  %v2499_v47 = vld [vmem:[#allocation3 + $0x18] sm:$0xff] }
 0x4f3   : > { %v6555_v57 = vpop.eup %6554  ;;  %6572 = vrcp.f32 %v2458_v11 }
 0x4f4   : > { %v6557_v52 = vpop.eup %6556  ;;  %6574 = vpow2.f32 %v4951_v56 }
 0x4f5   : > { %v6559_v53 = vpop.eup %6558  ;;  %v2504_v33 = vmul.f32 %v6557_v52, %v6547_v59  ;;  %6576 = vpow2.f32 %v4950_v18  ;;  %v2498_v59 = vld [vmem:[#allocation3 + $0x10] sm:$0xff] }
 0x4f6   : > { %v6561_v1 = vpop.eup %6560  ;;  %v2507_v44 = vmul.f32 %v6559_v53, %v6553_v54 }
 0x4f7   : > { %v6563_v2 = vpop.eup %6562  ;;  %v2501_v21 = vmul.f32 %v6561_v1, %v2497_v35 }
 0x4f8   : > { %v6565_v46 = vpop.eup %6564  ;;  %v2500_v36 = vmul.f32 %v6563_v2, %v2496_v49 }
 0x4f9   : > { %v6567_v28 = vpop.eup %6566  ;;  %v2509_v4 = vadd.f32 %v2505_v38, %v2501_v21  ;;  %v2506_v62 = vmul.f32 %v6565_v46, %v6555_v57 }
 0x4fa   : > { %v6569_v61 = vpop.eup %6568  ;;  %v2508_v51 = vadd.f32 %v2504_v33, %v2500_v36  ;;  %v2485_v11 = vadd.f32 1.0, %v6567_v28 }
 0x4fb   : > { %v6571_v5 = vpop.eup %6570  ;;  %v2503_v56 = vmul.f32 %v6569_v61, %v2499_v47  ;;  %6578 = vtanh.f32 %v2509_v4  ;;  %2521 = vst.msk [vmem:[#allocation3 + $0x8] sm:$0xff] %vm599_vm3, %v2509_v4 }
 0x4fc   : > { %6580 = vtanh.f32 %v2508_v51  ;;  %2520 = vst.msk [vmem:[#allocation3] sm:$0xff] %vm599_vm3, %v2508_v51  ;;  %v2484_v18 = vadd.f32 1.0, %v6571_v5 }
 0x4fd   : > { %v6573_v35 = vpop.eup %6572  ;;  %v2511_v54 = vadd.f32 %v2507_v44, %v2503_v56  ;;  %6582 = vrcp.f32 %v2485_v11 }
 0x4fe   : > { %v6575_v52 = vpop.eup %6574  ;;  %v2502_v21 = vmul.f32 %v6573_v35, %v2498_v59  ;;  %6584 = vrcp.f32 %v2484_v18 }
 0x4ff   : > { %v6577_v46 = vpop.eup %6576  ;;  %6586 = vtanh.f32 %v2511_v54  ;;  %2523 = vst.msk [vmem:[#allocation3 + $0x18] sm:$0xff] %vm599_vm3, %v2511_v54  ;;  %v2487_v38 = vadd.f32 1.0, %v6575_v52  ;;  %v7843_v54 = vld [vmem:[%s8435_s4 + $0x8] sm:$0x3] }
 0x500   : > { %v2510_v57 = vadd.f32 %v2506_v62, %v2502_v21  ;;  %v2486_v53 = vadd.f32 1.0, %v6577_v46  ;;  %v4956_v46 = vld [vmem:[%s7005_s10 + $0x10] sm:$0xf] }
 0x501   : > { %6588 = vrcp.f32 %v2487_v38 }
 0x502   : > { %6590 = vtanh.f32 %v2510_v57  ;;  %2522 = vst.msk [vmem:[#allocation3 + $0x10] sm:$0xff] %vm599_vm3, %v2510_v57  ;;  %v8532_v57 = vld [vmem:[#allocation18_spill] sm:$0xff] }
 0x503   : > { %6592 = vrcp.f32 %v2486_v53 }
 0x505   : > { %v6579_v5 = vpop.eup %6578 }
 0x506   : > { %v6581_v33 = vpop.eup %6580 }
 0x507   : > { %v6583_v1 = vpop.eup %6582 }
 0x508   : > { %v6585_v44 = vpop.eup %6584  ;;  %v2517_v2 = vmul.f32 %v6583_v1, %v6579_v5 }
 0x509   : > { %v6587_v49 = vpop.eup %6586  ;;  %v2516_v36 = vmul.f32 %v6585_v44, %v6581_v33 }
 0x50a   : > { %2525 = vst.msk [vmem:[#allocation2 + $0x8] sm:$0xff] %vm599_vm3, %v2517_v2 }
 0x50b   : > { %v6589_v28 = vpop.eup %6588  ;;  %2524 = vst.msk [vmem:[#allocation2] sm:$0xff] %vm599_vm3, %v2516_v36  ;;  %v6110_v4 = vpack.c.bf16 %v2517_v2, %v2516_v36 }
 0x50c   : > { %v6591_v62 = vpop.eup %6590  ;;  %v2519_v61 = vmul.f32 %v6589_v28, %v6587_v49  ;;  %v8533_v28 = vld [vmem:[#allocation5_spill] sm:$0xff] }
 0x50d   : > { %v6593_v47 = vpop.eup %6592  ;;  %6111 = vmatprep.subr.bf16.mxu0 %v6110_v4 }
 0x50e   : > { %6113 = vmatpush3.bf16.msra.mxu0 %v6110_v4  ;;  %v2518_v51 = vmul.f32 %v6593_v47, %v6591_v62  ;;  %2527 = vst.msk [vmem:[#allocation2 + $0x18] sm:$0xff] %vm599_vm3, %v2519_v61 }
 0x510   : > { %2526 = vst.msk [vmem:[#allocation2 + $0x10] sm:$0xff] %vm599_vm3, %v2518_v51  ;;  %v6114_v11 = vpack.c.bf16 %v2519_v61, %v2518_v51 }
 0x511   : > { %v2612_v56 = vld [vmem:[#allocation2 + $0x8] sm:$0xff] }
 0x512   : > { %6115 = vmatprep.subr.bf16.mxu0 %v6114_v11  ;;  %v2611_v18 = vld [vmem:[#allocation2] sm:$0xff] }
 0x513   : > { %6117 = vmatpush3.bf16.msra.mxu0 %v6114_v11  ;;  %v6118_v35 = vpack.c.bf16 %v2612_v56, %v2611_v18  ;;  %v8534_v56 = vld [vmem:[#allocation7_spill] sm:$0xff] }
 0x515   : > { %6119 = vmatprep.subr.bf16.mxu0 %v6118_v35  ;;  %v2614_v59 = vld [vmem:[#allocation2 + $0x18] sm:$0xff] }
 0x516   : > { %5776 = vmatmul.mubr.msk.f32.vlgmr.msra.gmra.mrb[34].mxu0 %vm405_vm1, %v7843_v54 }
 0x517   : > { %6121 = vmatpush3.bf16.msra.mxu0 %v6118_v35  ;;  %v2613_v52 = vld [vmem:[#allocation2 + $0x10] sm:$0xff]  ;;  %5786 = vmatprep.mubr.msk.f32.mxu0 %vm405_vm1, %v7579_v13 }
 0x518   : > { %v6122_v21 = vpack.c.bf16 %v2614_v59, %v2613_v52 }
 0x51a   : > { %6123 = vmatprep.subr.bf16.mxu0 %v6122_v21 }
 0x51b   : > { %6125 = vmatpush3.bf16.msra.mxu0 %v6122_v21  ;;  %v8535_v21 = vld [vmem:[#allocation6_spill] sm:$0xff] }
 0x51c   : > { %5810 = vmatprep.subr.msk.mxu0 %vm648_vm2, %v4956_v46 }
 0x51e   : > { %5787 = vmatmul.mubr.msk.f32.vlgmr.msra.gmra.mrb[36].mxu0 %vm405_vm1, %v7588_v25 }
 0x51f   : > { %5789 = vmatprep.mubr.msk.f32.mxu0 %vm405_vm1, %v7595_v3  ;;  %5811 = vmatpush3.msk.msra.mxu0 %vm648_vm2, %v4956_v46 }
 0x522   : > { %5790 = vmatmul.mubr.msk.f32.gmra.mrb[38].mxu0 %vm405_vm1, %v7603_v9 }
 0x523   : > { %5792 = vmatprep.mubr.msk.f32.mxu0 %vm405_vm1, %v7610_v41 }
 0x526   : > { %5793 = vmatmul.mubr.msk.f32.gmra.mrb[40].mxu0 %vm405_vm1, %v7617_v60 }
 0x527   : > { %5795 = vmatprep.mubr.msk.f32.mxu0 %vm405_vm1, %v7624_v14 }
 0x52a   : > { %5796 = vmatmul.mubr.msk.f32.gmra.mrb[42].mxu0 %vm405_vm1, %v7631_v8 }
 0x52b   : > { %5798 = vmatprep.mubr.msk.f32.mxu0 %vm405_vm1, %v7638_v32 }
 0x52e   : > { %5799 = vmatmul.mubr.msk.f32.gmra.mrb[44].mxu0 %vm405_vm1, %v7645_v37 }
 0x52f   : > { %5801 = vmatprep.mubr.msk.f32.mxu0 %vm405_vm1, %v7652_v7 }
 0x532   : > { %5802 = vmatmul.mubr.msk.f32.gmra.mrb[46].mxu0 %vm405_vm1, %v7659_v20 }
 0x533   : > { %5804 = vmatprep.mubr.msk.f32.mxu0 %vm405_vm1, %v7666_v17 }
 0x536   : > { %5805 = vmatmul.mubr.msk.f32.gmra.mrb[48].mxu0 %vm405_vm1, %v7673_v40 }
 0x537   : > { %5807 = vmatprep.mubr.msk.f32.mxu0 %vm405_vm1, %v7680_v29 }
 0x53a   : > { %5808 = vmatmul.mubr.msk.f32.gmra.mrb[50].mxu0 %vm405_vm1, %v7687_v16 }
 0x53b   : > { %5812 = vmatprep.mubr.msk.f32.mxu0 %vm599_vm3, %v7694_v24 }
 0x53e   : > { %5813 = vmatmul.mubr.msk.f32.vlgmr.msra.gmra.mrb[36].mxu0 %vm599_vm3, %v7701_v6 }
 0x53f   : > { %5815 = vmatprep.mubr.msk.f32.mxu0 %vm599_vm3, %v7708_v10 }
 0x542   : > { %5816 = vmatmul.mubr.msk.f32.gmra.mrb[38].mxu0 %vm599_vm3, %v7715_v12 }
 0x543   : > { %5818 = vmatprep.mubr.msk.f32.mxu0 %vm599_vm3, %v7722_v15 }
 0x546   : > { %5819 = vmatmul.mubr.msk.f32.gmra.mrb[40].mxu0 %vm599_vm3, %v7729_v19 }
 0x547   : > { %5821 = vmatprep.mubr.msk.f32.mxu0 %vm599_vm3, %v7736_v22 }
 0x54a   : > { %5822 = vmatmul.mubr.msk.f32.gmra.mrb[42].mxu0 %vm599_vm3, %v7743_v23 }
 0x54b   : > { %5824 = vmatprep.mubr.msk.f32.mxu0 %vm599_vm3, %v7750_v26 }
 0x54e   : > { %5825 = vmatmul.mubr.msk.f32.gmra.mrb[44].mxu0 %vm599_vm3, %v7757_v27 }
 0x54f   : > { %5827 = vmatprep.mubr.msk.f32.mxu0 %vm599_vm3, %v7764_v30 }
 0x552   : > { %5828 = vmatmul.mubr.msk.f32.gmra.mrb[46].mxu0 %vm599_vm3, %v7771_v31 }
 0x553   : > { %5830 = vmatprep.mubr.msk.f32.mxu0 %vm599_vm3, %v7778_v34 }
 0x556   : > { %5831 = vmatmul.mubr.msk.f32.gmra.mrb[48].mxu0 %vm599_vm3, %v7785_v39 }
 0x557   : > { %5833 = vmatprep.mubr.msk.f32.mxu0 %vm599_vm3, %v7792_v42 }
 0x55a   : > { %5834 = vmatmul.mubr.msk.f32.gmra.mrb[50].mxu0 %vm599_vm3, %v7799_v43 }
 0x55b   : > { %5913 = vmatprep.mubr.msk.f32.mxu0 %vm405_vm1, %v7806_v48 }
 0x5e9   : > { %v5777_v38 = vpop.f32.mrb[34].mxu0 }
 0x5ea   : > { %v2600_v53 = vadd.f32 %v5777_v38, %v8532_v57  ;;  %v2594_v5 = vpop.f32.mrb[35].mxu0 }
 0x5eb   : > { %v2595_v33 = vadd.f32 %v2594_v5, %v7441_v45 }
 0x5ec   : > { %v2604_v1 = vmax.f32 %v2600_v53, 0.0 }
 0x5ed   : > { %v2603_v44 = vmax.f32 %v2595_v33, 0.0 }
 0x5ee   : > { %4955 = vst.msk [vmem:[%s7015_s17 + $0x6] sm:$0x3] %vm1095_vm4, %v2604_v1 }
 0x5ef   : > { %4954 = vst.msk [vmem:[%s7010_s13 + $0x18] sm:$0xff] %vm599_vm3, %v2603_v44 }
 0x611   : > { %v5814_v2 = vpop.f32.mrb[36].mxu0 }
 0x612   : > { %v2909_v49 = vadd.f32 %v5814_v2, %v7313_v63  ;;  %v2829_v36 = vpop.f32.mrb[37].mxu0 }
 0x613   : > { %v2908_v4 = vadd.f32 %v2829_v36, %v8533_v28 }
 0x614   : > { %v4991_v62 = vmul.f32 -1.442695, %v2909_v49 }
 0x615   : > { %v4990_v61 = vmul.f32 -1.442695, %v2908_v4  ;;  %v5817_v47 = vpop.f32.mrb[38].mxu0 }
 0x616   : > { %6594 = vpow2.f32 %v4991_v62  ;;  %v2911_v51 = vadd.f32 %v5817_v47, %v7315_v0  ;;  %v2839_v11 = vpop.f32.mrb[39].mxu0 }
 0x617   : > { %6596 = vpow2.f32 %v4990_v61  ;;  %v2910_v18 = vadd.f32 %v2839_v11, %v8534_v56 }
 0x618   : > { %v4993_v35 = vmul.f32 -1.442695, %v2911_v51 }
 0x619   : > { %v4992_v59 = vmul.f32 -1.442695, %v2910_v18  ;;  %v5820_v52 = vpop.f32.mrb[40].mxu0  ;;  %v8536_v18 = vld [vmem:[#allocation10_spill] sm:$0xff] }
 0x61a   : > { %6598 = vpow2.f32 %v4993_v35  ;;  %v2913_v46 = vadd.f32 %v5820_v52, %v8535_v21  ;;  %v2849_v38 = vpop.f32.mrb[41].mxu0 }
 0x61b   : > { %6600 = vpow2.f32 %v4992_v59  ;;  %v2912_v53 = vadd.f32 %v2849_v38, %v8521_v50 }
 0x61c   : > { %v4995_v5 = vmul.f32 -1.442695, %v2913_v46 }
 0x61d   : > { %v4994_v33 = vmul.f32 -1.442695, %v2912_v53  ;;  %v5823_v1 = vpop.f32.mrb[42].mxu0  ;;  %v8537_v53 = vld [vmem:[#allocation11_spill] sm:$0xff] }
 0x61e   : > { %6602 = vpow2.f32 %v4995_v5  ;;  %v2915_v44 = vadd.f32 %v5823_v1, %v8522_v55  ;;  %v2859_v2 = vpop.f32.mrb[43].mxu0 }
 0x61f   : > { %6604 = vpow2.f32 %v4994_v33  ;;  %v2914_v49 = vadd.f32 %v2859_v2, %v8523_v58 }
 0x620   : > { %v6595_v36 = vpop.eup %6594  ;;  %v4997_v4 = vmul.f32 -1.442695, %v2915_v44  ;;  %v8538_v44 = vld [vmem:[#allocation14_spill] sm:$0xff] }
 0x621   : > { %v6597_v62 = vpop.eup %6596  ;;  %v2937_v61 = vadd.f32 1.0, %v6595_v36  ;;  %v4996_v47 = vmul.f32 -1.442695, %v2914_v49  ;;  %v5826_v51 = vpop.f32.mrb[44].mxu0 }
 0x622   : > { %v2936_v11 = vadd.f32 1.0, %v6597_v62  ;;  %6606 = vpow2.f32 %v4997_v4  ;;  %v2917_v35 = vadd.f32 %v5826_v51, %v8536_v18  ;;  %v2869_v59 = vpop.f32.mrb[45].mxu0 }
 0x623   : > { %6608 = vrcp.f32 %v2937_v61  ;;  %v2916_v5 = vadd.f32 %v2869_v59, %v8537_v53  ;;  %v8539_v61 = vld [vmem:[#allocation15_spill] sm:$0xff] }
 0x624   : > { %v6599_v52 = vpop.eup %6598  ;;  %6610 = vrcp.f32 %v2936_v11 }
 0x625   : > { %v6601_v46 = vpop.eup %6600  ;;  %v2939_v38 = vadd.f32 1.0, %v6599_v52  ;;  %6612 = vpow2.f32 %v4996_v47  ;;  %v5829_v33 = vpop.f32.mrb[46].mxu0  ;;  %v8540_v47 = vld [vmem:[#allocation12_spill] sm:$0xff] }
 0x626   : > { %v2938_v1 = vadd.f32 1.0, %v6601_v46  ;;  %6614 = vtanh.f32 %v2917_v35  ;;  %v2919_v2 = vadd.f32 %v5829_v33, %v8538_v44  ;;  %v2879_v49 = vpop.f32.mrb[47].mxu0  ;;  %v8541_v46 = vld [vmem:[#allocation13_spill] sm:$0xff] }
 0x627   : > { %6616 = vrcp.f32 %v2939_v38  ;;  %v2918_v51 = vadd.f32 %v2879_v49, %v8539_v61  ;;  %v8542_v49 = vld [vmem:[#allocation16_spill] sm:$0xff] }
 0x628   : > { %v6603_v36 = vpop.eup %6602  ;;  %6618 = vrcp.f32 %v2938_v1 }
 0x629   : > { %v6605_v4 = vpop.eup %6604  ;;  %v2961_v62 = vadd.f32 1.0, %v6603_v36  ;;  %6620 = vtanh.f32 %v2916_v5  ;;  %v5832_v11 = vpop.f32.mrb[48].mxu0 }
 0x62a   : > { %v2960_v18 = vadd.f32 1.0, %v6605_v4  ;;  %6622 = vtanh.f32 %v2919_v2  ;;  %v2921_v52 = vadd.f32 %v5832_v11, %v8540_v47  ;;  %v2889_v59 = vpop.f32.mrb[49].mxu0  ;;  %v8543_v11 = vld [vmem:[#allocation17_spill] sm:$0xff] }
 0x62b   : > { %6624 = vrcp.f32 %v2961_v62  ;;  %v2920_v35 = vadd.f32 %v2889_v59, %v8541_v46 }
 0x62c   : > { %v6607_v53 = vpop.eup %6606  ;;  %6626 = vrcp.f32 %v2960_v18  ;;  %v4999_v33 = vmul.f32 -1.442695, %v2921_v52 }
 0x62d   : > { %v6609_v38 = vpop.eup %6608  ;;  %v2963_v44 = vadd.f32 1.0, %v6607_v53  ;;  %6628 = vtanh.f32 %v2918_v51  ;;  %v4998_v1 = vmul.f32 -1.442695, %v2920_v35  ;;  %v5835_v36 = vpop.f32.mrb[50].mxu0 }
 0x62e   : > { %v6611_v5 = vpop.eup %6610  ;;  %6630 = vpow2.f32 %v4999_v33  ;;  %v2923_v61 = vadd.f32 %v5835_v36, %v8542_v49  ;;  %v2899_v4 = vpop.f32.mrb[51].mxu0  ;;  %v3001_v49 = vld [vmem:[#allocation3 + $0x8] sm:$0xff] }
 0x62f   : > { %v6613_v2 = vpop.eup %6612  ;;  %6632 = vrcp.f32 %v2963_v44  ;;  %v2922_v47 = vadd.f32 %v2899_v4, %v8543_v11  ;;  %v3000_v4 = vld [vmem:[#allocation3] sm:$0xff] }
 0x630   : > { %v6615_v62 = vpop.eup %6614  ;;  %v2962_v58 = vadd.f32 1.0, %v6613_v2  ;;  %6634 = vpow2.f32 %v4998_v1  ;;  %v5001_v59 = vmul.f32 -1.442695, %v2923_v61 }
 0x631   : > { %v6617_v18 = vpop.eup %6616  ;;  %v3009_v52 = vmul.f32 %v6615_v62, %v6609_v38  ;;  %v5000_v46 = vmul.f32 -1.442695, %v2922_v47  ;;  %v3003_v47 = vld [vmem:[#allocation3 + $0x18] sm:$0xff] }
 0x632   : > { %v6619_v53 = vpop.eup %6618  ;;  %6636 = vrcp.f32 %v2962_v58 }
 0x633   : > { %v6621_v51 = vpop.eup %6620  ;;  %6638 = vpow2.f32 %v5001_v59 }
 0x634   : > { %v6623_v35 = vpop.eup %6622  ;;  %v3008_v33 = vmul.f32 %v6621_v51, %v6611_v5  ;;  %6640 = vpow2.f32 %v5000_v46 }
 0x635   : > { %v6625_v36 = vpop.eup %6624  ;;  %v3011_v55 = vmul.f32 %v6623_v35, %v6617_v18 }
 0x636   : > { %v6627_v44 = vpop.eup %6626  ;;  %v3005_v50 = vmul.f32 %v6625_v36, %v3001_v49  ;;  %v3002_v49 = vld [vmem:[#allocation3 + $0x10] sm:$0xff] }
 0x637   : > { %v6629_v11 = vpop.eup %6628  ;;  %v3004_v2 = vmul.f32 %v6627_v44, %v3000_v4 }
 0x638   : > { %v6631_v1 = vpop.eup %6630  ;;  %v3013_v61 = vadd.f32 %v3009_v52, %v3005_v50  ;;  %v3010_v21 = vmul.f32 %v6629_v11, %v6619_v53 }
 0x639   : > { %v6633_v38 = vpop.eup %6632  ;;  %v3012_v62 = vadd.f32 %v3008_v33, %v3004_v2  ;;  %v2989_v58 = vadd.f32 1.0, %v6631_v1 }
 0x63a   : > { %v6635_v56 = vpop.eup %6634  ;;  %v3007_v59 = vmul.f32 %v6633_v38, %v3003_v47  ;;  %6642 = vtanh.f32 %v3013_v61  ;;  %3025 = vst.msk [vmem:[#allocation3 + $0x8] sm:$0xff] %vm599_vm3, %v3013_v61 }
 0x63b   : > { %6644 = vtanh.f32 %v3012_v62  ;;  %3024 = vst.msk [vmem:[#allocation3] sm:$0xff] %vm599_vm3, %v3012_v62  ;;  %v2988_v46 = vadd.f32 1.0, %v6635_v56 }
 0x63c   : > { %v6637_v5 = vpop.eup %6636  ;;  %v3015_v18 = vadd.f32 %v3011_v55, %v3007_v59  ;;  %6646 = vrcp.f32 %v2989_v58 }
 0x63d   : > { %v6639_v51 = vpop.eup %6638  ;;  %v3006_v50 = vmul.f32 %v6637_v5, %v3002_v49  ;;  %6648 = vrcp.f32 %v2988_v46 }
 0x63e   : > { %v6641_v11 = vpop.eup %6640  ;;  %6650 = vtanh.f32 %v3015_v18  ;;  %3027 = vst.msk [vmem:[#allocation3 + $0x18] sm:$0xff] %vm599_vm3, %v3015_v18  ;;  %v2991_v52 = vadd.f32 1.0, %v6639_v51 }
 0x63f   : > { %v3014_v53 = vadd.f32 %v3010_v21, %v3006_v50  ;;  %v2990_v35 = vadd.f32 1.0, %v6641_v11  ;;  %v5006_v50 = vld [vmem:[%s7005_s10 + $0x14] sm:$0xf] }
 0x640   : > { %6652 = vrcp.f32 %v2991_v52 }
 0x641   : > { %6654 = vtanh.f32 %v3014_v53  ;;  %3026 = vst.msk [vmem:[#allocation3 + $0x10] sm:$0xff] %vm599_vm3, %v3014_v53 }
 0x642   : > { %6656 = vrcp.f32 %v2990_v35 }
 0x644   : > { %v6643_v56 = vpop.eup %6642 }
 0x645   : > { %v6645_v33 = vpop.eup %6644 }
 0x646   : > { %v6647_v36 = vpop.eup %6646 }
 0x647   : > { %v6649_v55 = vpop.eup %6648  ;;  %v3021_v44 = vmul.f32 %v6647_v36, %v6643_v56 }
 0x648   : > { %v6651_v4 = vpop.eup %6650  ;;  %v3020_v2 = vmul.f32 %v6649_v55, %v6645_v33  ;;  %v8549_v55 = vld [vmem:[#allocation10_spill] sm:$0xff] }
 0x649   : > { %3029 = vst.msk [vmem:[#allocation2 + $0x8] sm:$0xff] %vm599_vm3, %v3021_v44 }
 0x64a   : > { %v6653_v1 = vpop.eup %6652  ;;  %3028 = vst.msk [vmem:[#allocation2] sm:$0xff] %vm599_vm3, %v3020_v2  ;;  %v6126_v61 = vpack.c.bf16 %v3021_v44, %v3020_v2 }
 0x64b   : > { %v6655_v21 = vpop.eup %6654  ;;  %v3023_v38 = vmul.f32 %v6653_v1, %v6651_v4 }
 0x64c   : > { %v6657_v47 = vpop.eup %6656  ;;  %6127 = vmatprep.subr.bf16.mxu1 %v6126_v61 }
 0x64d   : > { %6129 = vmatpush3.bf16.msra.mxu1 %v6126_v61  ;;  %v3022_v62 = vmul.f32 %v6657_v47, %v6655_v21  ;;  %3031 = vst.msk [vmem:[#allocation2 + $0x18] sm:$0xff] %vm599_vm3, %v3023_v38  ;;  %v8550_v21 = vld [vmem:[#allocation11_spill] sm:$0xff] }
 0x64f   : > { %3030 = vst.msk [vmem:[#allocation2 + $0x10] sm:$0xff] %vm599_vm3, %v3022_v62  ;;  %v6130_v58 = vpack.c.bf16 %v3023_v38, %v3022_v62 }
 0x650   : > { %v3116_v59 = vld [vmem:[#allocation2 + $0x8] sm:$0xff] }
 0x651   : > { %6131 = vmatprep.subr.bf16.mxu1 %v6130_v58  ;;  %v3115_v46 = vld [vmem:[#allocation2] sm:$0xff] }
 0x652   : > { %6133 = vmatpush3.bf16.msra.mxu1 %v6130_v58  ;;  %v6134_v5 = vpack.c.bf16 %v3116_v59, %v3115_v46  ;;  %v8551_v58 = vld [vmem:[#allocation14_spill] sm:$0xff] }
 0x654   : > { %6135 = vmatprep.subr.bf16.mxu1 %v6134_v5  ;;  %v3118_v49 = vld [vmem:[#allocation2 + $0x18] sm:$0xff] }
 0x655   : > { %5845 = vmatmul.mubr.msk.f32.vlgmr.msra.gmra.mrb[36].mxu1 %vm405_vm1, %v7843_v54 }
 0x656   : > { %6137 = vmatpush3.bf16.msra.mxu1 %v6134_v5  ;;  %v3117_v18 = vld [vmem:[#allocation2 + $0x10] sm:$0xff]  ;;  %5855 = vmatprep.mubr.msk.f32.mxu1 %vm405_vm1, %v7579_v13 }
 0x657   : > { %v6138_v51 = vpack.c.bf16 %v3118_v49, %v3117_v18 }
 0x659   : > { %6139 = vmatprep.subr.bf16.mxu1 %v6138_v51 }
 0x65a   : > { %6141 = vmatpush3.bf16.msra.mxu1 %v6138_v51  ;;  %v8552_v51 = vld [vmem:[#allocation15_spill] sm:$0xff] }
 0x65b   : > { %5879 = vmatprep.subr.msk.mxu1 %vm648_vm2, %v5006_v50 }
 0x65d   : > { %5856 = vmatmul.mubr.msk.f32.vlgmr.msra.gmra.mrb[38].mxu1 %vm405_vm1, %v7588_v25 }
 0x65e   : > { %5858 = vmatprep.mubr.msk.f32.mxu1 %vm405_vm1, %v7595_v3  ;;  %5880 = vmatpush3.msk.msra.mxu1 %vm648_vm2, %v5006_v50 }
 0x661   : > { %5859 = vmatmul.mubr.msk.f32.gmra.mrb[40].mxu1 %vm405_vm1, %v7603_v9 }
 0x662   : > { %5861 = vmatprep.mubr.msk.f32.mxu1 %vm405_vm1, %v7610_v41 }
 0x665   : > { %5862 = vmatmul.mubr.msk.f32.gmra.mrb[42].mxu1 %vm405_vm1, %v7617_v60 }
 0x666   : > { %5864 = vmatprep.mubr.msk.f32.mxu1 %vm405_vm1, %v7624_v14 }
 0x669   : > { %5865 = vmatmul.mubr.msk.f32.gmra.mrb[44].mxu1 %vm405_vm1, %v7631_v8 }
 0x66a   : > { %5867 = vmatprep.mubr.msk.f32.mxu1 %vm405_vm1, %v7638_v32 }
 0x66d   : > { %5868 = vmatmul.mubr.msk.f32.gmra.mrb[46].mxu1 %vm405_vm1, %v7645_v37 }
 0x66e   : > { %5870 = vmatprep.mubr.msk.f32.mxu1 %vm405_vm1, %v7652_v7 }
 0x671   : > { %5871 = vmatmul.mubr.msk.f32.gmra.mrb[48].mxu1 %vm405_vm1, %v7659_v20 }
 0x672   : > { %5873 = vmatprep.mubr.msk.f32.mxu1 %vm405_vm1, %v7666_v17 }
 0x675   : > { %5874 = vmatmul.mubr.msk.f32.gmra.mrb[50].mxu1 %vm405_vm1, %v7673_v40 }
 0x676   : > { %5876 = vmatprep.mubr.msk.f32.mxu1 %vm405_vm1, %v7680_v29 }
 0x679   : > { %5877 = vmatmul.mubr.msk.f32.gmra.mrb[52].mxu1 %vm405_vm1, %v7687_v16  ;;  %v8544_v16 = vld [vmem:[#allocation7_spill] sm:$0xff] }
 0x67a   : > { %5881 = vmatprep.mubr.msk.f32.mxu1 %vm599_vm3, %v7694_v24 }
 0x67d   : > { %5882 = vmatmul.mubr.msk.f32.vlgmr.msra.gmra.mrb[38].mxu1 %vm599_vm3, %v7701_v6 }
 0x67e   : > { %5884 = vmatprep.mubr.msk.f32.mxu1 %vm599_vm3, %v7708_v10 }
 0x681   : > { %5885 = vmatmul.mubr.msk.f32.gmra.mrb[40].mxu1 %vm599_vm3, %v7715_v12 }
 0x682   : > { %5887 = vmatprep.mubr.msk.f32.mxu1 %vm599_vm3, %v7722_v15  ;;  %v8545_v15 = vld [vmem:[#allocation6_spill] sm:$0xff] }
 0x685   : > { %5888 = vmatmul.mubr.msk.f32.gmra.mrb[42].mxu1 %vm599_vm3, %v7729_v19 }
 0x686   : > { %5890 = vmatprep.mubr.msk.f32.mxu1 %vm599_vm3, %v7736_v22 }
 0x689   : > { %5891 = vmatmul.mubr.msk.f32.gmra.mrb[44].mxu1 %vm599_vm3, %v7743_v23  ;;  %v8546_v23 = vld [vmem:[#allocation4_spill] sm:$0xff] }
 0x68a   : > { %5893 = vmatprep.mubr.msk.f32.mxu1 %vm599_vm3, %v7750_v26 }
 0x68d   : > { %5894 = vmatmul.mubr.msk.f32.gmra.mrb[46].mxu1 %vm599_vm3, %v7757_v27 }
 0x68e   : > { %5896 = vmatprep.mubr.msk.f32.mxu1 %vm599_vm3, %v7764_v30 }
 0x691   : > { %5897 = vmatmul.mubr.msk.f32.gmra.mrb[48].mxu1 %vm599_vm3, %v7771_v31 }
 0x692   : > { %5899 = vmatprep.mubr.msk.f32.mxu1 %vm599_vm3, %v7778_v34  ;;  %v8547_v34 = vld [vmem:[#allocation8_spill] sm:$0xff] }
 0x695   : > { %5900 = vmatmul.mubr.msk.f32.gmra.mrb[50].mxu1 %vm599_vm3, %v7785_v39 }
 0x696   : > { %5902 = vmatprep.mubr.msk.f32.mxu1 %vm599_vm3, %v7792_v42 }
 0x699   : > { %5903 = vmatmul.mubr.msk.f32.gmra.mrb[52].mxu1 %vm599_vm3, %v7799_v43  ;;  %v8548_v43 = vld [vmem:[#allocation9_spill] sm:$0xff] }
 0x69a   : > { %5982 = vmatprep.mubr.msk.f32.mxu1 %vm405_vm1, %v7806_v48 }
 0x728   : > { %v5846_v13 = vpop.f32.mrb[36].mxu1 }
 0x729   : > { %v3104_v25 = vadd.f32 %v5846_v13, %v8532_v57  ;;  %v3098_v3 = vpop.f32.mrb[37].mxu1 }
 0x72a   : > { %v3099_v9 = vadd.f32 %v3098_v3, %v7441_v45  ;;  %v8553_v3 = vld [vmem:[#allocation12_spill] sm:$0xff] }
 0x72b   : > { %v3108_v41 = vmax.f32 %v3104_v25, 0.0 }
 0x72c   : > { %v3107_v60 = vmax.f32 %v3099_v9, 0.0 }
 0x72d   : > { %5005 = vst.msk [vmem:[%s7015_s17 + $0x8] sm:$0x3] %vm1095_vm4, %v3108_v41 }
 0x72e   : > { %5004 = vst.msk [vmem:[%s7010_s13 + $0x20] sm:$0xff] %vm599_vm3, %v3107_v60  ;;  %v8554_v60 = vld [vmem:[#allocation13_spill] sm:$0xff] }
 0x750   : > { %v5883_v14 = vpop.f32.mrb[38].mxu1 }
 0x751   : > { %v3413_v8 = vadd.f32 %v5883_v14, %v7313_v63  ;;  %v3333_v32 = vpop.f32.mrb[39].mxu1 }
 0x752   : > { %v3412_v37 = vadd.f32 %v3333_v32, %v8533_v28 }
 0x753   : > { %v5041_v7 = vmul.f32 -1.442695, %v3413_v8 }
 0x754   : > { %v5040_v20 = vmul.f32 -1.442695, %v3412_v37  ;;  %v5886_v17 = vpop.f32.mrb[40].mxu1 }
 0x755   : > { %6658 = vpow2.f32 %v5041_v7  ;;  %v3415_v40 = vadd.f32 %v5886_v17, %v7315_v0  ;;  %v3343_v29 = vpop.f32.mrb[41].mxu1 }
 0x756   : > { %6660 = vpow2.f32 %v5040_v20  ;;  %v3414_v24 = vadd.f32 %v3343_v29, %v8544_v16  ;;  %v8555_v29 = vld [vmem:[#allocation16_spill] sm:$0xff] }
 0x757   : > { %v5043_v6 = vmul.f32 -1.442695, %v3415_v40 }
 0x758   : > { %v5042_v10 = vmul.f32 -1.442695, %v3414_v24  ;;  %v5889_v12 = vpop.f32.mrb[42].mxu1 }
 0x759   : > { %6662 = vpow2.f32 %v5043_v6  ;;  %v3417_v19 = vadd.f32 %v5889_v12, %v8545_v15  ;;  %v3353_v22 = vpop.f32.mrb[43].mxu1  ;;  %v8556_v12 = vld [vmem:[#allocation17_spill] sm:$0xff] }
 0x75a   : > { %6664 = vpow2.f32 %v5042_v10  ;;  %v3416_v26 = vadd.f32 %v3353_v22, %v8546_v23 }
 0x75b   : > { %v5045_v27 = vmul.f32 -1.442695, %v3417_v19 }
 0x75c   : > { %v5044_v30 = vmul.f32 -1.442695, %v3416_v26  ;;  %v5892_v31 = vpop.f32.mrb[44].mxu1 }
 0x75d   : > { %6666 = vpow2.f32 %v5045_v27  ;;  %v3419_v39 = vadd.f32 %v5892_v31, %v8547_v34  ;;  %v3363_v42 = vpop.f32.mrb[45].mxu1 }
 0x75e   : > { %6668 = vpow2.f32 %v5044_v30  ;;  %v3418_v48 = vadd.f32 %v3363_v42, %v8548_v43 }
 0x75f   : > { %v6659_v11 = vpop.eup %6658  ;;  %v5047_v52 = vmul.f32 -1.442695, %v3419_v39 }
 0x760   : > { %v6661_v53 = vpop.eup %6660  ;;  %v3441_v35 = vadd.f32 1.0, %v6659_v11  ;;  %v5046_v56 = vmul.f32 -1.442695, %v3418_v48  ;;  %v5895_v33 = vpop.f32.mrb[46].mxu1 }
 0x761   : > { %v3440_v36 = vadd.f32 1.0, %v6661_v53  ;;  %6670 = vpow2.f32 %v5047_v52  ;;  %v3421_v44 = vadd.f32 %v5895_v33, %v8549_v55  ;;  %v3373_v4 = vpop.f32.mrb[47].mxu1 }
 0x762   : > { %6672 = vrcp.f32 %v3441_v35  ;;  %v3420_v38 = vadd.f32 %v3373_v4, %v8550_v21  ;;  %v3505_v35 = vld [vmem:[#allocation3 + $0x8] sm:$0xff] }
 0x763   : > { %v6663_v2 = vpop.eup %6662  ;;  %6674 = vrcp.f32 %v3440_v36 }
 0x764   : > { %v6665_v1 = vpop.eup %6664  ;;  %v3443_v61 = vadd.f32 1.0, %v6663_v2  ;;  %6676 = vpow2.f32 %v5046_v56  ;;  %v5898_v47 = vpop.f32.mrb[48].mxu1 }
 0x765   : > { %v3442_v62 = vadd.f32 1.0, %v6665_v1  ;;  %6678 = vtanh.f32 %v3421_v44  ;;  %v3423_v59 = vadd.f32 %v5898_v47, %v8551_v58  ;;  %v3383_v46 = vpop.f32.mrb[49].mxu1  ;;  %v3504_v44 = vld [vmem:[#allocation3] sm:$0xff] }
 0x766   : > { %6680 = vrcp.f32 %v3443_v61  ;;  %v3422_v50 = vadd.f32 %v3383_v46, %v8552_v51 }
 0x767   : > { %v6667_v5 = vpop.eup %6666  ;;  %6682 = vrcp.f32 %v3442_v62  ;;  %v3507_v62 = vld [vmem:[#allocation3 + $0x18] sm:$0xff] }
 0x768   : > { %v6669_v49 = vpop.eup %6668  ;;  %v3465_v18 = vadd.f32 1.0, %v6667_v5  ;;  %6684 = vtanh.f32 %v3420_v38  ;;  %v5901_v13 = vpop.f32.mrb[50].mxu1 }
 0x769   : > { %v3464_v25 = vadd.f32 1.0, %v6669_v49  ;;  %6686 = vtanh.f32 %v3423_v59  ;;  %v3425_v9 = vadd.f32 %v5901_v13, %v8553_v3  ;;  %v3393_v41 = vpop.f32.mrb[51].mxu1  ;;  %v3506_v13 = vld [vmem:[#allocation3 + $0x10] sm:$0xff] }
 0x76a   : > { %6688 = vrcp.f32 %v3465_v18  ;;  %v3424_v14 = vadd.f32 %v3393_v41, %v8554_v60 }
 0x76b   : > { %v6671_v8 = vpop.eup %6670  ;;  %6690 = vrcp.f32 %v3464_v25  ;;  %v5049_v32 = vmul.f32 -1.442695, %v3425_v9 }
 0x76c   : > { %v6673_v37 = vpop.eup %6672  ;;  %v3467_v7 = vadd.f32 1.0, %v6671_v8  ;;  %6692 = vtanh.f32 %v3422_v50  ;;  %v5048_v20 = vmul.f32 -1.442695, %v3424_v14  ;;  %v5904_v17 = vpop.f32.mrb[52].mxu1 }
 0x76d   : > { %v6675_v40 = vpop.eup %6674  ;;  %6694 = vpow2.f32 %v5049_v32  ;;  %v3427_v24 = vadd.f32 %v5904_v17, %v8555_v29  ;;  %v3403_v6 = vpop.f32.mrb[53].mxu1 }
 0x76e   : > { %v6677_v10 = vpop.eup %6676  ;;  %6696 = vrcp.f32 %v3467_v7  ;;  %v3426_v19 = vadd.f32 %v3403_v6, %v8556_v12 }
 0x76f   : > { %v6679_v22 = vpop.eup %6678  ;;  %v3466_v26 = vadd.f32 1.0, %v6677_v10  ;;  %6698 = vpow2.f32 %v5048_v20  ;;  %v5051_v27 = vmul.f32 -1.442695, %v3427_v24 }
 0x770   : > { %v6681_v30 = vpop.eup %6680  ;;  %v3513_v31 = vmul.f32 %v6679_v22, %v6673_v37  ;;  %v5050_v39 = vmul.f32 -1.442695, %v3426_v19 }
 0x771   : > { %v6683_v42 = vpop.eup %6682  ;;  %6700 = vrcp.f32 %v3466_v26 }
 0x772   : > { %v6685_v48 = vpop.eup %6684  ;;  %6702 = vpow2.f32 %v5051_v27 }
 0x773   : > { %v6687_v11 = vpop.eup %6686  ;;  %v3512_v52 = vmul.f32 %v6685_v48, %v6675_v40  ;;  %6704 = vpow2.f32 %v5050_v39 }
 0x774   : > { %v6689_v53 = vpop.eup %6688  ;;  %v3515_v56 = vmul.f32 %v6687_v11, %v6681_v30 }
 0x775   : > { %v6691_v33 = vpop.eup %6690  ;;  %v3509_v36 = vmul.f32 %v6689_v53, %v3505_v35  ;;  %v8052_v35 = vld [vmem:[%s8434_s3] sm:$0xff] }
 0x776   : > { %v6693_v4 = vpop.eup %6692  ;;  %v3508_v2 = vmul.f32 %v6691_v33, %v3504_v44  ;;  %v5056_v33 = vld [vmem:[%s7005_s10 + $0x18] sm:$0xf] }
 0x777   : > { %v6695_v1 = vpop.eup %6694  ;;  %v3517_v61 = vadd.f32 %v3513_v31, %v3509_v36  ;;  %v3514_v38 = vmul.f32 %v6693_v4, %v6683_v42  ;;  %v8068_v36 = vld [vmem:[%s8434_s3 + $0x10] sm:$0xff]  ;;  %v8076_v44 = vld [vmem:[%s8434_s3 + $0x18] sm:$0xff]  ;;  %v8083_v4 = vld [vmem:[%s8434_s3 + $0x20] sm:$0xff] }
 0x778   : > { %v6697_v47 = vpop.eup %6696  ;;  %v3516_v59 = vadd.f32 %v3512_v52, %v3508_v2  ;;  %v3493_v46 = vadd.f32 1.0, %v6695_v1  ;;  %v8090_v2 = vld [vmem:[%s8434_s3 + $0x28] sm:$0xff]  ;;  %v8097_v1 = vld [vmem:[%s8434_s3 + $0x30] sm:$0xff] }
 0x779   : > { %v6699_v5 = vpop.eup %6698  ;;  %v3511_v49 = vmul.f32 %v6697_v47, %v3507_v62  ;;  %6706 = vtanh.f32 %v3517_v61  ;;  %3529 = vst.msk [vmem:[#allocation3 + $0x8] sm:$0xff] %vm599_vm3, %v3517_v61  ;;  %v8104_v61 = vld [vmem:[%s8434_s3 + $0x38] sm:$0xff]  ;;  %v8118_v47 = vld [vmem:[%s8434_s3 + $0x48] sm:$0xff]  ;;  %v8125_v62 = vld [vmem:[%s8434_s3 + $0x50] sm:$0xff] }
 0x77a   : > { %6708 = vtanh.f32 %v3516_v59  ;;  %3528 = vst.msk [vmem:[#allocation3] sm:$0xff] %vm599_vm3, %v3516_v59  ;;  %v3492_v18 = vadd.f32 1.0, %v6699_v5  ;;  %v8132_v59 = vld [vmem:[%s8434_s3 + $0x58] sm:$0xff]  ;;  %v8146_v5 = vld [vmem:[%s8434_s3 + $0x68] sm:$0xff] }
 0x77b   : > { %v6701_v50 = vpop.eup %6700  ;;  %v3519_v25 = vadd.f32 %v3515_v56, %v3511_v49  ;;  %6710 = vrcp.f32 %v3493_v46  ;;  %v8139_v46 = vld [vmem:[%s8434_s3 + $0x60] sm:$0xff]  ;;  %v8153_v49 = vld [vmem:[%s8434_s3 + $0x70] sm:$0xff] }
 0x77c   : > { %v6703_v9 = vpop.eup %6702  ;;  %v3510_v41 = vmul.f32 %v6701_v50, %v3506_v13  ;;  %6712 = vrcp.f32 %v3492_v18  ;;  %v8160_v18 = vld [vmem:[%s8434_s3 + $0x78] sm:$0xff]  ;;  %v8167_v50 = vld [vmem:[%s8432_s1] sm:$0xff]  ;;  %v8174_v13 = vld [vmem:[%s8432_s1 + $0x8] sm:$0xff] }
 0x77d   : > { %v6705_v14 = vpop.eup %6704  ;;  %6714 = vtanh.f32 %v3519_v25  ;;  %3531 = vst.msk [vmem:[#allocation3 + $0x18] sm:$0xff] %vm599_vm3, %v3519_v25  ;;  %v3495_v8 = vadd.f32 1.0, %v6703_v9  ;;  %v8181_v25 = vld [vmem:[%s8432_s1 + $0x10] sm:$0xff]  ;;  %v8188_v9 = vld [vmem:[%s8432_s1 + $0x18] sm:$0xff] }
 0x77e   : > { %v3518_v32 = vadd.f32 %v3514_v38, %v3510_v41  ;;  %v3494_v37 = vadd.f32 1.0, %v6705_v14  ;;  %v8111_v38 = vld [vmem:[%s8434_s3 + $0x40] sm:$0xff]  ;;  %v8202_v14 = vld [vmem:[%s8432_s1 + $0x28] sm:$0xff] }
 0x77f   : > { %6716 = vrcp.f32 %v3495_v8  ;;  %v8195_v41 = vld [vmem:[%s8432_s1 + $0x20] sm:$0xff]  ;;  %v8209_v8 = vld [vmem:[%s8432_s1 + $0x30] sm:$0xff] }
 0x780   : > { %6718 = vtanh.f32 %v3518_v32  ;;  %3530 = vst.msk [vmem:[#allocation3 + $0x10] sm:$0xff] %vm599_vm3, %v3518_v32  ;;  %v8216_v32 = vld [vmem:[%s8432_s1 + $0x38] sm:$0xff] }
 0x781   : > { %6720 = vrcp.f32 %v3494_v37  ;;  %v8223_v37 = vld [vmem:[%s8432_s1 + $0x40] sm:$0xff] }
 0x783   : > { %v6707_v7 = vpop.eup %6706 }
 0x784   : > { %v6709_v20 = vpop.eup %6708 }
 0x785   : > { %v6711_v17 = vpop.eup %6710 }
 0x786   : > { %v6713_v40 = vpop.eup %6712  ;;  %v3525_v24 = vmul.f32 %v6711_v17, %v6707_v7  ;;  %v8230_v7 = vld [vmem:[%s8432_s1 + $0x48] sm:$0xff]  ;;  %v8244_v17 = vld [vmem:[%s8432_s1 + $0x58] sm:$0xff] }
 0x787   : > { %v6715_v6 = vpop.eup %6714  ;;  %v3524_v10 = vmul.f32 %v6713_v40, %v6709_v20  ;;  %v8237_v20 = vld [vmem:[%s8432_s1 + $0x50] sm:$0xff]  ;;  %v8251_v40 = vld [vmem:[%s8432_s1 + $0x60] sm:$0xff] }
 0x788   : > { %3533 = vst.msk [vmem:[#allocation2 + $0x8] sm:$0xff] %vm599_vm3, %v3525_v24 }
 0x789   : > { %v6717_v19 = vpop.eup %6716  ;;  %3532 = vst.msk [vmem:[#allocation2] sm:$0xff] %vm599_vm3, %v3524_v10  ;;  %v6142_v22 = vpack.c.bf16 %v3525_v24, %v3524_v10  ;;  %v8258_v24 = vld [vmem:[%s8432_s1 + $0x68] sm:$0xff]  ;;  %v8272_v10 = vld [vmem:[%s8432_s1 + $0x78] sm:$0xff] }
 0x78a   : > { %v6719_v26 = vpop.eup %6718  ;;  %v3527_v27 = vmul.f32 %v6717_v19, %v6715_v6  ;;  %v8265_v6 = vld [vmem:[%s8432_s1 + $0x70] sm:$0xff]  ;;  %v6916_v19 = vld [vmem:[%s8435_s4] sm:$0xff] }
 0x78b   : > { %v6721_v30 = vpop.eup %6720  ;;  %6143 = vmatprep.subr.bf16.mxu0 %v6142_v22 }
 0x78c   : > { %6145 = vmatpush3.bf16.msra.mxu0 %v6142_v22  ;;  %v3526_v31 = vmul.f32 %v6721_v30, %v6719_v26  ;;  %3535 = vst.msk [vmem:[#allocation2 + $0x18] sm:$0xff] %vm599_vm3, %v3527_v27 }
 0x78e   : > { %3534 = vst.msk [vmem:[#allocation2 + $0x10] sm:$0xff] %vm599_vm3, %v3526_v31  ;;  %v6146_v39 = vpack.c.bf16 %v3527_v27, %v3526_v31 }
 0x78f   : > { %v3620_v42 = vld [vmem:[#allocation2 + $0x8] sm:$0xff] }
 0x790   : > { %6147 = vmatprep.subr.bf16.mxu0 %v6146_v39  ;;  %v3619_v48 = vld [vmem:[#allocation2] sm:$0xff] }
 0x791   : > { %6149 = vmatpush3.bf16.msra.mxu0 %v6146_v39  ;;  %v6150_v11 = vpack.c.bf16 %v3620_v42, %v3619_v48 }
 0x793   : > { %6151 = vmatprep.subr.bf16.mxu0 %v6150_v11  ;;  %v3622_v52 = vld [vmem:[#allocation2 + $0x18] sm:$0xff] }
 0x794   : > { %5914 = vmatmul.mubr.msk.f32.vlgmr.msra.gmra.mrb[52].mxu0 %vm405_vm1, %v7843_v54  ;;  %v8061_v54 = vld [vmem:[%s8434_s3 + $0x8] sm:$0xff] }
 0x795   : > { %6153 = vmatpush3.bf16.msra.mxu0 %v6150_v11  ;;  %v3621_v53 = vld [vmem:[#allocation2 + $0x10] sm:$0xff]  ;;  %5924 = vmatprep.mubr.msk.f32.mxu0 %vm405_vm1, %v8052_v35 }
 0x796   : > { %v6154_v56 = vpack.c.bf16 %v3622_v52, %v3621_v53 }
 0x798   : > { %6155 = vmatprep.subr.bf16.mxu0 %v6154_v56 }
 0x799   : > { %6157 = vmatpush3.bf16.msra.mxu0 %v6154_v56 }
 0x79a   : > { %5948 = vmatprep.subr.msk.mxu0 %vm648_vm2, %v5056_v33 }
 0x79c   : > { %5925 = vmatmul.mubr.msk.f32.vlgmr.msra.gmra.mrb[54].mxu0 %vm405_vm1, %v8061_v54 }
 0x79d   : > { %5927 = vmatprep.mubr.msk.f32.mxu0 %vm405_vm1, %v8068_v36  ;;  %5949 = vmatpush3.msk.msra.mxu0 %vm648_vm2, %v5056_v33 }
 0x7a0   : > { %5928 = vmatmul.mubr.msk.f32.gmra.mrb[56].mxu0 %vm405_vm1, %v8076_v44 }
 0x7a1   : > { %5930 = vmatprep.mubr.msk.f32.mxu0 %vm405_vm1, %v8083_v4 }
 0x7a4   : > { %5931 = vmatmul.mubr.msk.f32.gmra.mrb[58].mxu0 %vm405_vm1, %v8090_v2 }
 0x7a5   : > { %5933 = vmatprep.mubr.msk.f32.mxu0 %vm405_vm1, %v8097_v1 }
 0x7a8   : > { %5934 = vmatmul.mubr.msk.f32.gmra.mrb[60].mxu0 %vm405_vm1, %v8104_v61 }
 0x7a9   : > { %5936 = vmatprep.mubr.msk.f32.mxu0 %vm405_vm1, %v8111_v38 }
 0x7ac   : > { %5937 = vmatmul.mubr.msk.f32.gmra.mrb[62].mxu0 %vm405_vm1, %v8118_v47 }
 0x7ad   : > { %5939 = vmatprep.mubr.msk.f32.mxu0 %vm405_vm1, %v8125_v62 }
 0x7b0   : > { %5940 = vmatmul.mubr.msk.f32.gmra.mrb[64].mxu0 %vm405_vm1, %v8132_v59 }
 0x7b1   : > { %5942 = vmatprep.mubr.msk.f32.mxu0 %vm405_vm1, %v8139_v46 }
 0x7b4   : > { %5943 = vmatmul.mubr.msk.f32.gmra.mrb[66].mxu0 %vm405_vm1, %v8146_v5 }
 0x7b5   : > { %5945 = vmatprep.mubr.msk.f32.mxu0 %vm405_vm1, %v8153_v49 }
 0x7b8   : > { %5946 = vmatmul.mubr.msk.f32.gmra.mrb[68].mxu0 %vm405_vm1, %v8160_v18 }
 0x7b9   : > { %5950 = vmatprep.mubr.msk.f32.mxu0 %vm599_vm3, %v8167_v50 }
 0x7bc   : > { %5951 = vmatmul.mubr.msk.f32.vlgmr.msra.gmra.mrb[54].mxu0 %vm599_vm3, %v8174_v13 }
 0x7bd   : > { %5953 = vmatprep.mubr.msk.f32.mxu0 %vm599_vm3, %v8181_v25 }
 0x7c0   : > { %5954 = vmatmul.mubr.msk.f32.gmra.mrb[56].mxu0 %vm599_vm3, %v8188_v9 }
 0x7c1   : > { %5956 = vmatprep.mubr.msk.f32.mxu0 %vm599_vm3, %v8195_v41 }
 0x7c4   : > { %5957 = vmatmul.mubr.msk.f32.gmra.mrb[58].mxu0 %vm599_vm3, %v8202_v14 }
 0x7c5   : > { %5959 = vmatprep.mubr.msk.f32.mxu0 %vm599_vm3, %v8209_v8 }
 0x7c8   : > { %5960 = vmatmul.mubr.msk.f32.gmra.mrb[60].mxu0 %vm599_vm3, %v8216_v32 }
 0x7c9   : > { %5962 = vmatprep.mubr.msk.f32.mxu0 %vm599_vm3, %v8223_v37 }
 0x7cc   : > { %5963 = vmatmul.mubr.msk.f32.gmra.mrb[62].mxu0 %vm599_vm3, %v8230_v7 }
 0x7cd   : > { %5965 = vmatprep.mubr.msk.f32.mxu0 %vm599_vm3, %v8237_v20 }
 0x7d0   : > { %5966 = vmatmul.mubr.msk.f32.gmra.mrb[64].mxu0 %vm599_vm3, %v8244_v17 }
 0x7d1   : > { %5968 = vmatprep.mubr.msk.f32.mxu0 %vm599_vm3, %v8251_v40 }
 0x7d4   : > { %5969 = vmatmul.mubr.msk.f32.gmra.mrb[66].mxu0 %vm599_vm3, %v8258_v24 }
 0x7d5   : > { %5971 = vmatprep.mubr.msk.f32.mxu0 %vm599_vm3, %v8265_v6 }
 0x7d8   : > { %5972 = vmatmul.mubr.msk.f32.gmra.mrb[68].mxu0 %vm599_vm3, %v8272_v10 }
 0x7d9   : > { %6051 = vmatprep.mubr.msk.f32.mxu0 %vm405_vm1, %v6916_v19 }
 0x867   : > { %v5915_v22 = vpop.f32.mrb[52].mxu0 }
 0x868   : > { %v3608_v26 = vadd.f32 %v5915_v22, %v8532_v57  ;;  %v3602_v27 = vpop.f32.mrb[53].mxu0 }
 0x869   : > { %v3603_v30 = vadd.f32 %v3602_v27, %v7441_v45 }
 0x86a   : > { %v3612_v31 = vmax.f32 %v3608_v26, 0.0 }
 0x86b   : > { %v3611_v39 = vmax.f32 %v3603_v30, 0.0 }
 0x86c   : > { %5055 = vst.msk [vmem:[%s7015_s17 + $0xa] sm:$0x3] %vm1095_vm4, %v3612_v31 }
 0x86d   : > { %5054 = vst.msk [vmem:[%s7010_s13 + $0x28] sm:$0xff] %vm599_vm3, %v3611_v39 }
 0x88f   : > { %v5952_v42 = vpop.f32.mrb[54].mxu0 }
 0x890   : > { %v3917_v48 = vadd.f32 %v5952_v42, %v7313_v63  ;;  %v3837_v11 = vpop.f32.mrb[55].mxu0 }
 0x891   : > { %v3916_v52 = vadd.f32 %v3837_v11, %v8533_v28 }
 0x892   : > { %v5091_v53 = vmul.f32 -1.442695, %v3917_v48 }
 0x893   : > { %v5090_v56 = vmul.f32 -1.442695, %v3916_v52  ;;  %v5955_v33 = vpop.f32.mrb[56].mxu0 }
 0x894   : > { %6722 = vpow2.f32 %v5091_v53  ;;  %v3919_v19 = vadd.f32 %v5955_v33, %v7315_v0  ;;  %v3847_v22 = vpop.f32.mrb[57].mxu0 }
 0x895   : > { %6724 = vpow2.f32 %v5090_v56  ;;  %v3918_v26 = vadd.f32 %v3847_v22, %v8544_v16 }
 0x896   : > { %v5093_v27 = vmul.f32 -1.442695, %v3919_v19 }
 0x897   : > { %v5092_v30 = vmul.f32 -1.442695, %v3918_v26  ;;  %v5958_v31 = vpop.f32.mrb[58].mxu0 }
 0x898   : > { %6726 = vpow2.f32 %v5093_v27  ;;  %v3921_v39 = vadd.f32 %v5958_v31, %v8545_v15  ;;  %v3857_v42 = vpop.f32.mrb[59].mxu0 }
 0x899   : > { %6728 = vpow2.f32 %v5092_v30  ;;  %v3920_v11 = vadd.f32 %v3857_v42, %v8546_v23 }
 0x89a   : > { %v5095_v48 = vmul.f32 -1.442695, %v3921_v39 }
 0x89b   : > { %v5094_v52 = vmul.f32 -1.442695, %v3920_v11  ;;  %v5961_v28 = vpop.f32.mrb[60].mxu0 }
 0x89c   : > { %6730 = vpow2.f32 %v5095_v48  ;;  %v3923_v53 = vadd.f32 %v5961_v28, %v8547_v34  ;;  %v3867_v33 = vpop.f32.mrb[61].mxu0 }
 0x89d   : > { %6732 = vpow2.f32 %v5094_v52  ;;  %v3922_v56 = vadd.f32 %v3867_v33, %v8548_v43 }
 0x89e   : > { %v6723_v19 = vpop.eup %6722  ;;  %v5097_v22 = vmul.f32 -1.442695, %v3923_v53 }
 0x89f   : > { %v6725_v26 = vpop.eup %6724  ;;  %v3945_v27 = vadd.f32 1.0, %v6723_v19  ;;  %v5096_v16 = vmul.f32 -1.442695, %v3922_v56  ;;  %v5964_v31 = vpop.f32.mrb[62].mxu0 }
 0x8a0   : > { %v3944_v15 = vadd.f32 1.0, %v6725_v26  ;;  %6734 = vpow2.f32 %v5097_v22  ;;  %v3925_v30 = vadd.f32 %v5964_v31, %v8549_v55  ;;  %v3877_v39 = vpop.f32.mrb[63].mxu0 }
 0x8a1   : > { %6736 = vrcp.f32 %v3945_v27  ;;  %v3924_v48 = vadd.f32 %v3877_v39, %v8550_v21 }
 0x8a2   : > { %v6727_v42 = vpop.eup %6726  ;;  %6738 = vrcp.f32 %v3944_v15 }
 0x8a3   : > { %v6729_v11 = vpop.eup %6728  ;;  %v3947_v28 = vadd.f32 1.0, %v6727_v42  ;;  %6740 = vpow2.f32 %v5096_v16  ;;  %v5967_v52 = vpop.f32.mrb[64].mxu0 }
 0x8a4   : > { %v3946_v33 = vadd.f32 1.0, %v6729_v11  ;;  %6742 = vtanh.f32 %v3925_v30  ;;  %v3927_v53 = vadd.f32 %v5967_v52, %v8551_v58  ;;  %v3887_v56 = vpop.f32.mrb[65].mxu0 }
 0x8a5   : > { %6744 = vrcp.f32 %v3947_v28  ;;  %v3926_v27 = vadd.f32 %v3887_v56, %v8552_v51 }
 0x8a6   : > { %v6731_v19 = vpop.eup %6730  ;;  %6746 = vrcp.f32 %v3946_v33 }
 0x8a7   : > { %v6733_v22 = vpop.eup %6732  ;;  %v3969_v26 = vadd.f32 1.0, %v6731_v19  ;;  %6748 = vtanh.f32 %v3924_v48  ;;  %v5970_v15 = vpop.f32.mrb[66].mxu0 }
 0x8a8   : > { %v3968_v31 = vadd.f32 1.0, %v6733_v22  ;;  %6750 = vtanh.f32 %v3927_v53  ;;  %v3929_v16 = vadd.f32 %v5970_v15, %v8553_v3  ;;  %v3897_v39 = vpop.f32.mrb[67].mxu0 }
 0x8a9   : > { %6752 = vrcp.f32 %v3969_v26  ;;  %v3928_v30 = vadd.f32 %v3897_v39, %v8554_v60 }
 0x8aa   : > { %v6735_v42 = vpop.eup %6734  ;;  %6754 = vrcp.f32 %v3968_v31  ;;  %v5099_v11 = vmul.f32 -1.442695, %v3929_v16 }
 0x8ab   : > { %v6737_v28 = vpop.eup %6736  ;;  %v3971_v52 = vadd.f32 1.0, %v6735_v42  ;;  %6756 = vtanh.f32 %v3926_v27  ;;  %v5098_v33 = vmul.f32 -1.442695, %v3928_v30  ;;  %v5973_v19 = vpop.f32.mrb[68].mxu0 }
 0x8ac   : > { %v6739_v48 = vpop.eup %6738  ;;  %6758 = vpow2.f32 %v5099_v11  ;;  %v3931_v56 = vadd.f32 %v5973_v19, %v8555_v29  ;;  %v3907_v22 = vpop.f32.mrb[69].mxu0  ;;  %v4009_v29 = vld [vmem:[#allocation3 + $0x8] sm:$0xff] }
 0x8ad   : > { %v6741_v53 = vpop.eup %6740  ;;  %6760 = vrcp.f32 %v3971_v52  ;;  %v3930_v15 = vadd.f32 %v3907_v22, %v8556_v12  ;;  %v4008_v22 = vld [vmem:[#allocation3] sm:$0xff] }
 0x8ae   : > { %v6743_v26 = vpop.eup %6742  ;;  %v3970_v3 = vadd.f32 1.0, %v6741_v53  ;;  %6762 = vpow2.f32 %v5098_v33  ;;  %v5101_v39 = vmul.f32 -1.442695, %v3931_v56 }
 0x8af   : > { %v6745_v31 = vpop.eup %6744  ;;  %v4017_v16 = vmul.f32 %v6743_v26, %v6737_v28  ;;  %v5100_v60 = vmul.f32 -1.442695, %v3930_v15  ;;  %v4011_v15 = vld [vmem:[#allocation3 + $0x18] sm:$0xff] }
 0x8b0   : > { %v6747_v42 = vpop.eup %6746  ;;  %6764 = vrcp.f32 %v3970_v3 }
 0x8b1   : > { %v6749_v27 = vpop.eup %6748  ;;  %6766 = vpow2.f32 %v5101_v39 }
 0x8b2   : > { %v6751_v30 = vpop.eup %6750  ;;  %v4016_v11 = vmul.f32 %v6749_v27, %v6739_v48  ;;  %6768 = vpow2.f32 %v5100_v60  ;;  %v4010_v48 = vld [vmem:[#allocation3 + $0x10] sm:$0xff] }
 0x8b3   : > { %v6753_v19 = vpop.eup %6752  ;;  %v4019_v51 = vmul.f32 %v6751_v30, %v6745_v31 }
 0x8b4   : > { %v6755_v52 = vpop.eup %6754  ;;  %v4013_v58 = vmul.f32 %v6753_v19, %v4009_v29 }
 0x8b5   : > { %v6757_v12 = vpop.eup %6756  ;;  %v4012_v53 = vmul.f32 %v6755_v52, %v4008_v22 }
 0x8b6   : > { %v6759_v33 = vpop.eup %6758  ;;  %v4021_v56 = vadd.f32 %v4017_v16, %v4013_v58  ;;  %v4018_v21 = vmul.f32 %v6757_v12, %v6747_v42 }
 0x8b7   : > { %v6761_v28 = vpop.eup %6760  ;;  %v4020_v26 = vadd.f32 %v4016_v11, %v4012_v53  ;;  %v3997_v3 = vadd.f32 1.0, %v6759_v33 }
 0x8b8   : > { %v6763_v55 = vpop.eup %6762  ;;  %v4015_v39 = vmul.f32 %v6761_v28, %v4011_v15  ;;  %6770 = vtanh.f32 %v4021_v56  ;;  %4033 = vst.msk [vmem:[#allocation3 + $0x8] sm:$0xff] %vm599_vm3, %v4021_v56 }
 0x8b9   : > { %6772 = vtanh.f32 %v4020_v26  ;;  %4032 = vst.msk [vmem:[#allocation3] sm:$0xff] %vm599_vm3, %v4020_v26  ;;  %v3996_v60 = vadd.f32 1.0, %v6763_v55 }
 0x8ba   : > { %v6765_v29 = vpop.eup %6764  ;;  %v4023_v31 = vadd.f32 %v4019_v51, %v4015_v39  ;;  %6774 = vrcp.f32 %v3997_v3 }
 0x8bb   : > { %v6767_v27 = vpop.eup %6766  ;;  %v4014_v58 = vmul.f32 %v6765_v29, %v4010_v48  ;;  %6776 = vrcp.f32 %v3996_v60 }
 0x8bc   : > { %v6769_v12 = vpop.eup %6768  ;;  %6778 = vtanh.f32 %v4023_v31  ;;  %4035 = vst.msk [vmem:[#allocation3 + $0x18] sm:$0xff] %vm599_vm3, %v4023_v31  ;;  %v3999_v16 = vadd.f32 1.0, %v6767_v27  ;;  %v8313_v31 = vld [vmem:[%s8435_s4 + $0x8] sm:$0x3] }
 0x8bd   : > { %v4022_v42 = vadd.f32 %v4018_v21, %v4014_v58  ;;  %v3998_v30 = vadd.f32 1.0, %v6769_v12  ;;  %v5106_v12 = vld [vmem:[%s7005_s10 + $0x1c] sm:$0xf] }
 0x8be   : > { %6780 = vrcp.f32 %v3999_v16 }
 0x8bf   : > { %6782 = vtanh.f32 %v4022_v42  ;;  %4034 = vst.msk [vmem:[#allocation3 + $0x10] sm:$0xff] %vm599_vm3, %v4022_v42 }
 0x8c0   : > { %6784 = vrcp.f32 %v3998_v30 }
 0x8c2   : > { %v6771_v55 = vpop.eup %6770 }
 0x8c3   : > { %v6773_v11 = vpop.eup %6772 }
 0x8c4   : > { %v6775_v19 = vpop.eup %6774 }
 0x8c5   : > { %v6777_v51 = vpop.eup %6776  ;;  %v4029_v52 = vmul.f32 %v6775_v19, %v6771_v55 }
 0x8c6   : > { %v6779_v22 = vpop.eup %6778  ;;  %v4028_v53 = vmul.f32 %v6777_v51, %v6773_v11  ;;  %v8560_v11 = vld [vmem:[#allocation10_spill] sm:$0xff] }
 0x8c7   : > { %4037 = vst.msk [vmem:[#allocation2 + $0x8] sm:$0xff] %vm599_vm3, %v4029_v52 }
 0x8c8   : > { %v6781_v33 = vpop.eup %6780  ;;  %4036 = vst.msk [vmem:[#allocation2] sm:$0xff] %vm599_vm3, %v4028_v53  ;;  %v6158_v56 = vpack.c.bf16 %v4029_v52, %v4028_v53 }
 0x8c9   : > { %v6783_v21 = vpop.eup %6782  ;;  %v4031_v28 = vmul.f32 %v6781_v33, %v6779_v22  ;;  %v8561_v22 = vld [vmem:[#allocation11_spill] sm:$0xff] }
 0x8ca   : > { %v6785_v15 = vpop.eup %6784  ;;  %6159 = vmatprep.subr.bf16.mxu1 %v6158_v56 }
 0x8cb   : > { %6161 = vmatpush3.bf16.msra.mxu1 %v6158_v56  ;;  %v4030_v26 = vmul.f32 %v6785_v15, %v6783_v21  ;;  %4039 = vst.msk [vmem:[#allocation2 + $0x18] sm:$0xff] %vm599_vm3, %v4031_v28  ;;  %v8562_v56 = vld [vmem:[#allocation14_spill] sm:$0xff] }
 0x8cd   : > { %4038 = vst.msk [vmem:[#allocation2 + $0x10] sm:$0xff] %vm599_vm3, %v4030_v26  ;;  %v6162_v3 = vpack.c.bf16 %v4031_v28, %v4030_v26 }
 0x8ce   : > { %v4124_v39 = vld [vmem:[#allocation2 + $0x8] sm:$0xff] }
 0x8cf   : > { %6163 = vmatprep.subr.bf16.mxu1 %v6162_v3  ;;  %v4123_v60 = vld [vmem:[#allocation2] sm:$0xff] }
 0x8d0   : > { %6165 = vmatpush3.bf16.msra.mxu1 %v6162_v3  ;;  %v6166_v29 = vpack.c.bf16 %v4124_v39, %v4123_v60  ;;  %v8563_v39 = vld [vmem:[#allocation15_spill] sm:$0xff] }
 0x8d2   : > { %6167 = vmatprep.subr.bf16.mxu1 %v6166_v29  ;;  %v4126_v48 = vld [vmem:[#allocation2 + $0x18] sm:$0xff] }
 0x8d3   : > { %5983 = vmatmul.mubr.msk.f32.vlgmr.msra.gmra.mrb[54].mxu1 %vm405_vm1, %v8313_v31 }
 0x8d4   : > { %6169 = vmatpush3.bf16.msra.mxu1 %v6166_v29  ;;  %v4125_v27 = vld [vmem:[#allocation2 + $0x10] sm:$0xff]  ;;  %5993 = vmatprep.mubr.msk.f32.mxu1 %vm405_vm1, %v8052_v35 }
 0x8d5   : > { %v6170_v58 = vpack.c.bf16 %v4126_v48, %v4125_v27  ;;  %v8564_v27 = vld [vmem:[#allocation12_spill] sm:$0xff] }
 0x8d7   : > { %6171 = vmatprep.subr.bf16.mxu1 %v6170_v58 }
 0x8d8   : > { %6173 = vmatpush3.bf16.msra.mxu1 %v6170_v58 }
 0x8d9   : > { %6017 = vmatprep.subr.msk.mxu1 %vm648_vm2, %v5106_v12 }
 0x8db   : > { %5994 = vmatmul.mubr.msk.f32.vlgmr.msra.gmra.mrb[56].mxu1 %vm405_vm1, %v8061_v54 }
 0x8dc   : > { %5996 = vmatprep.mubr.msk.f32.mxu1 %vm405_vm1, %v8068_v36  ;;  %6018 = vmatpush3.msk.msra.mxu1 %vm648_vm2, %v5106_v12 }
 0x8df   : > { %5997 = vmatmul.mubr.msk.f32.gmra.mrb[58].mxu1 %vm405_vm1, %v8076_v44 }
 0x8e0   : > { %5999 = vmatprep.mubr.msk.f32.mxu1 %vm405_vm1, %v8083_v4 }
 0x8e3   : > { %6000 = vmatmul.mubr.msk.f32.gmra.mrb[60].mxu1 %vm405_vm1, %v8090_v2 }
 0x8e4   : > { %6002 = vmatprep.mubr.msk.f32.mxu1 %vm405_vm1, %v8097_v1 }
 0x8e7   : > { %6003 = vmatmul.mubr.msk.f32.gmra.mrb[62].mxu1 %vm405_vm1, %v8104_v61 }
 0x8e8   : > { %6005 = vmatprep.mubr.msk.f32.mxu1 %vm405_vm1, %v8111_v38 }
 0x8eb   : > { %6006 = vmatmul.mubr.msk.f32.gmra.mrb[64].mxu1 %vm405_vm1, %v8118_v47  ;;  %v8557_v47 = vld [vmem:[#allocation5_spill] sm:$0xff] }
 0x8ec   : > { %6008 = vmatprep.mubr.msk.f32.mxu1 %vm405_vm1, %v8125_v62 }
 0x8ef   : > { %6009 = vmatmul.mubr.msk.f32.gmra.mrb[66].mxu1 %vm405_vm1, %v8132_v59 }
 0x8f0   : > { %6011 = vmatprep.mubr.msk.f32.mxu1 %vm405_vm1, %v8139_v46 }
 0x8f3   : > { %6012 = vmatmul.mubr.msk.f32.gmra.mrb[68].mxu1 %vm405_vm1, %v8146_v5 }
 0x8f4   : > { %6014 = vmatprep.mubr.msk.f32.mxu1 %vm405_vm1, %v8153_v49 }
 0x8f7   : > { %6015 = vmatmul.mubr.msk.f32.gmra.mrb[70].mxu1 %vm405_vm1, %v8160_v18 }
 0x8f8   : > { %6019 = vmatprep.mubr.msk.f32.mxu1 %vm599_vm3, %v8167_v50  ;;  %v8558_v50 = vld [vmem:[#allocation7_spill] sm:$0xff] }
 0x8fb   : > { %6020 = vmatmul.mubr.msk.f32.vlgmr.msra.gmra.mrb[56].mxu1 %vm599_vm3, %v8174_v13 }
 0x8fc   : > { %6022 = vmatprep.mubr.msk.f32.mxu1 %vm599_vm3, %v8181_v25 }
 0x8ff   : > { %6023 = vmatmul.mubr.msk.f32.gmra.mrb[58].mxu1 %vm599_vm3, %v8188_v9 }
 0x900   : > { %6025 = vmatprep.mubr.msk.f32.mxu1 %vm599_vm3, %v8195_v41 }
 0x903   : > { %6026 = vmatmul.mubr.msk.f32.gmra.mrb[60].mxu1 %vm599_vm3, %v8202_v14  ;;  %v8559_v14 = vld [vmem:[#allocation6_spill] sm:$0xff] }
 0x904   : > { %6028 = vmatprep.mubr.msk.f32.mxu1 %vm599_vm3, %v8209_v8 }
 0x907   : > { %6029 = vmatmul.mubr.msk.f32.gmra.mrb[62].mxu1 %vm599_vm3, %v8216_v32 }
 0x908   : > { %6031 = vmatprep.mubr.msk.f32.mxu1 %vm599_vm3, %v8223_v37 }
 0x90b   : > { %6032 = vmatmul.mubr.msk.f32.gmra.mrb[64].mxu1 %vm599_vm3, %v8230_v7 }
 0x90c   : > { %6034 = vmatprep.mubr.msk.f32.mxu1 %vm599_vm3, %v8237_v20 }
 0x90f   : > { %6035 = vmatmul.mubr.msk.f32.gmra.mrb[66].mxu1 %vm599_vm3, %v8244_v17 }
 0x910   : > { %6037 = vmatprep.mubr.msk.f32.mxu1 %vm599_vm3, %v8251_v40 }
 0x913   : > { %6038 = vmatmul.mubr.msk.f32.gmra.mrb[68].mxu1 %vm599_vm3, %v8258_v24 }
 0x914   : > { %6040 = vmatprep.mubr.msk.f32.mxu1 %vm599_vm3, %v8265_v6 }
 0x917   : > { %6041 = vmatmul.mubr.msk.f32.gmra.mrb[70].mxu1 %vm599_vm3, %v8272_v10 }
 0x9a6   : > { %v5984_v35 = vpop.f32.mrb[54].mxu1 }
 0x9a7   : > { %v4112_v54 = vadd.f32 %v5984_v35, %v8532_v57  ;;  %v4106_v36 = vpop.f32.mrb[55].mxu1  ;;  %v8565_v35 = vld [vmem:[#allocation13_spill] sm:$0xff] }
 0x9a8   : > { %v4107_v44 = vadd.f32 %v4106_v36, %v7441_v45 }
 0x9a9   : > { %v4116_v4 = vmax.f32 %v4112_v54, 0.0 }
 0x9aa   : > { %v4115_v2 = vmax.f32 %v4107_v44, 0.0 }
 0x9ab   : > { %5105 = vst.msk [vmem:[%s7015_s17 + $0xc] sm:$0x3] %vm1095_vm4, %v4116_v4 }
 0x9ac   : > { %5104 = vst.msk [vmem:[%s7010_s13 + $0x30] sm:$0xff] %vm599_vm3, %v4115_v2 }
 0x9ce   : > { %v6021_v1 = vpop.f32.mrb[56].mxu1 }
 0x9cf   : > { %v4421_v61 = vadd.f32 %v6021_v1, %v7313_v63  ;;  %v4341_v38 = vpop.f32.mrb[57].mxu1 }
 0x9d0   : > { %v4420_v62 = vadd.f32 %v4341_v38, %v8557_v47  ;;  %v8566_v47 = vld [vmem:[#allocation16_spill] sm:$0xff] }
 0x9d1   : > { %v5141_v59 = vmul.f32 -1.442695, %v4421_v61 }
 0x9d2   : > { %v5140_v46 = vmul.f32 -1.442695, %v4420_v62  ;;  %v6024_v5 = vpop.f32.mrb[58].mxu1 }
 0x9d3   : > { %6786 = vpow2.f32 %v5141_v59  ;;  %v4423_v49 = vadd.f32 %v6024_v5, %v7315_v0  ;;  %v4351_v18 = vpop.f32.mrb[59].mxu1  ;;  %v8567_v5 = vld [vmem:[#allocation17_spill] sm:$0xff] }
 0x9d4   : > { %6788 = vpow2.f32 %v5140_v46  ;;  %v4422_v13 = vadd.f32 %v4351_v18, %v8558_v50 }
 0x9d5   : > { %v5143_v25 = vmul.f32 -1.442695, %v4423_v49 }
 0x9d6   : > { %v5142_v9 = vmul.f32 -1.442695, %v4422_v13  ;;  %v6027_v41 = vpop.f32.mrb[60].mxu1 }
 0x9d7   : > { %6790 = vpow2.f32 %v5143_v25  ;;  %v4425_v8 = vadd.f32 %v6027_v41, %v8559_v14  ;;  %v4361_v63 = vpop.f32.mrb[61].mxu1 }
 0x9d8   : > { %6792 = vpow2.f32 %v5142_v9  ;;  %v4424_v32 = vadd.f32 %v4361_v63, %v8546_v23 }
 0x9d9   : > { %v5145_v37 = vmul.f32 -1.442695, %v4425_v8 }
 0x9da   : > { %v5144_v7 = vmul.f32 -1.442695, %v4424_v32  ;;  %v6030_v20 = vpop.f32.mrb[62].mxu1 }
 0x9db   : > { %6794 = vpow2.f32 %v5145_v37  ;;  %v4427_v0 = vadd.f32 %v6030_v20, %v8547_v34  ;;  %v4371_v17 = vpop.f32.mrb[63].mxu1 }
 0x9dc   : > { %6796 = vpow2.f32 %v5144_v7  ;;  %v4426_v40 = vadd.f32 %v4371_v17, %v8548_v43  ;;  %v4513_v7 = vld [vmem:[#allocation3 + $0x8] sm:$0xff] }
 0x9dd   : > { %v6787_v24 = vpop.eup %6786  ;;  %v5147_v6 = vmul.f32 -1.442695, %v4427_v0 }
 0x9de   : > { %v6789_v10 = vpop.eup %6788  ;;  %v4449_v16 = vadd.f32 1.0, %v6787_v24  ;;  %v5146_v42 = vmul.f32 -1.442695, %v4426_v40  ;;  %v6033_v30 = vpop.f32.mrb[64].mxu1  ;;  %v4512_v40 = vld [vmem:[#allocation3] sm:$0xff] }
 0x9df   : > { %v4448_v55 = vadd.f32 1.0, %v6789_v10  ;;  %6798 = vpow2.f32 %v5147_v6  ;;  %v4429_v23 = vadd.f32 %v6033_v30, %v8560_v11  ;;  %v4381_v19 = vpop.f32.mrb[65].mxu1 }
 0x9e0   : > { %6800 = vrcp.f32 %v4449_v16  ;;  %v4428_v53 = vadd.f32 %v4381_v19, %v8561_v22  ;;  %v4514_v22 = vld [vmem:[#allocation3 + $0x10] sm:$0xff] }
 0x9e1   : > { %v6791_v51 = vpop.eup %6790  ;;  %6802 = vrcp.f32 %v4448_v55  ;;  %v4515_v55 = vld [vmem:[#allocation3 + $0x18] sm:$0xff] }
 0x9e2   : > { %v6793_v52 = vpop.eup %6792  ;;  %v4451_v34 = vadd.f32 1.0, %v6791_v51  ;;  %6804 = vpow2.f32 %v5146_v42  ;;  %v6036_v43 = vpop.f32.mrb[66].mxu1 }
 0x9e3   : > { %v4450_v33 = vadd.f32 1.0, %v6793_v52  ;;  %6806 = vtanh.f32 %v4429_v23  ;;  %v4431_v21 = vadd.f32 %v6036_v43, %v8562_v56  ;;  %v4391_v28 = vpop.f32.mrb[67].mxu1 }
 0x9e4   : > { %6808 = vrcp.f32 %v4451_v34  ;;  %v4430_v60 = vadd.f32 %v4391_v28, %v8563_v39 }
 0x9e5   : > { %v6795_v15 = vpop.eup %6794  ;;  %6810 = vrcp.f32 %v4450_v33 }
 0x9e6   : > { %v6797_v26 = vpop.eup %6796  ;;  %v4473_v3 = vadd.f32 1.0, %v6795_v15  ;;  %6812 = vtanh.f32 %v4428_v53  ;;  %v6039_v29 = vpop.f32.mrb[68].mxu1 }
 0x9e7   : > { %v4472_v48 = vadd.f32 1.0, %v6797_v26  ;;  %6814 = vtanh.f32 %v4431_v21  ;;  %v4433_v58 = vadd.f32 %v6039_v29, %v8564_v27  ;;  %v4401_v12 = vpop.f32.mrb[69].mxu1 }
 0x9e8   : > { %6816 = vrcp.f32 %v4473_v3  ;;  %v4432_v54 = vadd.f32 %v4401_v12, %v8565_v35 }
 0x9e9   : > { %v6799_v36 = vpop.eup %6798  ;;  %6818 = vrcp.f32 %v4472_v48  ;;  %v5149_v44 = vmul.f32 -1.442695, %v4433_v58 }
 0x9ea   : > { %v6801_v4 = vpop.eup %6800  ;;  %v4475_v2 = vadd.f32 1.0, %v6799_v36  ;;  %6820 = vtanh.f32 %v4430_v60  ;;  %v5148_v1 = vmul.f32 -1.442695, %v4432_v54  ;;  %v6042_v61 = vpop.f32.mrb[70].mxu1 }
 0x9eb   : > { %v6803_v38 = vpop.eup %6802  ;;  %6822 = vpow2.f32 %v5149_v44  ;;  %v4435_v62 = vadd.f32 %v6042_v61, %v8566_v47  ;;  %v4411_v59 = vpop.f32.mrb[71].mxu1 }
 0x9ec   : > { %v6805_v46 = vpop.eup %6804  ;;  %6824 = vrcp.f32 %v4475_v2  ;;  %v4434_v49 = vadd.f32 %v4411_v59, %v8567_v5 }
 0x9ed   : > { %v6807_v18 = vpop.eup %6806  ;;  %v4474_v50 = vadd.f32 1.0, %v6805_v46  ;;  %6826 = vpow2.f32 %v5148_v1  ;;  %v5151_v13 = vmul.f32 -1.442695, %v4435_v62 }
 0x9ee   : > { %v6809_v25 = vpop.eup %6808  ;;  %v4521_v9 = vmul.f32 %v6807_v18, %v6801_v4  ;;  %v5150_v41 = vmul.f32 -1.442695, %v4434_v49 }
 0x9ef   : > { %v6811_v14 = vpop.eup %6810  ;;  %6828 = vrcp.f32 %v4474_v50 }
 0x9f0   : > { %v6813_v8 = vpop.eup %6812  ;;  %6830 = vpow2.f32 %v5151_v13 }
 0x9f1   : > { %v6815_v63 = vpop.eup %6814  ;;  %v4520_v32 = vmul.f32 %v6813_v8, %v6803_v38  ;;  %6832 = vpow2.f32 %v5150_v41 }
 0x9f2   : > { %v6817_v37 = vpop.eup %6816  ;;  %v4523_v20 = vmul.f32 %v6815_v63, %v6809_v25 }
 0x9f3   : > { %v6819_v0 = vpop.eup %6818  ;;  %v4517_v17 = vmul.f32 %v6817_v37, %v4513_v7 }
 0x9f4   : > { %v6821_v24 = vpop.eup %6820  ;;  %v4516_v6 = vmul.f32 %v6819_v0, %v4512_v40 }
 0x9f5   : > { %v6823_v10 = vpop.eup %6822  ;;  %v4525_v16 = vadd.f32 %v4521_v9, %v4517_v17  ;;  %v4522_v42 = vmul.f32 %v6821_v24, %v6811_v14 }
 0x9f6   : > { %v6825_v30 = vpop.eup %6824  ;;  %v4524_v11 = vadd.f32 %v4520_v32, %v4516_v6  ;;  %v4501_v23 = vadd.f32 1.0, %v6823_v10 }
 0x9f7   : > { %v6827_v19 = vpop.eup %6826  ;;  %v4519_v51 = vmul.f32 %v6825_v30, %v4515_v55  ;;  %6834 = vtanh.f32 %v4525_v16  ;;  %4537 = vst.msk [vmem:[#allocation3 + $0x8] sm:$0xff] %vm599_vm3, %v4525_v16 }
 0x9f8   : > { %6836 = vtanh.f32 %v4524_v11  ;;  %4536 = vst.msk [vmem:[#allocation3] sm:$0xff] %vm599_vm3, %v4524_v11  ;;  %v4500_v52 = vadd.f32 1.0, %v6827_v19 }
 0x9f9   : > { %v6829_v34 = vpop.eup %6828  ;;  %v4527_v53 = vadd.f32 %v4523_v20, %v4519_v51  ;;  %6838 = vrcp.f32 %v4501_v23 }
 0x9fa   : > { %v6831_v43 = vpop.eup %6830  ;;  %v4518_v33 = vmul.f32 %v6829_v34, %v4514_v22  ;;  %6840 = vrcp.f32 %v4500_v52 }
 0x9fb   : > { %v6833_v56 = vpop.eup %6832  ;;  %6842 = vtanh.f32 %v4527_v53  ;;  %4539 = vst.msk [vmem:[#allocation3 + $0x18] sm:$0xff] %vm599_vm3, %v4527_v53  ;;  %v4503_v21 = vadd.f32 1.0, %v6831_v43 }
 0x9fc   : > { %v4526_v28 = vadd.f32 %v4522_v42, %v4518_v33  ;;  %v4502_v15 = vadd.f32 1.0, %v6833_v56 }
 0x9fd   : > { %6844 = vrcp.f32 %v4503_v21 }
 0x9fe   : > { %6846 = vtanh.f32 %v4526_v28  ;;  %4538 = vst.msk [vmem:[#allocation3 + $0x10] sm:$0xff] %vm599_vm3, %v4526_v28 }
 0x9ff   : > { %6848 = vrcp.f32 %v4502_v15 }
 0xa01   : > { %v6835_v26 = vpop.eup %6834 }
 0xa02   : > { %v6837_v3 = vpop.eup %6836 }
 0xa03   : > { %v6839_v39 = vpop.eup %6838 }
 0xa04   : > { %v6841_v60 = vpop.eup %6840  ;;  %v4533_v29 = vmul.f32 %v6839_v39, %v6835_v26 }
 0xa05   : > { %v6843_v48 = vpop.eup %6842  ;;  %v4532_v27 = vmul.f32 %v6841_v60, %v6837_v3 }
 0xa06   : > { %4541 = vst.msk [vmem:[#allocation2 + $0x8] sm:$0xff] %vm599_vm3, %v4533_v29 }
 0xa07   : > { %v6845_v58 = vpop.eup %6844  ;;  %4540 = vst.msk [vmem:[#allocation2] sm:$0xff] %vm599_vm3, %v4532_v27  ;;  %v6174_v12 = vpack.c.bf16 %v4533_v29, %v4532_v27 }
 0xa08   : > { %v6847_v35 = vpop.eup %6846  ;;  %v4535_v54 = vmul.f32 %v6845_v58, %v6843_v48 }
 0xa09   : > { %v6849_v36 = vpop.eup %6848  ;;  %6175 = vmatprep.subr.bf16.mxu0 %v6174_v12 }
 0xa0a   : > { %6177 = vmatpush3.bf16.msra.mxu0 %v6174_v12  ;;  %v4534_v44 = vmul.f32 %v6849_v36, %v6847_v35  ;;  %4543 = vst.msk [vmem:[#allocation2 + $0x18] sm:$0xff] %vm599_vm3, %v4535_v54 }
 0xa0c   : > { %4542 = vst.msk [vmem:[#allocation2 + $0x10] sm:$0xff] %vm599_vm3, %v4534_v44  ;;  %v6178_v4 = vpack.c.bf16 %v4535_v54, %v4534_v44 }
 0xa0e   : > { %6179 = vmatprep.subr.bf16.mxu0 %v6178_v4 }
 0xa0f   : > { %6181 = vmatpush3.bf16.msra.mxu0 %v6178_v4 }
 0xa12   : > { %6052 = vmatmul.mubr.msk.f32.vlgmr.msra.gmra.mrb[70].mxu0 %vm405_vm1, %v8313_v31 }
 0xae5   : > { %v6053_v2 = vpop.f32.mrb[70].mxu0 }
 0xae6   : > { %v4616_v1 = vadd.f32 %v6053_v2, %v8532_v57  ;;  %v4610_v61 = vpop.f32.mrb[71].mxu0 }
 0xae7   : > { %v4611_v38 = vadd.f32 %v4610_v61, %v7441_v45 }
 0xae8   : > { %v4620_v47 = vmax.f32 %v4616_v1, 0.0 }
 0xae9   : > { %v4619_v62 = vmax.f32 %v4611_v38, 0.0 }
 0xaea   : > { %5155 = vst.msk [vmem:[%s7015_s17 + $0xe] sm:$0x3] %vm1095_vm4, %v4620_v47 }
 0xaeb   : > { %5154 = vst.msk [vmem:[%s7010_s13 + $0x38] sm:$0xff] %vm599_vm3, %v4619_v62 }
 0xaec PF: > { %s18_s26 = sadd.s32 1, %s6940_s26   ;;  %s8568_s24 = smov %s6936_s25 }
 0xaed   : > { %p15_p6 = scmp.ge.s32.totalorder %s18_s26, 4   ;;  %s8569_s25 = smov %s8571_s27 }
 0xaef   :  { %17 = sbr.rel (!%p15_p6) target bundleno = 2 (0x2), region = 111 }

</bundles_post_ra>
